<compile_context>
chip_gen: v7x
topology: tpu7x:2x2x1
jax: 0.10.0
libtpu: 0.0.40
codegen_flags: <defaults>
</compile_context>

<pallas_src>
import math
import functools

import jax
import jax.numpy as jnp
from jax.experimental import pallas as pl
from jax.experimental.pallas import tpu as pltpu


# ----------------------------- BlockSpec helpers -----------------------------

def _step_spec(block_shape):
    """Block advancing along the leading axis with the 1-D grid."""
    n = len(block_shape) - 1
    return pl.BlockSpec(tuple(block_shape), lambda g, n=n: (g,) + (0,) * n)


def _full_spec(shape):
    """Full-array block, identical for every grid step (weights / tables)."""
    n = len(shape)
    return pl.BlockSpec(tuple(shape), lambda g, n=n: (0,) * n)


def _round_up(x, m):
    return ((x + m - 1) // m) * m


def _batch_per_step(batch):
    """Batches folded into one grid step.  v5e/v6e have a single TensorCore,
    so fold the whole batch (fills sublanes, halves MXU-op count); v7x keeps
    one batch element per step so the 'parallel' grid axis shards the
    sequences across its two TensorCores."""
    try:
        kind = jax.devices()[0].device_kind.lower()
    except Exception:
        kind = ""
    two_tensorcores = ("v7" in kind) or ("7x" in kind)
    return 1 if (two_tensorcores and batch > 1) else batch


# ------------------------------- fused kernel --------------------------------

def _fused_decoder_kernel(tok_ref, mem_ref, smask_ref, cmask_ref,
                          emb_ref, pe_ref,
                          qkv_w_ref, wo_ref, w1_ref, w2_ref,
                          vec_ref, dw_ref, db_ref,
                          o_ref,
                          *, nhead, n_layers):
    f32, bf16 = jnp.float32, jnp.bfloat16
    N, E = pe_ref.shape            # N = (batches per step) * seq_len
    NKV = mem_ref.shape[0]         # (batches per step) * memory_len
    V = emb_ref.shape[0]
    H = w1_ref.shape[2]
    hd = E // nhead

    # ---- token embedding (one-hot matmul on the VMEM-resident table) + PE
    tok = tok_ref[...]                                           # [N, 1] int32
    col = jax.lax.broadcasted_iota(jnp.int32, (N, V), 1)
    onehot = jnp.where(col == tok, 1.0, 0.0).astype(bf16)        # [N, V]
    x = jnp.dot(onehot, emb_ref[...], preferred_element_type=f32) + pe_ref[...]

    mem = mem_ref[...]                                           # [NKV, E] bf16
    smask = smask_ref[...]                                       # [nh*N, nh*N]
    cmask = cmask_ref[...]                                       # [nh*N, nh*NKV]
    vecs = vec_ref[...]                                          # [12L, W] f32

    def layer_norm(v, g, b):
        mu = jnp.mean(v, axis=-1, keepdims=True)
        var = jnp.mean(jnp.square(v - mu), axis=-1, keepdims=True)
        return (v - mu) * jax.lax.rsqrt(var + 1e-5) * g + b

    def fold_heads(t):
        # [rows, E] -> [nhead*rows, hd]; row order (head, row).  Lane slices +
        # sublane concat stay in registers (XLU slot), no VMEM round-trip.
        return jnp.concatenate(
            [t[:, h * hd:(h + 1) * hd] for h in range(nhead)], axis=0)

    def unfold_heads(t, rows):
        # [nhead*rows, hd] -> [rows, E] (standard concatenated-heads layout)
        return jnp.concatenate(
            [t[h * rows:(h + 1) * rows, :] for h in range(nhead)], axis=1)

    def mha_core(q, k, v, mask, wo, bo):
        # q: [Nq, E] f32, k/v: [Nk, E] f32.  Heads folded onto sublanes so all
        # heads share ONE score matmul + ONE softmax + ONE AV matmul; the
        # additive mask is block-diagonal over (head, batch) blocks (-1e9 off
        # block) and carries the causal / key-padding terms on the diagonal.
        rows = q.shape[0]
        qf = fold_heads(q).astype(bf16)                    # [nh*Nq, hd]
        kf = fold_heads(k).astype(bf16)                    # [nh*Nk, hd]
        vf = fold_heads(v).astype(bf16)
        s = jax.lax.dot_general(qf, kf, (((1,), (1,)), ((), ())),
                                preferred_element_type=f32)   # [nh*Nq, nh*Nk]
        s = s + mask
        s = s - jnp.max(s, axis=-1, keepdims=True)
        p = jnp.exp(s)                                     # off-block -> exact 0
        p = p * pl.reciprocal(jnp.sum(p, axis=-1, keepdims=True), approx=True)
        of = jnp.dot(p.astype(bf16), vf, preferred_element_type=f32)  # [nh*Nq, hd]
        attn = unfold_heads(of, rows).astype(bf16)                    # [Nq, E]
        return jnp.dot(attn, wo, preferred_element_type=f32) + bo

    for l in range(n_layers):                    # static unroll (L is tiny)
        r = 12 * l
        sa_bqkv = vecs[r + 0:r + 1, :3 * E]
        ca_bqkv = vecs[r + 1:r + 2, :3 * E]
        sa_bo = vecs[r + 2:r + 3, :E]
        ca_bo = vecs[r + 3:r + 4, :E]
        g1, bn1 = vecs[r + 4:r + 5, :E], vecs[r + 5:r + 6, :E]
        g2, bn2 = vecs[r + 6:r + 7, :E], vecs[r + 7:r + 8, :E]
        g3, bn3 = vecs[r + 8:r + 9, :E], vecs[r + 9:r + 10, :E]
        fb1 = vecs[r + 10:r + 11, :H]
        fb2 = vecs[r + 11:r + 12, :E]

        # --- self attention: single fused [N,E]x[E,3E] QKV matmul
        x_bf = x.astype(bf16)
        qkv = jnp.dot(x_bf, qkv_w_ref[2 * l], preferred_element_type=f32) + sa_bqkv
        sa = mha_core(qkv[:, :E], qkv[:, E:2 * E], qkv[:, 2 * E:], smask,
                      wo_ref[2 * l], sa_bo)
        x = layer_norm(x + sa, g1, bn1)

        # --- cross attention: Q from x, fused KV from memory (no memory mask)
        x_bf = x.astype(bf16)
        wc = qkv_w_ref[2 * l + 1]                          # [E, 3E]
        q = jnp.dot(x_bf, wc[:, :E], preferred_element_type=f32) + ca_bqkv[:, :E]
        kv = jnp.dot(mem, wc[:, E:], preferred_element_type=f32) + ca_bqkv[:, E:]
        ca = mha_core(q, kv[:, :E], kv[:, E:], cmask, wo_ref[2 * l + 1], ca_bo)
        x = layer_norm(x + ca, g2, bn2)

        # --- feed-forward (ReLU) + residual + norm3
        h1 = jnp.maximum(
            jnp.dot(x.astype(bf16), w1_ref[l], preferred_element_type=f32) + fb1, 0.0)
        ff = jnp.dot(h1.astype(bf16), w2_ref[l], preferred_element_type=f32) + fb2
        x = layer_norm(x + ff, g3, bn3)

    # --- final dense; weights zero-padded to a full 128-lane tile so the only
    #     HBM writeback is an unmasked lane-dense store.
    logits = jnp.dot(x.astype(bf16), dw_ref[...], preferred_element_type=f32) + db_ref[...]
    o_ref[...] = logits


# ------------------------------ params & packing ------------------------------

def make_pe(max_len, E):
    position = jnp.arange(max_len, dtype=jnp.float32)[:, None]
    div_term = jnp.exp(jnp.arange(0, E, 2, dtype=jnp.float32) * (-math.log(10000.0) / E))
    pe = jnp.zeros((max_len, E), jnp.float32)
    pe = pe.at[:, 0::2].set(jnp.sin(position * div_term))
    pe = pe.at[:, 1::2].set(jnp.cos(position * div_term))
    return pe


def init_params(key, vocab_dim, embedding_dim, hidden_size, n_layers):
    E, H, V = embedding_dim, hidden_size, vocab_dim
    keys = jax.random.split(key, 2 + n_layers)
    params = {"embedding": 0.1 * jax.random.normal(keys[0], (V, E), jnp.float32)}
    kd1, kd2 = jax.random.split(keys[1])
    params["dense_w"] = 0.1 * jax.random.normal(kd1, (E, V), jnp.float32)   # [in, out]
    params["dense_b"] = 0.02 * jax.random.normal(kd2, (1, V), jnp.float32)
    layers = []
    for l in range(n_layers):
        lk = jax.random.split(keys[2 + l], 12)
        layers.append(dict(
            sa_wqkv=0.1 * jax.random.normal(lk[0], (E, 3 * E), jnp.float32),
            sa_bqkv=0.02 * jax.random.normal(lk[1], (1, 3 * E), jnp.float32),
            sa_wo=0.1 * jax.random.normal(lk[2], (E, E), jnp.float32),
            sa_bo=0.02 * jax.random.normal(lk[3], (1, E), jnp.float32),
            ca_wqkv=0.1 * jax.random.normal(lk[4], (E, 3 * E), jnp.float32),
            ca_bqkv=0.02 * jax.random.normal(lk[5], (1, 3 * E), jnp.float32),
            ca_wo=0.1 * jax.random.normal(lk[6], (E, E), jnp.float32),
            ca_bo=0.02 * jax.random.normal(lk[7], (1, E), jnp.float32),
            n1_g=jnp.ones((1, E), jnp.float32), n1_b=jnp.zeros((1, E), jnp.float32),
            n2_g=jnp.ones((1, E), jnp.float32), n2_b=jnp.zeros((1, E), jnp.float32),
            n3_g=jnp.ones((1, E), jnp.float32), n3_b=jnp.zeros((1, E), jnp.float32),
            l1_w=0.1 * jax.random.normal(lk[8], (E, H), jnp.float32),
            l1_b=0.02 * jax.random.normal(lk[9], (1, H), jnp.float32),
            l2_w=0.1 * jax.random.normal(lk[10], (H, E), jnp.float32),
            l2_b=0.02 * jax.random.normal(lk[11], (1, E), jnp.float32),
        ))
    params["layers"] = layers
    return params


def pack_params(params, nhead):
    """Keep fused [E,3E] QKV slabs (Q columns pre-scaled by 1/sqrt(hd)), stack
    per-layer weights on a leading axis, pre-cast matmul weights to bf16, pack
    every small f32 vector into ONE [12L, max(3E,H)] slab, and zero-pad the
    final dense to a 128-lane tile.  Done once at load time in a real model."""
    E = params["embedding"].shape[1]
    H = params["layers"][0]["l1_w"].shape[1]
    V = params["dense_w"].shape[1]
    hd = E // nhead
    bf16 = jnp.bfloat16
    scale = 1.0 / math.sqrt(hd)
    VEC_W = max(3 * E, H)
    VP = _round_up(V, 128)

    qscale = jnp.concatenate([jnp.full((E,), scale, jnp.float32),
                              jnp.ones((2 * E,), jnp.float32)])

    def row(v):
        v = v.reshape(-1).astype(jnp.float32)
        return jnp.pad(v, (0, VEC_W - v.shape[0]))

    qkv_w, wo, w1, w2, vec_rows = [], [], [], [], []
    for p in params["layers"]:
        qkv_w += [p["sa_wqkv"] * qscale[None, :], p["ca_wqkv"] * qscale[None, :]]
        wo += [p["sa_wo"], p["ca_wo"]]
        w1.append(p["l1_w"]); w2.append(p["l2_w"])
        vec_rows += [row(p["sa_bqkv"] * qscale[None, :]),
                     row(p["ca_bqkv"] * qscale[None, :]),
                     row(p["sa_bo"]), row(p["ca_bo"]),
                     row(p["n1_g"]), row(p["n1_b"]),
                     row(p["n2_g"]), row(p["n2_b"]),
                     row(p["n3_g"]), row(p["n3_b"]),
                     row(p["l1_b"]), row(p["l2_b"])]

    return dict(
        emb=params["embedding"].astype(bf16),
        qkv_w=jnp.stack(qkv_w).astype(bf16),          # [2L, E, 3E]  (even=self, odd=cross)
        wo=jnp.stack(wo).astype(bf16),                # [2L, E, E]
        ffn_w1=jnp.stack(w1).astype(bf16),            # [L, E, H]
        ffn_w2=jnp.stack(w2).astype(bf16),            # [L, H, E]
        vecs=jnp.stack(vec_rows),                     # [12L, VEC_W] f32
        dense_w=jnp.pad(params["dense_w"], ((0, 0), (0, VP - V))).astype(bf16),
        dense_b=jnp.pad(params["dense_b"], ((0, 0), (0, VP - V))).astype(jnp.float32),
    )


# --------------------------------- forward ------------------------------------

def transformer_decoder_forward(params, target, memory, target_mask,
                                target_padding_mask, nhead, max_length):
    """target: [B,S] int32 tokens; memory: [B,M,E]; target_mask: [S,S] additive;
    target_padding_mask: [B,S] bool (True = padded key)."""
    B, S = target.shape
    V, E = params["embedding"].shape
    L = len(params["layers"])
    H = params["layers"][0]["l1_w"].shape[1]
    M = memory.shape[1]

    BB = _batch_per_step(B)          # batches folded per grid step
    NS = B // BB                     # grid size
    G = nhead * BB                   # folded (head, batch) blocks per step
    N = BB * S                       # activation rows per step

    packed = pack_params(params, nhead)
    VP = packed["dense_w"].shape[1]
    pe = jnp.tile(make_pe(max_length, E)[:S], (BB, 1))            # [N, E]

    tok = target.astype(jnp.int32).reshape(B * S, 1)              # rows (b, i)
    mem_flat = memory.astype(jnp.bfloat16).reshape(B * M, E)      # rows (b, j)

    # -inf -> -1e9 so a fully-masked score row can never NaN; build the folded
    # block-diagonal masks (row/col order: block g = head*BB + batch, then pos).
    NEG = jnp.float32(-1e9)
    causal = jnp.maximum(target_mask.astype(jnp.float32), NEG)            # [S, S]
    pad_add = jnp.where(target_padding_mask, NEG, 0.0).astype(jnp.float32)  # [B, S]

    g_idx = jnp.arange(G)
    b_of_g = g_idx % BB
    same_g = g_idx[:, None] == g_idx[None, :]                             # [G, G]

    pad_steps = pad_add.reshape(NS, BB, S)
    blocks = causal[None, None, :, :] + pad_steps[:, :, None, :]          # [NS,BB,S,S]
    content = blocks[:, b_of_g]                                           # [NS,G,S,S]
    smask = jnp.where(same_g[None, :, None, :, None],
                      content[:, :, :, None, :], NEG)                     # [NS,G,S,G,S]
    smask = smask.reshape(NS * G * S, G * S).astype(jnp.float32)

    cmask = jnp.where(jnp.broadcast_to(same_g[:, None, :, None], (G, S, G, M)),
                      jnp.float32(0.0), NEG).reshape(G * S, G * M)

    kern = functools.partial(_fused_decoder_kernel, nhead=nhead, n_layers=L)

    in_specs = [
        _step_spec((N, 1)),                        # tokens (flattened batch)
        _step_spec((BB * M, E)),                   # memory (flattened batch, bf16)
        _step_spec((G * S, G * S)),                # folded self-attn mask
        _full_spec((G * S, G * M)),                # folded cross-attn mask
        _full_spec((V, E)),                        # embedding table (bf16)
        _full_spec((N, E)),                        # positional encoding (pre-tiled)
        _full_spec((2 * L, E, 3 * E)),             # fused QKV weights
        _full_spec((2 * L, E, E)),                 # out-proj weights
        _full_spec((L, E, H)),                     # FFN W1
        _full_spec((L, H, E)),                     # FFN W2
        _full_spec(packed["vecs"].shape),          # packed biases / LN params
        _full_spec((E, VP)),                       # final dense W (lane-padded)
        _full_spec((1, VP)),                       # final dense b (lane-padded)
    ]
    out = pl.pallas_call(
        kern,
        out_shape=jax.ShapeDtypeStruct((B * S, VP), jnp.float32),
        grid=(NS,),
        in_specs=in_specs,
        out_specs=_step_spec((N, VP)),
        compiler_params=pltpu.CompilerParams(dimension_semantics=("parallel",)),
    )(tok, mem_flat, smask, cmask, packed["emb"], pe,
      packed["qkv_w"], packed["wo"], packed["ffn_w1"], packed["ffn_w2"],
      packed["vecs"], packed["dense_w"], packed["dense_b"])

    return out.reshape(B, S, VP)[..., :V]


# ---------------------------- pure-JAX reference ------------------------------

def reference_forward(params, target, memory, target_mask, target_padding_mask,
                      nhead, max_length):
    B, S = target.shape
    E = params["embedding"].shape[1]
    head_dim = E // nhead
    x = params["embedding"][target] + make_pe(max_length, E)[None, :S]
    pad_add = jnp.where(target_padding_mask, -jnp.inf, 0.0).astype(jnp.float32)
    combined = target_mask[None] + pad_add[:, None, :]

    def layer_norm(v, g, b):
        mu = jnp.mean(v, axis=-1, keepdims=True)
        var = jnp.mean(jnp.square(v - mu), axis=-1, keepdims=True)
        return (v - mu) * jax.lax.rsqrt(var + 1e-5) * g + b

    def mha(q_in, kv_in, wqkv, bqkv, wo, bo, mask):
        q = q_in @ wqkv[:, :E] + bqkv[:, :E]
        k = kv_in @ wqkv[:, E:2 * E] + bqkv[:, E:2 * E]
        v = kv_in @ wqkv[:, 2 * E:] + bqkv[:, 2 * E:]
        split = lambda t: t.reshape(t.shape[0], t.shape[1], nhead, head_dim).transpose(0, 2, 1, 3)
        qh, kh, vh = split(q), split(k), split(v)
        s = jnp.einsum('bhqd,bhkd->bhqk', qh, kh) / math.sqrt(head_dim)
        if mask is not None:
            s = s + mask[:, None, :, :]
        p = jax.nn.softmax(s, axis=-1)
        o = jnp.einsum('bhqk,bhkd->bhqd', p, vh).transpose(0, 2, 1, 3)
        o = o.reshape(q_in.shape[0], q_in.shape[1], E)
        return o @ wo + bo

    for p in params["layers"]:
        sa = mha(x, x, p["sa_wqkv"], p["sa_bqkv"], p["sa_wo"], p["sa_bo"], combined)
        x = layer_norm(x + sa, p["n1_g"], p["n1_b"])
        ca = mha(x, memory, p["ca_wqkv"], p["ca_bqkv"], p["ca_wo"], p["ca_bo"], None)
        x = layer_norm(x + ca, p["n2_g"], p["n2_b"])
        h = jax.nn.relu(x @ p["l1_w"] + p["l1_b"])
        ff = h @ p["l2_w"] + p["l2_b"]
        x = layer_norm(x + ff, p["n3_g"], p["n3_b"])
    return x @ params["dense_w"] + params["dense_b"]


# ----------------------------------- main -------------------------------------

if __name__ == "__main__":
    vocab_dim, embedding_dim, hidden_size = 64, 32, 64
    nhead, n_layers, max_length = 4, 2, 8
    B, S, M = 2, max_length, 8

    key = jax.random.PRNGKey(0)
    kp, kt, km = jax.random.split(key, 3)
    params = init_params(kp, vocab_dim, embedding_dim, hidden_size, n_layers)

    target = jax.random.randint(kt, (B, S), 0, vocab_dim, dtype=jnp.int32)
    memory = 0.5 * jax.random.normal(km, (B, M, embedding_dim), jnp.float32)
    # causal additive mask (0 allowed, -inf disallowed), as generate_square_subsequent_mask
    target_mask = jnp.where(jnp.arange(S)[None, :] <= jnp.arange(S)[:, None],
                            0.0, -jnp.inf).astype(jnp.float32)
    # batch 0: no padding; batch 1: last 2 positions padded
    target_padding_mask = jnp.arange(S)[None, :] >= jnp.array([S, S - 2])[:, None]

    logits = transformer_decoder_forward(params, target, memory, target_mask,
                                         target_padding_mask, nhead, max_length)
    logits = jax.block_until_ready(logits)

    ref = reference_forward(params, target, memory, target_mask,
                            target_padding_mask, nhead, max_length)

    assert logits.shape == (B, S, vocab_dim)
    assert bool(jnp.all(jnp.isfinite(logits)))
    # kernel runs single-pass bf16 MXU; tolerance sized for bf16 vs f32 reference
    assert bool(jnp.allclose(logits, ref, atol=3e-2, rtol=3e-2))
    print("KERNEL_OK")
</pallas_src>

<mosaic_0001>
module attributes {stable_mosaic.version = 11 : i64} {
  func.func @_fused_decoder_kernel(%arg0: i32, %arg1: memref<16x1xi32, #tpu.memory_space<vmem>>, %arg2: memref<16x32xbf16, #tpu.memory_space<vmem>>, %arg3: memref<64x64xf32, #tpu.memory_space<vmem>>, %arg4: memref<64x64xf32, #tpu.memory_space<vmem>>, %arg5: memref<64x32xbf16, #tpu.memory_space<vmem>>, %arg6: memref<16x32xf32, #tpu.memory_space<vmem>>, %arg7: memref<4x32x96xbf16, #tpu.memory_space<vmem>>, %arg8: memref<4x32x32xbf16, #tpu.memory_space<vmem>>, %arg9: memref<2x32x64xbf16, #tpu.memory_space<vmem>>, %arg10: memref<2x64x32xbf16, #tpu.memory_space<vmem>>, %arg11: memref<24x96xf32, #tpu.memory_space<vmem>>, %arg12: memref<32x128xbf16, #tpu.memory_space<vmem>>, %arg13: memref<1x128xf32, #tpu.memory_space<vmem>>, %arg14: memref<16x128xf32, #tpu.memory_space<vmem>>) attributes {dimension_semantics = [#tpu.dimension_semantics<parallel>], iteration_bounds = array<i64: 1>, scalar_prefetch = 0 : i64, scratch_operands = 0 : i64, tpu.core_type = #tpu.core_type<tc>, window_params = [{transform_indices = @transform_0, window_bounds = array<i64: 16, 1>}, {transform_indices = @transform_1, window_bounds = array<i64: 16, 32>}, {transform_indices = @transform_2, window_bounds = array<i64: 64, 64>}, {pipeline_mode = #tpu.pipeline_mode<synchronous>, transform_indices = @transform_3, window_bounds = array<i64: 64, 64>}, {pipeline_mode = #tpu.pipeline_mode<synchronous>, transform_indices = @transform_4, window_bounds = array<i64: 64, 32>}, {pipeline_mode = #tpu.pipeline_mode<synchronous>, transform_indices = @transform_5, window_bounds = array<i64: 16, 32>}, {pipeline_mode = #tpu.pipeline_mode<synchronous>, transform_indices = @transform_6, window_bounds = array<i64: 4, 32, 96>}, {pipeline_mode = #tpu.pipeline_mode<synchronous>, transform_indices = @transform_7, window_bounds = array<i64: 4, 32, 32>}, {pipeline_mode = #tpu.pipeline_mode<synchronous>, transform_indices = @transform_8, window_bounds = array<i64: 2, 32, 64>}, {pipeline_mode = #tpu.pipeline_mode<synchronous>, transform_indices = @transform_9, window_bounds = array<i64: 2, 64, 32>}, {pipeline_mode = #tpu.pipeline_mode<synchronous>, transform_indices = @transform_10, window_bounds = array<i64: 24, 96>}, {pipeline_mode = #tpu.pipeline_mode<synchronous>, transform_indices = @transform_11, window_bounds = array<i64: 32, 128>}, {pipeline_mode = #tpu.pipeline_mode<synchronous>, transform_indices = @transform_12, window_bounds = array<i64: 1, 128>}, {transform_indices = @transform_13, window_bounds = array<i64: 16, 128>}]} {
    %c0 = arith.constant 0 : index
    %c0_0 = arith.constant 0 : index
    %0 = vector.load %arg1[%c0, %c0_0] : memref<16x1xi32, #tpu.memory_space<vmem>>, vector<16x1xi32>
    %1 = tpu.iota {dimensions = array<i32: 1>} : vector<16x64xi32>
    %2 = vector.broadcast %0 : vector<16x1xi32> to vector<16x64xi32>
    %3 = arith.cmpi eq, %1, %2 : vector<16x64xi32>
    %cst = arith.constant 1.000000e+00 : f32
    %cst_1 = arith.constant 0.000000e+00 : f32
    %4 = vector.broadcast %cst : f32 to vector<16x64xf32>
    %5 = vector.broadcast %cst_1 : f32 to vector<16x64xf32>
    %6 = arith.select %3, %4, %5 : vector<16x64xi1>, vector<16x64xf32>
    %7 = arith.truncf %6 : vector<16x64xf32> to vector<16x64xbf16>
    %c0_2 = arith.constant 0 : index
    %c0_3 = arith.constant 0 : index
    %8 = vector.load %arg5[%c0_2, %c0_3] : memref<64x32xbf16, #tpu.memory_space<vmem>>, vector<64x32xbf16>
    %cst_4 = arith.constant dense<0.000000e+00> : vector<16x32xf32>
    %9 = tpu.matmul %7, %8, %cst_4 {dimension_numbers = #tpu.dot_dimension_numbers<[1], [0], [0], [1], [0, 0, 1, 1], [], []>} : vector<16x64xbf16>, vector<64x32xbf16>, vector<16x32xf32> -> vector<16x32xf32>
    %c0_5 = arith.constant 0 : index
    %c0_6 = arith.constant 0 : index
    %10 = vector.load %arg6[%c0_5, %c0_6] : memref<16x32xf32, #tpu.memory_space<vmem>>, vector<16x32xf32>
    %11 = arith.addf %9, %10 : vector<16x32xf32>
    %c0_7 = arith.constant 0 : index
    %c0_8 = arith.constant 0 : index
    %12 = vector.load %arg2[%c0_7, %c0_8] : memref<16x32xbf16, #tpu.memory_space<vmem>>, vector<16x32xbf16>
    %c0_9 = arith.constant 0 : index
    %c0_10 = arith.constant 0 : index
    %13 = vector.load %arg3[%c0_9, %c0_10] : memref<64x64xf32, #tpu.memory_space<vmem>>, vector<64x64xf32>
    %c0_11 = arith.constant 0 : index
    %c0_12 = arith.constant 0 : index
    %14 = vector.load %arg4[%c0_11, %c0_12] : memref<64x64xf32, #tpu.memory_space<vmem>>, vector<64x64xf32>
    %c0_13 = arith.constant 0 : index
    %c0_14 = arith.constant 0 : index
    %15 = vector.load %arg11[%c0_13, %c0_14] : memref<24x96xf32, #tpu.memory_space<vmem>>, vector<24x96xf32>
    %16 = vector.extract_strided_slice %15 {offsets = [0, 0], sizes = [1, 96], strides = [1, 1]} : vector<24x96xf32> to vector<1x96xf32>
    %17 = vector.extract_strided_slice %15 {offsets = [1, 0], sizes = [1, 96], strides = [1, 1]} : vector<24x96xf32> to vector<1x96xf32>
    %18 = vector.extract_strided_slice %15 {offsets = [2, 0], sizes = [1, 32], strides = [1, 1]} : vector<24x96xf32> to vector<1x32xf32>
    %19 = vector.extract_strided_slice %15 {offsets = [3, 0], sizes = [1, 32], strides = [1, 1]} : vector<24x96xf32> to vector<1x32xf32>
    %20 = vector.extract_strided_slice %15 {offsets = [4, 0], sizes = [1, 32], strides = [1, 1]} : vector<24x96xf32> to vector<1x32xf32>
    %21 = vector.extract_strided_slice %15 {offsets = [5, 0], sizes = [1, 32], strides = [1, 1]} : vector<24x96xf32> to vector<1x32xf32>
    %22 = vector.extract_strided_slice %15 {offsets = [6, 0], sizes = [1, 32], strides = [1, 1]} : vector<24x96xf32> to vector<1x32xf32>
    %23 = vector.extract_strided_slice %15 {offsets = [7, 0], sizes = [1, 32], strides = [1, 1]} : vector<24x96xf32> to vector<1x32xf32>
    %24 = vector.extract_strided_slice %15 {offsets = [8, 0], sizes = [1, 32], strides = [1, 1]} : vector<24x96xf32> to vector<1x32xf32>
    %25 = vector.extract_strided_slice %15 {offsets = [9, 0], sizes = [1, 32], strides = [1, 1]} : vector<24x96xf32> to vector<1x32xf32>
    %26 = vector.extract_strided_slice %15 {offsets = [10, 0], sizes = [1, 64], strides = [1, 1]} : vector<24x96xf32> to vector<1x64xf32>
    %27 = vector.extract_strided_slice %15 {offsets = [11, 0], sizes = [1, 32], strides = [1, 1]} : vector<24x96xf32> to vector<1x32xf32>
    %28 = arith.truncf %11 : vector<16x32xf32> to vector<16x32xbf16>
    %c0_15 = arith.constant 0 : index
    %c0_16 = arith.constant 0 : index
    %c0_17 = arith.constant 0 : index
    %29 = vector.load %arg7[%c0_15, %c0_16, %c0_17] : memref<4x32x96xbf16, #tpu.memory_space<vmem>>, vector<1x32x96xbf16>
    %30 = vector.shape_cast %29 : vector<1x32x96xbf16> to vector<32x96xbf16>
    %cst_18 = arith.constant dense<0.000000e+00> : vector<16x96xf32>
    %31 = tpu.matmul %28, %30, %cst_18 {dimension_numbers = #tpu.dot_dimension_numbers<[1], [0], [0], [1], [0, 0, 1, 1], [], []>} : vector<16x32xbf16>, vector<32x96xbf16>, vector<16x96xf32> -> vector<16x96xf32>
    %32 = vector.broadcast %16 : vector<1x96xf32> to vector<16x96xf32>
    %33 = arith.addf %31, %32 : vector<16x96xf32>
    %34 = vector.extract_strided_slice %33 {offsets = [0, 0], sizes = [16, 32], strides = [1, 1]} : vector<16x96xf32> to vector<16x32xf32>
    %35 = vector.extract_strided_slice %33 {offsets = [0, 32], sizes = [16, 32], strides = [1, 1]} : vector<16x96xf32> to vector<16x32xf32>
    %36 = vector.extract_strided_slice %33 {offsets = [0, 64], sizes = [16, 32], strides = [1, 1]} : vector<16x96xf32> to vector<16x32xf32>
    %c0_19 = arith.constant 0 : index
    %c0_20 = arith.constant 0 : index
    %c0_21 = arith.constant 0 : index
    %37 = vector.load %arg8[%c0_19, %c0_20, %c0_21] : memref<4x32x32xbf16, #tpu.memory_space<vmem>>, vector<1x32x32xbf16>
    %38 = vector.shape_cast %37 : vector<1x32x32xbf16> to vector<32x32xbf16>
    %39 = vector.extract_strided_slice %34 {offsets = [0, 0], sizes = [16, 8], strides = [1, 1]} : vector<16x32xf32> to vector<16x8xf32>
    %40 = vector.extract_strided_slice %34 {offsets = [0, 8], sizes = [16, 8], strides = [1, 1]} : vector<16x32xf32> to vector<16x8xf32>
    %41 = vector.extract_strided_slice %34 {offsets = [0, 16], sizes = [16, 8], strides = [1, 1]} : vector<16x32xf32> to vector<16x8xf32>
    %42 = vector.extract_strided_slice %34 {offsets = [0, 24], sizes = [16, 8], strides = [1, 1]} : vector<16x32xf32> to vector<16x8xf32>
    %43 = tpu.concatenate %39, %40, %41, %42 in 0 : vector<16x8xf32>, vector<16x8xf32>, vector<16x8xf32>, vector<16x8xf32> -> vector<64x8xf32>
    %44 = arith.truncf %43 : vector<64x8xf32> to vector<64x8xbf16>
    %45 = vector.extract_strided_slice %35 {offsets = [0, 0], sizes = [16, 8], strides = [1, 1]} : vector<16x32xf32> to vector<16x8xf32>
    %46 = vector.extract_strided_slice %35 {offsets = [0, 8], sizes = [16, 8], strides = [1, 1]} : vector<16x32xf32> to vector<16x8xf32>
    %47 = vector.extract_strided_slice %35 {offsets = [0, 16], sizes = [16, 8], strides = [1, 1]} : vector<16x32xf32> to vector<16x8xf32>
    %48 = vector.extract_strided_slice %35 {offsets = [0, 24], sizes = [16, 8], strides = [1, 1]} : vector<16x32xf32> to vector<16x8xf32>
    %49 = tpu.concatenate %45, %46, %47, %48 in 0 : vector<16x8xf32>, vector<16x8xf32>, vector<16x8xf32>, vector<16x8xf32> -> vector<64x8xf32>
    %50 = arith.truncf %49 : vector<64x8xf32> to vector<64x8xbf16>
    %51 = vector.extract_strided_slice %36 {offsets = [0, 0], sizes = [16, 8], strides = [1, 1]} : vector<16x32xf32> to vector<16x8xf32>
    %52 = vector.extract_strided_slice %36 {offsets = [0, 8], sizes = [16, 8], strides = [1, 1]} : vector<16x32xf32> to vector<16x8xf32>
    %53 = vector.extract_strided_slice %36 {offsets = [0, 16], sizes = [16, 8], strides = [1, 1]} : vector<16x32xf32> to vector<16x8xf32>
    %54 = vector.extract_strided_slice %36 {offsets = [0, 24], sizes = [16, 8], strides = [1, 1]} : vector<16x32xf32> to vector<16x8xf32>
    %55 = tpu.concatenate %51, %52, %53, %54 in 0 : vector<16x8xf32>, vector<16x8xf32>, vector<16x8xf32>, vector<16x8xf32> -> vector<64x8xf32>
    %56 = arith.truncf %55 : vector<64x8xf32> to vector<64x8xbf16>
    %cst_22 = arith.constant dense<0.000000e+00> : vector<64x64xf32>
    %57 = tpu.matmul %44, %50, %cst_22 {dimension_numbers = #tpu.dot_dimension_numbers<[1], [1], [0], [0], [0, 0, 1, 0], [], []>} : vector<64x8xbf16>, vector<64x8xbf16>, vector<64x64xf32> -> vector<64x64xf32>
    %58 = arith.addf %57, %13 : vector<64x64xf32>
    %cst_23 = arith.constant dense<0xFF800000> : vector<64xf32>
    %59 = vector.multi_reduction <maximumf>, %58, %cst_23 [1] : vector<64x64xf32> to vector<64xf32>
    %60 = vector.shape_cast %59 : vector<64xf32> to vector<64x1xf32>
    %61 = vector.broadcast %60 : vector<64x1xf32> to vector<64x64xf32>
    %62 = arith.subf %58, %61 : vector<64x64xf32>
    %63 = math.exp %62 : vector<64x64xf32>
    %cst_24 = arith.constant dense<0.000000e+00> : vector<64xf32>
    %64 = vector.multi_reduction <add>, %63, %cst_24 [1] : vector<64x64xf32> to vector<64xf32>
    %65 = vector.shape_cast %64 : vector<64xf32> to vector<64x1xf32>
    %66 = tpu.reciprocal %65 {approx = true} : vector<64x1xf32> -> vector<64x1xf32>
    %67 = vector.broadcast %66 : vector<64x1xf32> to vector<64x64xf32>
    %68 = arith.mulf %63, %67 : vector<64x64xf32>
    %69 = arith.truncf %68 : vector<64x64xf32> to vector<64x64xbf16>
    %cst_25 = arith.constant dense<0.000000e+00> : vector<64x8xf32>
    %70 = tpu.matmul %69, %56, %cst_25 {dimension_numbers = #tpu.dot_dimension_numbers<[1], [0], [0], [1], [0, 0, 1, 1], [], []>} : vector<64x64xbf16>, vector<64x8xbf16>, vector<64x8xf32> -> vector<64x8xf32>
    %71 = vector.extract_strided_slice %70 {offsets = [0, 0], sizes = [16, 8], strides = [1, 1]} : vector<64x8xf32> to vector<16x8xf32>
    %72 = vector.extract_strided_slice %70 {offsets = [16, 0], sizes = [16, 8], strides = [1, 1]} : vector<64x8xf32> to vector<16x8xf32>
    %73 = vector.extract_strided_slice %70 {offsets = [32, 0], sizes = [16, 8], strides = [1, 1]} : vector<64x8xf32> to vector<16x8xf32>
    %74 = vector.extract_strided_slice %70 {offsets = [48, 0], sizes = [16, 8], strides = [1, 1]} : vector<64x8xf32> to vector<16x8xf32>
    %75 = tpu.concatenate %71, %72, %73, %74 in 1 : vector<16x8xf32>, vector<16x8xf32>, vector<16x8xf32>, vector<16x8xf32> -> vector<16x32xf32>
    %76 = arith.truncf %75 : vector<16x32xf32> to vector<16x32xbf16>
    %cst_26 = arith.constant dense<0.000000e+00> : vector<16x32xf32>
    %77 = tpu.matmul %76, %38, %cst_26 {dimension_numbers = #tpu.dot_dimension_numbers<[1], [0], [0], [1], [0, 0, 1, 1], [], []>} : vector<16x32xbf16>, vector<32x32xbf16>, vector<16x32xf32> -> vector<16x32xf32>
    %78 = vector.broadcast %18 : vector<1x32xf32> to vector<16x32xf32>
    %79 = arith.addf %77, %78 : vector<16x32xf32>
    %80 = arith.addf %11, %79 : vector<16x32xf32>
    %cst_27 = arith.constant dense<0.000000e+00> : vector<16xf32>
    %81 = vector.multi_reduction <add>, %80, %cst_27 [1] : vector<16x32xf32> to vector<16xf32>
    %82 = vector.shape_cast %81 : vector<16xf32> to vector<16x1xf32>
    %cst_28 = arith.constant 3.200000e+01 : f32
    %83 = vector.broadcast %cst_28 : f32 to vector<16x1xf32>
    %84 = arith.divf %82, %83 : vector<16x1xf32>
    %85 = vector.broadcast %84 : vector<16x1xf32> to vector<16x32xf32>
    %86 = arith.subf %80, %85 : vector<16x32xf32>
    %87 = arith.mulf %86, %86 : vector<16x32xf32>
    %cst_29 = arith.constant dense<0.000000e+00> : vector<16xf32>
    %88 = vector.multi_reduction <add>, %87, %cst_29 [1] : vector<16x32xf32> to vector<16xf32>
    %89 = vector.shape_cast %88 : vector<16xf32> to vector<16x1xf32>
    %cst_30 = arith.constant 3.200000e+01 : f32
    %90 = vector.broadcast %cst_30 : f32 to vector<16x1xf32>
    %91 = arith.divf %89, %90 : vector<16x1xf32>
    %92 = vector.broadcast %84 : vector<16x1xf32> to vector<16x32xf32>
    %93 = arith.subf %80, %92 : vector<16x32xf32>
    %cst_31 = arith.constant 9.99999974E-6 : f32
    %94 = vector.broadcast %cst_31 : f32 to vector<16x1xf32>
    %95 = arith.addf %91, %94 : vector<16x1xf32>
    %96 = math.rsqrt %95 : vector<16x1xf32>
    %97 = vector.broadcast %96 : vector<16x1xf32> to vector<16x32xf32>
    %98 = arith.mulf %93, %97 : vector<16x32xf32>
    %99 = vector.broadcast %20 : vector<1x32xf32> to vector<16x32xf32>
    %100 = arith.mulf %98, %99 : vector<16x32xf32>
    %101 = vector.broadcast %21 : vector<1x32xf32> to vector<16x32xf32>
    %102 = arith.addf %100, %101 : vector<16x32xf32>
    %103 = arith.truncf %102 : vector<16x32xf32> to vector<16x32xbf16>
    %c1 = arith.constant 1 : index
    %c0_32 = arith.constant 0 : index
    %c0_33 = arith.constant 0 : index
    %104 = vector.load %arg7[%c1, %c0_32, %c0_33] : memref<4x32x96xbf16, #tpu.memory_space<vmem>>, vector<1x32x96xbf16>
    %105 = vector.shape_cast %104 : vector<1x32x96xbf16> to vector<32x96xbf16>
    %106 = vector.extract_strided_slice %105 {offsets = [0, 0], sizes = [32, 32], strides = [1, 1]} : vector<32x96xbf16> to vector<32x32xbf16>
    %cst_34 = arith.constant dense<0.000000e+00> : vector<16x32xf32>
    %107 = tpu.matmul %103, %106, %cst_34 {dimension_numbers = #tpu.dot_dimension_numbers<[1], [0], [0], [1], [0, 0, 1, 1], [], []>} : vector<16x32xbf16>, vector<32x32xbf16>, vector<16x32xf32> -> vector<16x32xf32>
    %108 = vector.extract_strided_slice %17 {offsets = [0, 0], sizes = [1, 32], strides = [1, 1]} : vector<1x96xf32> to vector<1x32xf32>
    %109 = vector.broadcast %108 : vector<1x32xf32> to vector<16x32xf32>
    %110 = arith.addf %107, %109 : vector<16x32xf32>
    %111 = vector.extract_strided_slice %105 {offsets = [0, 32], sizes = [32, 64], strides = [1, 1]} : vector<32x96xbf16> to vector<32x64xbf16>
    %cst_35 = arith.constant dense<0.000000e+00> : vector<16x64xf32>
    %112 = tpu.matmul %12, %111, %cst_35 {dimension_numbers = #tpu.dot_dimension_numbers<[1], [0], [0], [1], [0, 0, 1, 1], [], []>} : vector<16x32xbf16>, vector<32x64xbf16>, vector<16x64xf32> -> vector<16x64xf32>
    %113 = vector.extract_strided_slice %17 {offsets = [0, 32], sizes = [1, 64], strides = [1, 1]} : vector<1x96xf32> to vector<1x64xf32>
    %114 = vector.broadcast %113 : vector<1x64xf32> to vector<16x64xf32>
    %115 = arith.addf %112, %114 : vector<16x64xf32>
    %116 = vector.extract_strided_slice %115 {offsets = [0, 0], sizes = [16, 32], strides = [1, 1]} : vector<16x64xf32> to vector<16x32xf32>
    %117 = vector.extract_strided_slice %115 {offsets = [0, 32], sizes = [16, 32], strides = [1, 1]} : vector<16x64xf32> to vector<16x32xf32>
    %c1_36 = arith.constant 1 : index
    %c0_37 = arith.constant 0 : index
    %c0_38 = arith.constant 0 : index
    %118 = vector.load %arg8[%c1_36, %c0_37, %c0_38] : memref<4x32x32xbf16, #tpu.memory_space<vmem>>, vector<1x32x32xbf16>
    %119 = vector.shape_cast %118 : vector<1x32x32xbf16> to vector<32x32xbf16>
    %120 = vector.extract_strided_slice %110 {offsets = [0, 0], sizes = [16, 8], strides = [1, 1]} : vector<16x32xf32> to vector<16x8xf32>
    %121 = vector.extract_strided_slice %110 {offsets = [0, 8], sizes = [16, 8], strides = [1, 1]} : vector<16x32xf32> to vector<16x8xf32>
    %122 = vector.extract_strided_slice %110 {offsets = [0, 16], sizes = [16, 8], strides = [1, 1]} : vector<16x32xf32> to vector<16x8xf32>
    %123 = vector.extract_strided_slice %110 {offsets = [0, 24], sizes = [16, 8], strides = [1, 1]} : vector<16x32xf32> to vector<16x8xf32>
    %124 = tpu.concatenate %120, %121, %122, %123 in 0 : vector<16x8xf32>, vector<16x8xf32>, vector<16x8xf32>, vector<16x8xf32> -> vector<64x8xf32>
    %125 = arith.truncf %124 : vector<64x8xf32> to vector<64x8xbf16>
    %126 = vector.extract_strided_slice %116 {offsets = [0, 0], sizes = [16, 8], strides = [1, 1]} : vector<16x32xf32> to vector<16x8xf32>
    %127 = vector.extract_strided_slice %116 {offsets = [0, 8], sizes = [16, 8], strides = [1, 1]} : vector<16x32xf32> to vector<16x8xf32>
    %128 = vector.extract_strided_slice %116 {offsets = [0, 16], sizes = [16, 8], strides = [1, 1]} : vector<16x32xf32> to vector<16x8xf32>
    %129 = vector.extract_strided_slice %116 {offsets = [0, 24], sizes = [16, 8], strides = [1, 1]} : vector<16x32xf32> to vector<16x8xf32>
    %130 = tpu.concatenate %126, %127, %128, %129 in 0 : vector<16x8xf32>, vector<16x8xf32>, vector<16x8xf32>, vector<16x8xf32> -> vector<64x8xf32>
    %131 = arith.truncf %130 : vector<64x8xf32> to vector<64x8xbf16>
    %132 = vector.extract_strided_slice %117 {offsets = [0, 0], sizes = [16, 8], strides = [1, 1]} : vector<16x32xf32> to vector<16x8xf32>
    %133 = vector.extract_strided_slice %117 {offsets = [0, 8], sizes = [16, 8], strides = [1, 1]} : vector<16x32xf32> to vector<16x8xf32>
    %134 = vector.extract_strided_slice %117 {offsets = [0, 16], sizes = [16, 8], strides = [1, 1]} : vector<16x32xf32> to vector<16x8xf32>
    %135 = vector.extract_strided_slice %117 {offsets = [0, 24], sizes = [16, 8], strides = [1, 1]} : vector<16x32xf32> to vector<16x8xf32>
    %136 = tpu.concatenate %132, %133, %134, %135 in 0 : vector<16x8xf32>, vector<16x8xf32>, vector<16x8xf32>, vector<16x8xf32> -> vector<64x8xf32>
    %137 = arith.truncf %136 : vector<64x8xf32> to vector<64x8xbf16>
    %cst_39 = arith.constant dense<0.000000e+00> : vector<64x64xf32>
    %138 = tpu.matmul %125, %131, %cst_39 {dimension_numbers = #tpu.dot_dimension_numbers<[1], [1], [0], [0], [0, 0, 1, 0], [], []>} : vector<64x8xbf16>, vector<64x8xbf16>, vector<64x64xf32> -> vector<64x64xf32>
    %139 = arith.addf %138, %14 : vector<64x64xf32>
    %cst_40 = arith.constant dense<0xFF800000> : vector<64xf32>
    %140 = vector.multi_reduction <maximumf>, %139, %cst_40 [1] : vector<64x64xf32> to vector<64xf32>
    %141 = vector.shape_cast %140 : vector<64xf32> to vector<64x1xf32>
    %142 = vector.broadcast %141 : vector<64x1xf32> to vector<64x64xf32>
    %143 = arith.subf %139, %142 : vector<64x64xf32>
    %144 = math.exp %143 : vector<64x64xf32>
    %cst_41 = arith.constant dense<0.000000e+00> : vector<64xf32>
    %145 = vector.multi_reduction <add>, %144, %cst_41 [1] : vector<64x64xf32> to vector<64xf32>
    %146 = vector.shape_cast %145 : vector<64xf32> to vector<64x1xf32>
    %147 = tpu.reciprocal %146 {approx = true} : vector<64x1xf32> -> vector<64x1xf32>
    %148 = vector.broadcast %147 : vector<64x1xf32> to vector<64x64xf32>
    %149 = arith.mulf %144, %148 : vector<64x64xf32>
    %150 = arith.truncf %149 : vector<64x64xf32> to vector<64x64xbf16>
    %cst_42 = arith.constant dense<0.000000e+00> : vector<64x8xf32>
    %151 = tpu.matmul %150, %137, %cst_42 {dimension_numbers = #tpu.dot_dimension_numbers<[1], [0], [0], [1], [0, 0, 1, 1], [], []>} : vector<64x64xbf16>, vector<64x8xbf16>, vector<64x8xf32> -> vector<64x8xf32>
    %152 = vector.extract_strided_slice %151 {offsets = [0, 0], sizes = [16, 8], strides = [1, 1]} : vector<64x8xf32> to vector<16x8xf32>
    %153 = vector.extract_strided_slice %151 {offsets = [16, 0], sizes = [16, 8], strides = [1, 1]} : vector<64x8xf32> to vector<16x8xf32>
    %154 = vector.extract_strided_slice %151 {offsets = [32, 0], sizes = [16, 8], strides = [1, 1]} : vector<64x8xf32> to vector<16x8xf32>
    %155 = vector.extract_strided_slice %151 {offsets = [48, 0], sizes = [16, 8], strides = [1, 1]} : vector<64x8xf32> to vector<16x8xf32>
    %156 = tpu.concatenate %152, %153, %154, %155 in 1 : vector<16x8xf32>, vector<16x8xf32>, vector<16x8xf32>, vector<16x8xf32> -> vector<16x32xf32>
    %157 = arith.truncf %156 : vector<16x32xf32> to vector<16x32xbf16>
    %cst_43 = arith.constant dense<0.000000e+00> : vector<16x32xf32>
    %158 = tpu.matmul %157, %119, %cst_43 {dimension_numbers = #tpu.dot_dimension_numbers<[1], [0], [0], [1], [0, 0, 1, 1], [], []>} : vector<16x32xbf16>, vector<32x32xbf16>, vector<16x32xf32> -> vector<16x32xf32>
    %159 = vector.broadcast %19 : vector<1x32xf32> to vector<16x32xf32>
    %160 = arith.addf %158, %159 : vector<16x32xf32>
    %161 = arith.addf %102, %160 : vector<16x32xf32>
    %cst_44 = arith.constant dense<0.000000e+00> : vector<16xf32>
    %162 = vector.multi_reduction <add>, %161, %cst_44 [1] : vector<16x32xf32> to vector<16xf32>
    %163 = vector.shape_cast %162 : vector<16xf32> to vector<16x1xf32>
    %cst_45 = arith.constant 3.200000e+01 : f32
    %164 = vector.broadcast %cst_45 : f32 to vector<16x1xf32>
    %165 = arith.divf %163, %164 : vector<16x1xf32>
    %166 = vector.broadcast %165 : vector<16x1xf32> to vector<16x32xf32>
    %167 = arith.subf %161, %166 : vector<16x32xf32>
    %168 = arith.mulf %167, %167 : vector<16x32xf32>
    %cst_46 = arith.constant dense<0.000000e+00> : vector<16xf32>
    %169 = vector.multi_reduction <add>, %168, %cst_46 [1] : vector<16x32xf32> to vector<16xf32>
    %170 = vector.shape_cast %169 : vector<16xf32> to vector<16x1xf32>
    %cst_47 = arith.constant 3.200000e+01 : f32
    %171 = vector.broadcast %cst_47 : f32 to vector<16x1xf32>
    %172 = arith.divf %170, %171 : vector<16x1xf32>
    %173 = vector.broadcast %165 : vector<16x1xf32> to vector<16x32xf32>
    %174 = arith.subf %161, %173 : vector<16x32xf32>
    %cst_48 = arith.constant 9.99999974E-6 : f32
    %175 = vector.broadcast %cst_48 : f32 to vector<16x1xf32>
    %176 = arith.addf %172, %175 : vector<16x1xf32>
    %177 = math.rsqrt %176 : vector<16x1xf32>
    %178 = vector.broadcast %177 : vector<16x1xf32> to vector<16x32xf32>
    %179 = arith.mulf %174, %178 : vector<16x32xf32>
    %180 = vector.broadcast %22 : vector<1x32xf32> to vector<16x32xf32>
    %181 = arith.mulf %179, %180 : vector<16x32xf32>
    %182 = vector.broadcast %23 : vector<1x32xf32> to vector<16x32xf32>
    %183 = arith.addf %181, %182 : vector<16x32xf32>
    %184 = arith.truncf %183 : vector<16x32xf32> to vector<16x32xbf16>
    %c0_49 = arith.constant 0 : index
    %c0_50 = arith.constant 0 : index
    %c0_51 = arith.constant 0 : index
    %185 = vector.load %arg9[%c0_49, %c0_50, %c0_51] : memref<2x32x64xbf16, #tpu.memory_space<vmem>>, vector<1x32x64xbf16>
    %186 = vector.shape_cast %185 : vector<1x32x64xbf16> to vector<32x64xbf16>
    %cst_52 = arith.constant dense<0.000000e+00> : vector<16x64xf32>
    %187 = tpu.matmul %184, %186, %cst_52 {dimension_numbers = #tpu.dot_dimension_numbers<[1], [0], [0], [1], [0, 0, 1, 1], [], []>} : vector<16x32xbf16>, vector<32x64xbf16>, vector<16x64xf32> -> vector<16x64xf32>
    %188 = vector.broadcast %26 : vector<1x64xf32> to vector<16x64xf32>
    %189 = arith.addf %187, %188 : vector<16x64xf32>
    %cst_53 = arith.constant 0.000000e+00 : f32
    %190 = vector.broadcast %cst_53 : f32 to vector<16x64xf32>
    %191 = arith.maximumf %189, %190 : vector<16x64xf32>
    %192 = arith.truncf %191 : vector<16x64xf32> to vector<16x64xbf16>
    %c0_54 = arith.constant 0 : index
    %c0_55 = arith.constant 0 : index
    %c0_56 = arith.constant 0 : index
    %193 = vector.load %arg10[%c0_54, %c0_55, %c0_56] : memref<2x64x32xbf16, #tpu.memory_space<vmem>>, vector<1x64x32xbf16>
    %194 = vector.shape_cast %193 : vector<1x64x32xbf16> to vector<64x32xbf16>
    %cst_57 = arith.constant dense<0.000000e+00> : vector<16x32xf32>
    %195 = tpu.matmul %192, %194, %cst_57 {dimension_numbers = #tpu.dot_dimension_numbers<[1], [0], [0], [1], [0, 0, 1, 1], [], []>} : vector<16x64xbf16>, vector<64x32xbf16>, vector<16x32xf32> -> vector<16x32xf32>
    %196 = vector.broadcast %27 : vector<1x32xf32> to vector<16x32xf32>
    %197 = arith.addf %195, %196 : vector<16x32xf32>
    %198 = arith.addf %183, %197 : vector<16x32xf32>
    %cst_58 = arith.constant dense<0.000000e+00> : vector<16xf32>
    %199 = vector.multi_reduction <add>, %198, %cst_58 [1] : vector<16x32xf32> to vector<16xf32>
    %200 = vector.shape_cast %199 : vector<16xf32> to vector<16x1xf32>
    %cst_59 = arith.constant 3.200000e+01 : f32
    %201 = vector.broadcast %cst_59 : f32 to vector<16x1xf32>
    %202 = arith.divf %200, %201 : vector<16x1xf32>
    %203 = vector.broadcast %202 : vector<16x1xf32> to vector<16x32xf32>
    %204 = arith.subf %198, %203 : vector<16x32xf32>
    %205 = arith.mulf %204, %204 : vector<16x32xf32>
    %cst_60 = arith.constant dense<0.000000e+00> : vector<16xf32>
    %206 = vector.multi_reduction <add>, %205, %cst_60 [1] : vector<16x32xf32> to vector<16xf32>
    %207 = vector.shape_cast %206 : vector<16xf32> to vector<16x1xf32>
    %cst_61 = arith.constant 3.200000e+01 : f32
    %208 = vector.broadcast %cst_61 : f32 to vector<16x1xf32>
    %209 = arith.divf %207, %208 : vector<16x1xf32>
    %210 = vector.broadcast %202 : vector<16x1xf32> to vector<16x32xf32>
    %211 = arith.subf %198, %210 : vector<16x32xf32>
    %cst_62 = arith.constant 9.99999974E-6 : f32
    %212 = vector.broadcast %cst_62 : f32 to vector<16x1xf32>
    %213 = arith.addf %209, %212 : vector<16x1xf32>
    %214 = math.rsqrt %213 : vector<16x1xf32>
    %215 = vector.broadcast %214 : vector<16x1xf32> to vector<16x32xf32>
    %216 = arith.mulf %211, %215 : vector<16x32xf32>
    %217 = vector.broadcast %24 : vector<1x32xf32> to vector<16x32xf32>
    %218 = arith.mulf %216, %217 : vector<16x32xf32>
    %219 = vector.broadcast %25 : vector<1x32xf32> to vector<16x32xf32>
    %220 = arith.addf %218, %219 : vector<16x32xf32>
    %221 = vector.extract_strided_slice %15 {offsets = [12, 0], sizes = [1, 96], strides = [1, 1]} : vector<24x96xf32> to vector<1x96xf32>
    %222 = vector.extract_strided_slice %15 {offsets = [13, 0], sizes = [1, 96], strides = [1, 1]} : vector<24x96xf32> to vector<1x96xf32>
    %223 = vector.extract_strided_slice %15 {offsets = [14, 0], sizes = [1, 32], strides = [1, 1]} : vector<24x96xf32> to vector<1x32xf32>
    %224 = vector.extract_strided_slice %15 {offsets = [15, 0], sizes = [1, 32], strides = [1, 1]} : vector<24x96xf32> to vector<1x32xf32>
    %225 = vector.extract_strided_slice %15 {offsets = [16, 0], sizes = [1, 32], strides = [1, 1]} : vector<24x96xf32> to vector<1x32xf32>
    %226 = vector.extract_strided_slice %15 {offsets = [17, 0], sizes = [1, 32], strides = [1, 1]} : vector<24x96xf32> to vector<1x32xf32>
    %227 = vector.extract_strided_slice %15 {offsets = [18, 0], sizes = [1, 32], strides = [1, 1]} : vector<24x96xf32> to vector<1x32xf32>
    %228 = vector.extract_strided_slice %15 {offsets = [19, 0], sizes = [1, 32], strides = [1, 1]} : vector<24x96xf32> to vector<1x32xf32>
    %229 = vector.extract_strided_slice %15 {offsets = [20, 0], sizes = [1, 32], strides = [1, 1]} : vector<24x96xf32> to vector<1x32xf32>
    %230 = vector.extract_strided_slice %15 {offsets = [21, 0], sizes = [1, 32], strides = [1, 1]} : vector<24x96xf32> to vector<1x32xf32>
    %231 = vector.extract_strided_slice %15 {offsets = [22, 0], sizes = [1, 64], strides = [1, 1]} : vector<24x96xf32> to vector<1x64xf32>
    %232 = vector.extract_strided_slice %15 {offsets = [23, 0], sizes = [1, 32], strides = [1, 1]} : vector<24x96xf32> to vector<1x32xf32>
    %233 = arith.truncf %220 : vector<16x32xf32> to vector<16x32xbf16>
    %c2 = arith.constant 2 : index
    %c0_63 = arith.constant 0 : index
    %c0_64 = arith.constant 0 : index
    %234 = vector.load %arg7[%c2, %c0_63, %c0_64] : memref<4x32x96xbf16, #tpu.memory_space<vmem>>, vector<1x32x96xbf16>
    %235 = vector.shape_cast %234 : vector<1x32x96xbf16> to vector<32x96xbf16>
    %cst_65 = arith.constant dense<0.000000e+00> : vector<16x96xf32>
    %236 = tpu.matmul %233, %235, %cst_65 {dimension_numbers = #tpu.dot_dimension_numbers<[1], [0], [0], [1], [0, 0, 1, 1], [], []>} : vector<16x32xbf16>, vector<32x96xbf16>, vector<16x96xf32> -> vector<16x96xf32>
    %237 = vector.broadcast %221 : vector<1x96xf32> to vector<16x96xf32>
    %238 = arith.addf %236, %237 : vector<16x96xf32>
    %239 = vector.extract_strided_slice %238 {offsets = [0, 0], sizes = [16, 32], strides = [1, 1]} : vector<16x96xf32> to vector<16x32xf32>
    %240 = vector.extract_strided_slice %238 {offsets = [0, 32], sizes = [16, 32], strides = [1, 1]} : vector<16x96xf32> to vector<16x32xf32>
    %241 = vector.extract_strided_slice %238 {offsets = [0, 64], sizes = [16, 32], strides = [1, 1]} : vector<16x96xf32> to vector<16x32xf32>
    %c2_66 = arith.constant 2 : index
    %c0_67 = arith.constant 0 : index
    %c0_68 = arith.constant 0 : index
    %242 = vector.load %arg8[%c2_66, %c0_67, %c0_68] : memref<4x32x32xbf16, #tpu.memory_space<vmem>>, vector<1x32x32xbf16>
    %243 = vector.shape_cast %242 : vector<1x32x32xbf16> to vector<32x32xbf16>
    %244 = vector.extract_strided_slice %239 {offsets = [0, 0], sizes = [16, 8], strides = [1, 1]} : vector<16x32xf32> to vector<16x8xf32>
    %245 = vector.extract_strided_slice %239 {offsets = [0, 8], sizes = [16, 8], strides = [1, 1]} : vector<16x32xf32> to vector<16x8xf32>
    %246 = vector.extract_strided_slice %239 {offsets = [0, 16], sizes = [16, 8], strides = [1, 1]} : vector<16x32xf32> to vector<16x8xf32>
    %247 = vector.extract_strided_slice %239 {offsets = [0, 24], sizes = [16, 8], strides = [1, 1]} : vector<16x32xf32> to vector<16x8xf32>
    %248 = tpu.concatenate %244, %245, %246, %247 in 0 : vector<16x8xf32>, vector<16x8xf32>, vector<16x8xf32>, vector<16x8xf32> -> vector<64x8xf32>
    %249 = arith.truncf %248 : vector<64x8xf32> to vector<64x8xbf16>
    %250 = vector.extract_strided_slice %240 {offsets = [0, 0], sizes = [16, 8], strides = [1, 1]} : vector<16x32xf32> to vector<16x8xf32>
    %251 = vector.extract_strided_slice %240 {offsets = [0, 8], sizes = [16, 8], strides = [1, 1]} : vector<16x32xf32> to vector<16x8xf32>
    %252 = vector.extract_strided_slice %240 {offsets = [0, 16], sizes = [16, 8], strides = [1, 1]} : vector<16x32xf32> to vector<16x8xf32>
    %253 = vector.extract_strided_slice %240 {offsets = [0, 24], sizes = [16, 8], strides = [1, 1]} : vector<16x32xf32> to vector<16x8xf32>
    %254 = tpu.concatenate %250, %251, %252, %253 in 0 : vector<16x8xf32>, vector<16x8xf32>, vector<16x8xf32>, vector<16x8xf32> -> vector<64x8xf32>
    %255 = arith.truncf %254 : vector<64x8xf32> to vector<64x8xbf16>
    %256 = vector.extract_strided_slice %241 {offsets = [0, 0], sizes = [16, 8], strides = [1, 1]} : vector<16x32xf32> to vector<16x8xf32>
    %257 = vector.extract_strided_slice %241 {offsets = [0, 8], sizes = [16, 8], strides = [1, 1]} : vector<16x32xf32> to vector<16x8xf32>
    %258 = vector.extract_strided_slice %241 {offsets = [0, 16], sizes = [16, 8], strides = [1, 1]} : vector<16x32xf32> to vector<16x8xf32>
    %259 = vector.extract_strided_slice %241 {offsets = [0, 24], sizes = [16, 8], strides = [1, 1]} : vector<16x32xf32> to vector<16x8xf32>
    %260 = tpu.concatenate %256, %257, %258, %259 in 0 : vector<16x8xf32>, vector<16x8xf32>, vector<16x8xf32>, vector<16x8xf32> -> vector<64x8xf32>
    %261 = arith.truncf %260 : vector<64x8xf32> to vector<64x8xbf16>
    %cst_69 = arith.constant dense<0.000000e+00> : vector<64x64xf32>
    %262 = tpu.matmul %249, %255, %cst_69 {dimension_numbers = #tpu.dot_dimension_numbers<[1], [1], [0], [0], [0, 0, 1, 0], [], []>} : vector<64x8xbf16>, vector<64x8xbf16>, vector<64x64xf32> -> vector<64x64xf32>
    %263 = arith.addf %262, %13 : vector<64x64xf32>
    %cst_70 = arith.constant dense<0xFF800000> : vector<64xf32>
    %264 = vector.multi_reduction <maximumf>, %263, %cst_70 [1] : vector<64x64xf32> to vector<64xf32>
    %265 = vector.shape_cast %264 : vector<64xf32> to vector<64x1xf32>
    %266 = vector.broadcast %265 : vector<64x1xf32> to vector<64x64xf32>
    %267 = arith.subf %263, %266 : vector<64x64xf32>
    %268 = math.exp %267 : vector<64x64xf32>
    %cst_71 = arith.constant dense<0.000000e+00> : vector<64xf32>
    %269 = vector.multi_reduction <add>, %268, %cst_71 [1] : vector<64x64xf32> to vector<64xf32>
    %270 = vector.shape_cast %269 : vector<64xf32> to vector<64x1xf32>
    %271 = tpu.reciprocal %270 {approx = true} : vector<64x1xf32> -> vector<64x1xf32>
    %272 = vector.broadcast %271 : vector<64x1xf32> to vector<64x64xf32>
    %273 = arith.mulf %268, %272 : vector<64x64xf32>
    %274 = arith.truncf %273 : vector<64x64xf32> to vector<64x64xbf16>
    %cst_72 = arith.constant dense<0.000000e+00> : vector<64x8xf32>
    %275 = tpu.matmul %274, %261, %cst_72 {dimension_numbers = #tpu.dot_dimension_numbers<[1], [0], [0], [1], [0, 0, 1, 1], [], []>} : vector<64x64xbf16>, vector<64x8xbf16>, vector<64x8xf32> -> vector<64x8xf32>
    %276 = vector.extract_strided_slice %275 {offsets = [0, 0], sizes = [16, 8], strides = [1, 1]} : vector<64x8xf32> to vector<16x8xf32>
    %277 = vector.extract_strided_slice %275 {offsets = [16, 0], sizes = [16, 8], strides = [1, 1]} : vector<64x8xf32> to vector<16x8xf32>
    %278 = vector.extract_strided_slice %275 {offsets = [32, 0], sizes = [16, 8], strides = [1, 1]} : vector<64x8xf32> to vector<16x8xf32>
    %279 = vector.extract_strided_slice %275 {offsets = [48, 0], sizes = [16, 8], strides = [1, 1]} : vector<64x8xf32> to vector<16x8xf32>
    %280 = tpu.concatenate %276, %277, %278, %279 in 1 : vector<16x8xf32>, vector<16x8xf32>, vector<16x8xf32>, vector<16x8xf32> -> vector<16x32xf32>
    %281 = arith.truncf %280 : vector<16x32xf32> to vector<16x32xbf16>
    %cst_73 = arith.constant dense<0.000000e+00> : vector<16x32xf32>
    %282 = tpu.matmul %281, %243, %cst_73 {dimension_numbers = #tpu.dot_dimension_numbers<[1], [0], [0], [1], [0, 0, 1, 1], [], []>} : vector<16x32xbf16>, vector<32x32xbf16>, vector<16x32xf32> -> vector<16x32xf32>
    %283 = vector.broadcast %223 : vector<1x32xf32> to vector<16x32xf32>
    %284 = arith.addf %282, %283 : vector<16x32xf32>
    %285 = arith.addf %220, %284 : vector<16x32xf32>
    %cst_74 = arith.constant dense<0.000000e+00> : vector<16xf32>
    %286 = vector.multi_reduction <add>, %285, %cst_74 [1] : vector<16x32xf32> to vector<16xf32>
    %287 = vector.shape_cast %286 : vector<16xf32> to vector<16x1xf32>
    %cst_75 = arith.constant 3.200000e+01 : f32
    %288 = vector.broadcast %cst_75 : f32 to vector<16x1xf32>
    %289 = arith.divf %287, %288 : vector<16x1xf32>
    %290 = vector.broadcast %289 : vector<16x1xf32> to vector<16x32xf32>
    %291 = arith.subf %285, %290 : vector<16x32xf32>
    %292 = arith.mulf %291, %291 : vector<16x32xf32>
    %cst_76 = arith.constant dense<0.000000e+00> : vector<16xf32>
    %293 = vector.multi_reduction <add>, %292, %cst_76 [1] : vector<16x32xf32> to vector<16xf32>
    %294 = vector.shape_cast %293 : vector<16xf32> to vector<16x1xf32>
    %cst_77 = arith.constant 3.200000e+01 : f32
    %295 = vector.broadcast %cst_77 : f32 to vector<16x1xf32>
    %296 = arith.divf %294, %295 : vector<16x1xf32>
    %297 = vector.broadcast %289 : vector<16x1xf32> to vector<16x32xf32>
    %298 = arith.subf %285, %297 : vector<16x32xf32>
    %cst_78 = arith.constant 9.99999974E-6 : f32
    %299 = vector.broadcast %cst_78 : f32 to vector<16x1xf32>
    %300 = arith.addf %296, %299 : vector<16x1xf32>
    %301 = math.rsqrt %300 : vector<16x1xf32>
    %302 = vector.broadcast %301 : vector<16x1xf32> to vector<16x32xf32>
    %303 = arith.mulf %298, %302 : vector<16x32xf32>
    %304 = vector.broadcast %225 : vector<1x32xf32> to vector<16x32xf32>
    %305 = arith.mulf %303, %304 : vector<16x32xf32>
    %306 = vector.broadcast %226 : vector<1x32xf32> to vector<16x32xf32>
    %307 = arith.addf %305, %306 : vector<16x32xf32>
    %308 = arith.truncf %307 : vector<16x32xf32> to vector<16x32xbf16>
    %c3 = arith.constant 3 : index
    %c0_79 = arith.constant 0 : index
    %c0_80 = arith.constant 0 : index
    %309 = vector.load %arg7[%c3, %c0_79, %c0_80] : memref<4x32x96xbf16, #tpu.memory_space<vmem>>, vector<1x32x96xbf16>
    %310 = vector.shape_cast %309 : vector<1x32x96xbf16> to vector<32x96xbf16>
    %311 = vector.extract_strided_slice %310 {offsets = [0, 0], sizes = [32, 32], strides = [1, 1]} : vector<32x96xbf16> to vector<32x32xbf16>
    %cst_81 = arith.constant dense<0.000000e+00> : vector<16x32xf32>
    %312 = tpu.matmul %308, %311, %cst_81 {dimension_numbers = #tpu.dot_dimension_numbers<[1], [0], [0], [1], [0, 0, 1, 1], [], []>} : vector<16x32xbf16>, vector<32x32xbf16>, vector<16x32xf32> -> vector<16x32xf32>
    %313 = vector.extract_strided_slice %222 {offsets = [0, 0], sizes = [1, 32], strides = [1, 1]} : vector<1x96xf32> to vector<1x32xf32>
    %314 = vector.broadcast %313 : vector<1x32xf32> to vector<16x32xf32>
    %315 = arith.addf %312, %314 : vector<16x32xf32>
    %316 = vector.extract_strided_slice %310 {offsets = [0, 32], sizes = [32, 64], strides = [1, 1]} : vector<32x96xbf16> to vector<32x64xbf16>
    %cst_82 = arith.constant dense<0.000000e+00> : vector<16x64xf32>
    %317 = tpu.matmul %12, %316, %cst_82 {dimension_numbers = #tpu.dot_dimension_numbers<[1], [0], [0], [1], [0, 0, 1, 1], [], []>} : vector<16x32xbf16>, vector<32x64xbf16>, vector<16x64xf32> -> vector<16x64xf32>
    %318 = vector.extract_strided_slice %222 {offsets = [0, 32], sizes = [1, 64], strides = [1, 1]} : vector<1x96xf32> to vector<1x64xf32>
    %319 = vector.broadcast %318 : vector<1x64xf32> to vector<16x64xf32>
    %320 = arith.addf %317, %319 : vector<16x64xf32>
    %321 = vector.extract_strided_slice %320 {offsets = [0, 0], sizes = [16, 32], strides = [1, 1]} : vector<16x64xf32> to vector<16x32xf32>
    %322 = vector.extract_strided_slice %320 {offsets = [0, 32], sizes = [16, 32], strides = [1, 1]} : vector<16x64xf32> to vector<16x32xf32>
    %c3_83 = arith.constant 3 : index
    %c0_84 = arith.constant 0 : index
    %c0_85 = arith.constant 0 : index
    %323 = vector.load %arg8[%c3_83, %c0_84, %c0_85] : memref<4x32x32xbf16, #tpu.memory_space<vmem>>, vector<1x32x32xbf16>
    %324 = vector.shape_cast %323 : vector<1x32x32xbf16> to vector<32x32xbf16>
    %325 = vector.extract_strided_slice %315 {offsets = [0, 0], sizes = [16, 8], strides = [1, 1]} : vector<16x32xf32> to vector<16x8xf32>
    %326 = vector.extract_strided_slice %315 {offsets = [0, 8], sizes = [16, 8], strides = [1, 1]} : vector<16x32xf32> to vector<16x8xf32>
    %327 = vector.extract_strided_slice %315 {offsets = [0, 16], sizes = [16, 8], strides = [1, 1]} : vector<16x32xf32> to vector<16x8xf32>
    %328 = vector.extract_strided_slice %315 {offsets = [0, 24], sizes = [16, 8], strides = [1, 1]} : vector<16x32xf32> to vector<16x8xf32>
    %329 = tpu.concatenate %325, %326, %327, %328 in 0 : vector<16x8xf32>, vector<16x8xf32>, vector<16x8xf32>, vector<16x8xf32> -> vector<64x8xf32>
    %330 = arith.truncf %329 : vector<64x8xf32> to vector<64x8xbf16>
    %331 = vector.extract_strided_slice %321 {offsets = [0, 0], sizes = [16, 8], strides = [1, 1]} : vector<16x32xf32> to vector<16x8xf32>
    %332 = vector.extract_strided_slice %321 {offsets = [0, 8], sizes = [16, 8], strides = [1, 1]} : vector<16x32xf32> to vector<16x8xf32>
    %333 = vector.extract_strided_slice %321 {offsets = [0, 16], sizes = [16, 8], strides = [1, 1]} : vector<16x32xf32> to vector<16x8xf32>
    %334 = vector.extract_strided_slice %321 {offsets = [0, 24], sizes = [16, 8], strides = [1, 1]} : vector<16x32xf32> to vector<16x8xf32>
    %335 = tpu.concatenate %331, %332, %333, %334 in 0 : vector<16x8xf32>, vector<16x8xf32>, vector<16x8xf32>, vector<16x8xf32> -> vector<64x8xf32>
    %336 = arith.truncf %335 : vector<64x8xf32> to vector<64x8xbf16>
    %337 = vector.extract_strided_slice %322 {offsets = [0, 0], sizes = [16, 8], strides = [1, 1]} : vector<16x32xf32> to vector<16x8xf32>
    %338 = vector.extract_strided_slice %322 {offsets = [0, 8], sizes = [16, 8], strides = [1, 1]} : vector<16x32xf32> to vector<16x8xf32>
    %339 = vector.extract_strided_slice %322 {offsets = [0, 16], sizes = [16, 8], strides = [1, 1]} : vector<16x32xf32> to vector<16x8xf32>
    %340 = vector.extract_strided_slice %322 {offsets = [0, 24], sizes = [16, 8], strides = [1, 1]} : vector<16x32xf32> to vector<16x8xf32>
    %341 = tpu.concatenate %337, %338, %339, %340 in 0 : vector<16x8xf32>, vector<16x8xf32>, vector<16x8xf32>, vector<16x8xf32> -> vector<64x8xf32>
    %342 = arith.truncf %341 : vector<64x8xf32> to vector<64x8xbf16>
    %cst_86 = arith.constant dense<0.000000e+00> : vector<64x64xf32>
    %343 = tpu.matmul %330, %336, %cst_86 {dimension_numbers = #tpu.dot_dimension_numbers<[1], [1], [0], [0], [0, 0, 1, 0], [], []>} : vector<64x8xbf16>, vector<64x8xbf16>, vector<64x64xf32> -> vector<64x64xf32>
    %344 = arith.addf %343, %14 : vector<64x64xf32>
    %cst_87 = arith.constant dense<0xFF800000> : vector<64xf32>
    %345 = vector.multi_reduction <maximumf>, %344, %cst_87 [1] : vector<64x64xf32> to vector<64xf32>
    %346 = vector.shape_cast %345 : vector<64xf32> to vector<64x1xf32>
    %347 = vector.broadcast %346 : vector<64x1xf32> to vector<64x64xf32>
    %348 = arith.subf %344, %347 : vector<64x64xf32>
    %349 = math.exp %348 : vector<64x64xf32>
    %cst_88 = arith.constant dense<0.000000e+00> : vector<64xf32>
    %350 = vector.multi_reduction <add>, %349, %cst_88 [1] : vector<64x64xf32> to vector<64xf32>
    %351 = vector.shape_cast %350 : vector<64xf32> to vector<64x1xf32>
    %352 = tpu.reciprocal %351 {approx = true} : vector<64x1xf32> -> vector<64x1xf32>
    %353 = vector.broadcast %352 : vector<64x1xf32> to vector<64x64xf32>
    %354 = arith.mulf %349, %353 : vector<64x64xf32>
    %355 = arith.truncf %354 : vector<64x64xf32> to vector<64x64xbf16>
    %cst_89 = arith.constant dense<0.000000e+00> : vector<64x8xf32>
    %356 = tpu.matmul %355, %342, %cst_89 {dimension_numbers = #tpu.dot_dimension_numbers<[1], [0], [0], [1], [0, 0, 1, 1], [], []>} : vector<64x64xbf16>, vector<64x8xbf16>, vector<64x8xf32> -> vector<64x8xf32>
    %357 = vector.extract_strided_slice %356 {offsets = [0, 0], sizes = [16, 8], strides = [1, 1]} : vector<64x8xf32> to vector<16x8xf32>
    %358 = vector.extract_strided_slice %356 {offsets = [16, 0], sizes = [16, 8], strides = [1, 1]} : vector<64x8xf32> to vector<16x8xf32>
    %359 = vector.extract_strided_slice %356 {offsets = [32, 0], sizes = [16, 8], strides = [1, 1]} : vector<64x8xf32> to vector<16x8xf32>
    %360 = vector.extract_strided_slice %356 {offsets = [48, 0], sizes = [16, 8], strides = [1, 1]} : vector<64x8xf32> to vector<16x8xf32>
    %361 = tpu.concatenate %357, %358, %359, %360 in 1 : vector<16x8xf32>, vector<16x8xf32>, vector<16x8xf32>, vector<16x8xf32> -> vector<16x32xf32>
    %362 = arith.truncf %361 : vector<16x32xf32> to vector<16x32xbf16>
    %cst_90 = arith.constant dense<0.000000e+00> : vector<16x32xf32>
    %363 = tpu.matmul %362, %324, %cst_90 {dimension_numbers = #tpu.dot_dimension_numbers<[1], [0], [0], [1], [0, 0, 1, 1], [], []>} : vector<16x32xbf16>, vector<32x32xbf16>, vector<16x32xf32> -> vector<16x32xf32>
    %364 = vector.broadcast %224 : vector<1x32xf32> to vector<16x32xf32>
    %365 = arith.addf %363, %364 : vector<16x32xf32>
    %366 = arith.addf %307, %365 : vector<16x32xf32>
    %cst_91 = arith.constant dense<0.000000e+00> : vector<16xf32>
    %367 = vector.multi_reduction <add>, %366, %cst_91 [1] : vector<16x32xf32> to vector<16xf32>
    %368 = vector.shape_cast %367 : vector<16xf32> to vector<16x1xf32>
    %cst_92 = arith.constant 3.200000e+01 : f32
    %369 = vector.broadcast %cst_92 : f32 to vector<16x1xf32>
    %370 = arith.divf %368, %369 : vector<16x1xf32>
    %371 = vector.broadcast %370 : vector<16x1xf32> to vector<16x32xf32>
    %372 = arith.subf %366, %371 : vector<16x32xf32>
    %373 = arith.mulf %372, %372 : vector<16x32xf32>
    %cst_93 = arith.constant dense<0.000000e+00> : vector<16xf32>
    %374 = vector.multi_reduction <add>, %373, %cst_93 [1] : vector<16x32xf32> to vector<16xf32>
    %375 = vector.shape_cast %374 : vector<16xf32> to vector<16x1xf32>
    %cst_94 = arith.constant 3.200000e+01 : f32
    %376 = vector.broadcast %cst_94 : f32 to vector<16x1xf32>
    %377 = arith.divf %375, %376 : vector<16x1xf32>
    %378 = vector.broadcast %370 : vector<16x1xf32> to vector<16x32xf32>
    %379 = arith.subf %366, %378 : vector<16x32xf32>
    %cst_95 = arith.constant 9.99999974E-6 : f32
    %380 = vector.broadcast %cst_95 : f32 to vector<16x1xf32>
    %381 = arith.addf %377, %380 : vector<16x1xf32>
    %382 = math.rsqrt %381 : vector<16x1xf32>
    %383 = vector.broadcast %382 : vector<16x1xf32> to vector<16x32xf32>
    %384 = arith.mulf %379, %383 : vector<16x32xf32>
    %385 = vector.broadcast %227 : vector<1x32xf32> to vector<16x32xf32>
    %386 = arith.mulf %384, %385 : vector<16x32xf32>
    %387 = vector.broadcast %228 : vector<1x32xf32> to vector<16x32xf32>
    %388 = arith.addf %386, %387 : vector<16x32xf32>
    %389 = arith.truncf %388 : vector<16x32xf32> to vector<16x32xbf16>
    %c1_96 = arith.constant 1 : index
    %c0_97 = arith.constant 0 : index
    %c0_98 = arith.constant 0 : index
    %390 = vector.load %arg9[%c1_96, %c0_97, %c0_98] : memref<2x32x64xbf16, #tpu.memory_space<vmem>>, vector<1x32x64xbf16>
    %391 = vector.shape_cast %390 : vector<1x32x64xbf16> to vector<32x64xbf16>
    %cst_99 = arith.constant dense<0.000000e+00> : vector<16x64xf32>
    %392 = tpu.matmul %389, %391, %cst_99 {dimension_numbers = #tpu.dot_dimension_numbers<[1], [0], [0], [1], [0, 0, 1, 1], [], []>} : vector<16x32xbf16>, vector<32x64xbf16>, vector<16x64xf32> -> vector<16x64xf32>
    %393 = vector.broadcast %231 : vector<1x64xf32> to vector<16x64xf32>
    %394 = arith.addf %392, %393 : vector<16x64xf32>
    %cst_100 = arith.constant 0.000000e+00 : f32
    %395 = vector.broadcast %cst_100 : f32 to vector<16x64xf32>
    %396 = arith.maximumf %394, %395 : vector<16x64xf32>
    %397 = arith.truncf %396 : vector<16x64xf32> to vector<16x64xbf16>
    %c1_101 = arith.constant 1 : index
    %c0_102 = arith.constant 0 : index
    %c0_103 = arith.constant 0 : index
    %398 = vector.load %arg10[%c1_101, %c0_102, %c0_103] : memref<2x64x32xbf16, #tpu.memory_space<vmem>>, vector<1x64x32xbf16>
    %399 = vector.shape_cast %398 : vector<1x64x32xbf16> to vector<64x32xbf16>
    %cst_104 = arith.constant dense<0.000000e+00> : vector<16x32xf32>
    %400 = tpu.matmul %397, %399, %cst_104 {dimension_numbers = #tpu.dot_dimension_numbers<[1], [0], [0], [1], [0, 0, 1, 1], [], []>} : vector<16x64xbf16>, vector<64x32xbf16>, vector<16x32xf32> -> vector<16x32xf32>
    %401 = vector.broadcast %232 : vector<1x32xf32> to vector<16x32xf32>
    %402 = arith.addf %400, %401 : vector<16x32xf32>
    %403 = arith.addf %388, %402 : vector<16x32xf32>
    %cst_105 = arith.constant dense<0.000000e+00> : vector<16xf32>
    %404 = vector.multi_reduction <add>, %403, %cst_105 [1] : vector<16x32xf32> to vector<16xf32>
    %405 = vector.shape_cast %404 : vector<16xf32> to vector<16x1xf32>
    %cst_106 = arith.constant 3.200000e+01 : f32
    %406 = vector.broadcast %cst_106 : f32 to vector<16x1xf32>
    %407 = arith.divf %405, %406 : vector<16x1xf32>
    %408 = vector.broadcast %407 : vector<16x1xf32> to vector<16x32xf32>
    %409 = arith.subf %403, %408 : vector<16x32xf32>
    %410 = arith.mulf %409, %409 : vector<16x32xf32>
    %cst_107 = arith.constant dense<0.000000e+00> : vector<16xf32>
    %411 = vector.multi_reduction <add>, %410, %cst_107 [1] : vector<16x32xf32> to vector<16xf32>
    %412 = vector.shape_cast %411 : vector<16xf32> to vector<16x1xf32>
    %cst_108 = arith.constant 3.200000e+01 : f32
    %413 = vector.broadcast %cst_108 : f32 to vector<16x1xf32>
    %414 = arith.divf %412, %413 : vector<16x1xf32>
    %415 = vector.broadcast %407 : vector<16x1xf32> to vector<16x32xf32>
    %416 = arith.subf %403, %415 : vector<16x32xf32>
    %cst_109 = arith.constant 9.99999974E-6 : f32
    %417 = vector.broadcast %cst_109 : f32 to vector<16x1xf32>
    %418 = arith.addf %414, %417 : vector<16x1xf32>
    %419 = math.rsqrt %418 : vector<16x1xf32>
    %420 = vector.broadcast %419 : vector<16x1xf32> to vector<16x32xf32>
    %421 = arith.mulf %416, %420 : vector<16x32xf32>
    %422 = vector.broadcast %229 : vector<1x32xf32> to vector<16x32xf32>
    %423 = arith.mulf %421, %422 : vector<16x32xf32>
    %424 = vector.broadcast %230 : vector<1x32xf32> to vector<16x32xf32>
    %425 = arith.addf %423, %424 : vector<16x32xf32>
    %426 = arith.truncf %425 : vector<16x32xf32> to vector<16x32xbf16>
    %c0_110 = arith.constant 0 : index
    %c0_111 = arith.constant 0 : index
    %427 = vector.load %arg12[%c0_110, %c0_111] : memref<32x128xbf16, #tpu.memory_space<vmem>>, vector<32x128xbf16>
    %cst_112 = arith.constant dense<0.000000e+00> : vector<16x128xf32>
    %428 = tpu.matmul %426, %427, %cst_112 {dimension_numbers = #tpu.dot_dimension_numbers<[1], [0], [0], [1], [0, 0, 1, 1], [], []>} : vector<16x32xbf16>, vector<32x128xbf16>, vector<16x128xf32> -> vector<16x128xf32>
    %c0_113 = arith.constant 0 : index
    %c0_114 = arith.constant 0 : index
    %429 = vector.load %arg13[%c0_113, %c0_114] : memref<1x128xf32, #tpu.memory_space<vmem>>, vector<1x128xf32>
    %430 = vector.broadcast %429 : vector<1x128xf32> to vector<16x128xf32>
    %431 = arith.addf %428, %430 : vector<16x128xf32>
    %c0_115 = arith.constant 0 : index
    %c0_116 = arith.constant 0 : index
    %432 = vector.load %arg14[%c0_115, %c0_116] : memref<16x128xf32, #tpu.memory_space<vmem>>, vector<16x128xf32>
    tpu.vector_store %arg14[%c0_115, %c0_116], %431 {strides = array<i32>} : memref<16x128xf32, #tpu.memory_space<vmem>>, vector<16x128xf32>,
    return
  }
  func.func @transform_0(%arg0: i32) -> (i32, i32) {
    %c0_i32 = arith.constant 0 : i32
    %c0_i32_0 = arith.constant 0 : i32
    return %arg0, %c0_i32 : i32, i32
  }
  func.func @transform_1(%arg0: i32) -> (i32, i32) {
    %c0_i32 = arith.constant 0 : i32
    %c0_i32_0 = arith.constant 0 : i32
    return %arg0, %c0_i32 : i32, i32
  }
  func.func @transform_2(%arg0: i32) -> (i32, i32) {
    %c0_i32 = arith.constant 0 : i32
    %c0_i32_0 = arith.constant 0 : i32
    return %arg0, %c0_i32 : i32, i32
  }
  func.func @transform_3(%arg0: i32) -> (i32, i32) {
    %c0_i32 = arith.constant 0 : i32
    %c0_i32_0 = arith.constant 0 : i32
    %c0_i32_1 = arith.constant 0 : i32
    return %c0_i32, %c0_i32_0 : i32, i32
  }
  func.func @transform_4(%arg0: i32) -> (i32, i32) {
    %c0_i32 = arith.constant 0 : i32
    %c0_i32_0 = arith.constant 0 : i32
    %c0_i32_1 = arith.constant 0 : i32
    return %c0_i32, %c0_i32_0 : i32, i32
  }
  func.func @transform_5(%arg0: i32) -> (i32, i32) {
    %c0_i32 = arith.constant 0 : i32
    %c0_i32_0 = arith.constant 0 : i32
    %c0_i32_1 = arith.constant 0 : i32
    return %c0_i32, %c0_i32_0 : i32, i32
  }
  func.func @transform_6(%arg0: i32) -> (i32, i32, i32) {
    %c0_i32 = arith.constant 0 : i32
    %c0_i32_0 = arith.constant 0 : i32
    %c0_i32_1 = arith.constant 0 : i32
    %c0_i32_2 = arith.constant 0 : i32
    return %c0_i32, %c0_i32_0, %c0_i32_1 : i32, i32, i32
  }
  func.func @transform_7(%arg0: i32) -> (i32, i32, i32) {
    %c0_i32 = arith.constant 0 : i32
    %c0_i32_0 = arith.constant 0 : i32
    %c0_i32_1 = arith.constant 0 : i32
    %c0_i32_2 = arith.constant 0 : i32
    return %c0_i32, %c0_i32_0, %c0_i32_1 : i32, i32, i32
  }
  func.func @transform_8(%arg0: i32) -> (i32, i32, i32) {
    %c0_i32 = arith.constant 0 : i32
    %c0_i32_0 = arith.constant 0 : i32
    %c0_i32_1 = arith.constant 0 : i32
    %c0_i32_2 = arith.constant 0 : i32
    return %c0_i32, %c0_i32_0, %c0_i32_1 : i32, i32, i32
  }
  func.func @transform_9(%arg0: i32) -> (i32, i32, i32) {
    %c0_i32 = arith.constant 0 : i32
    %c0_i32_0 = arith.constant 0 : i32
    %c0_i32_1 = arith.constant 0 : i32
    %c0_i32_2 = arith.constant 0 : i32
    return %c0_i32, %c0_i32_0, %c0_i32_1 : i32, i32, i32
  }
  func.func @transform_10(%arg0: i32) -> (i32, i32) {
    %c0_i32 = arith.constant 0 : i32
    %c0_i32_0 = arith.constant 0 : i32
    %c0_i32_1 = arith.constant 0 : i32
    return %c0_i32, %c0_i32_0 : i32, i32
  }
  func.func @transform_11(%arg0: i32) -> (i32, i32) {
    %c0_i32 = arith.constant 0 : i32
    %c0_i32_0 = arith.constant 0 : i32
    %c0_i32_1 = arith.constant 0 : i32
    return %c0_i32, %c0_i32_0 : i32, i32
  }
  func.func @transform_12(%arg0: i32) -> (i32, i32) {
    %c0_i32 = arith.constant 0 : i32
    %c0_i32_0 = arith.constant 0 : i32
    %c0_i32_1 = arith.constant 0 : i32
    return %c0_i32, %c0_i32_0 : i32, i32
  }
  func.func @transform_13(%arg0: i32) -> (i32, i32) {
    %c0_i32 = arith.constant 0 : i32
    %c0_i32_0 = arith.constant 0 : i32
    return %arg0, %c0_i32 : i32, i32
  }
}

</mosaic_0001>

<bundles_post_ra>
// kernel: tpu_custom_call.1
= control target key start
LH: loop header
LB: loop body
LE: loop exit
PB: predicated region body
PF: predicated region fallthrough
CT: control target
= control target key end

     0   :  { %18 = vsyncpa [#allocation3], 0  ;;  %s4752_s0 = inlined_call_operand.vmem [shape: s32[16,1], index: 0, kind: input, shape index: {}]   ;;  %s4753_s1 = inlined_call_operand.hbm [shape: bf16[16,32], index: 1, kind: input, shape index: {}]   ;;  %s4754_s2 = inlined_call_operand.vmem [shape: f32[64,64], index: 2, kind: input, shape index: {}]   ;;  %s4755_s3 = inlined_call_operand.vmem [shape: f32[64,64], index: 3, kind: input, shape index: {}]   ;;  %s4756_s4 = inlined_call_operand.vmem [shape: bf16[64,32], index: 4, kind: input, shape index: {}]   ;;  %s4757_s5 = inlined_call_operand.hbm [shape: f32[16,32], index: 5, kind: input, shape index: {}]   ;;  %s4758_s6 = inlined_call_operand.hbm [shape: bf16[4,32,96], index: 6, kind: input, shape index: {}]   ;;  %s4759_s7 = inlined_call_operand.hbm [shape: bf16[4,32,32], index: 7, kind: input, shape index: {}]   ;;  %s4760_s8 = inlined_call_operand.hbm [shape: bf16[2,32,64], index: 8, kind: input, shape index: {}]   ;;  %s4761_s9 = inlined_call_operand.vmem [shape: bf16[2,64,32], index: 9, kind: input, shape index: {}]   ;;  %s4762_s10 = inlined_call_operand.vmem [shape: f32[24,96], index: 10, kind: input, shape index: {}]   ;;  %s4763_s11 = inlined_call_operand.vmem [shape: bf16[32,128], index: 11, kind: input, shape index: {}]   ;;  %s4764_s12 = inlined_call_operand.vmem [shape: f32[1,128], index: 12, kind: input, shape index: {}]   ;;  %s4765_s13 = inlined_call_operand.hbm [shape: f32[16,128], index: 13, kind: output, shape index: {}]  }
   0x1   :  { %19 = vsyncpa [#allocation6], 0 }
   0x2   :  { %20 = vsyncpa [#allocation9], 0 }
   0x3   :  { %21 = vsyncpa [#allocation4], 0  ;;  %s3883_s25 = smov [#allocation5]   ;;  %s3743_s29 = scalar_lea.hbm %s4757_s5, 256 }
   0x4   :  { %s47_s26 = sshll.u32 %s3883_s25, 4  ;;  %p3744_p0 = scmp.ne.s32.totalorder %s4757_s5, %s3743_s29  ;;  %s48_s26 = int_to_ptr.vmem [resolvable:$true] %s47_s26 }
   0x5   :  { %p3747_p1 = scmp.lt.u32.totalorder %s3743_s29, %s4757_s5 }
   0x7   :  { %p3749_p2 = pnand %p3747_p1, %p3744_p0 }
   0x9   :  { %3752 = shalt.err (!%p3749_p2)
}
   0xa   :  { %s3753_s17 = scalar_lea.vmem %s48_s26, 256  ;;  %p3758_p4 = scmp.lt.s32.totalorder %s48_s26, %s48_s26 }
   0xb   :  { %p3754_p3 = scmp.ne.s32.totalorder %s48_s26, %s3753_s17  ;;  %p3759_p5 = scmp.lt.s32.totalorder %s3753_s17, %s3753_s17 }
   0xd   :  { %p3760_p6 = por %p3759_p5, %p3758_p4 }
   0xf   :  { %p3761_p7 = pnand %p3760_p6, %p3754_p3 }
  0x11   :  { %3764 = shalt.err (!%p3761_p7)
}
  0x12   :  { %s3884_s18 = smov 128   ;;  %s3885_s19 = smov 8  }
  0x13   :  { %53 = dma.hbm_to_vmem [thread:$0]  %s4757_s5, 256, %s48_s26, [#allocation6], %s3884_s18, %s3884_s18, %s3885_s19  }
  0x14   :  { %s3886_s22 = smov [#allocation8]   ;;  %s3887_s24 = smov [#allocation2]  }
  0x15   :  { %s71_s23 = sshll.u32 %s3886_s22, 4  ;;  %s29_s25 = sshll.u32 %s3887_s24, 4  ;;  %s72_s23 = int_to_ptr.vmem [resolvable:$true] %s71_s23  ;;  %s30_s25 = int_to_ptr.vmem [resolvable:$true] %s29_s25 }
  0x16   :  { %s3765_s29 = scalar_lea.hbm %s4759_s7, 1024 }
  0x17   :  { %p3766_p8 = scmp.ne.s32.totalorder %s4759_s7, %s3765_s29  ;;  %p3769_p9 = scmp.lt.u32.totalorder %s3765_s29, %s4759_s7 }
  0x19   :  { %p3771_p10 = pnand %p3769_p9, %p3766_p8 }
  0x1b   :  { %3774 = shalt.err (!%p3771_p10)
}
  0x1c   :  { %s3775_s5 = scalar_lea.vmem %s72_s23, 1024  ;;  %p3780_p12 = scmp.lt.s32.totalorder %s72_s23, %s72_s23 }
  0x1d   :  { %p3776_p11 = scmp.ne.s32.totalorder %s72_s23, %s3775_s5  ;;  %p3781_p13 = scmp.lt.s32.totalorder %s3775_s5, %s3775_s5 }
  0x1f   :  { %p3782_p0 = por %p3781_p13, %p3780_p12 }
  0x21   :  { %p3783_p1 = pnand %p3782_p0, %p3776_p11 }
  0x23   :  { %3786 = shalt.err (!%p3783_p1)
}
  0x24   :  { %s3888_s26 = smov 64   ;;  %s3889_s17 = smov 4  }
  0x25   :  { %77 = dma.hbm_to_vmem [thread:$0]  %s4759_s7, 1024, %s72_s23, [#allocation9], %s3888_s26, %s3888_s26, %s3889_s17  }
  0x26   :  { %s3787_s27 = scalar_lea.hbm %s4753_s1, 128 }
  0x27   :  { %p3788_p2 = scmp.ne.s32.totalorder %s4753_s1, %s3787_s27  ;;  %p3791_p3 = scmp.lt.u32.totalorder %s3787_s27, %s4753_s1 }
  0x29   :  { %p3793_p4 = pnand %p3791_p3, %p3788_p2 }
  0x2b   :  { %3796 = shalt.err (!%p3793_p4)
}
  0x2c   :  { %s3797_s15 = scalar_lea.vmem %s30_s25, 128  ;;  %p3802_p6 = scmp.lt.s32.totalorder %s30_s25, %s30_s25 }
  0x2d   :  { %p3798_p5 = scmp.ne.s32.totalorder %s30_s25, %s3797_s15  ;;  %p3803_p7 = scmp.lt.s32.totalorder %s3797_s15, %s3797_s15 }
  0x2f   :  { %p3804_p8 = por %p3803_p7, %p3802_p6 }
  0x31   :  { %p3805_p9 = pnand %p3804_p8, %p3798_p5 }
  0x33   :  { %3808 = shalt.err (!%p3805_p9)
}
  0x34   :  { %35 = dma.hbm_to_vmem [thread:$0]  %s4753_s1, 128, %s30_s25, [#allocation3], %s3888_s26, %s3888_s26, %s3889_s17  }
  0x35   :  { %s3890_s16 = smov [#allocation7]   ;;  %s3891_s20 = smov [#allocation10]  }
  0x36   :  { %s59_s5 = sshll.u32 %s3890_s16, 4  ;;  %s83_s21 = sshll.u32 %s3891_s20, 4  ;;  %s60_s5 = int_to_ptr.vmem [resolvable:$true] %s59_s5  ;;  %s84_s21 = int_to_ptr.vmem [resolvable:$true] %s83_s21 }
  0x37   :  { %s3809_s27 = scalar_lea.hbm %s4758_s6, 1024 }
  0x38   :  { %p3810_p10 = scmp.ne.s32.totalorder %s4758_s6, %s3809_s27  ;;  %p3813_p11 = scmp.lt.u32.totalorder %s3809_s27, %s4758_s6 }
  0x3a   :  { %p3815_p12 = pnand %p3813_p11, %p3810_p10 }
  0x3c   :  { %3818 = shalt.err (!%p3815_p12)
}
  0x3d   :  { %s3819_s1 = scalar_lea.vmem %s60_s5, 1024  ;;  %p3824_p0 = scmp.lt.s32.totalorder %s60_s5, %s60_s5 }
  0x3e   :  { %p3820_p13 = scmp.ne.s32.totalorder %s60_s5, %s3819_s1  ;;  %p3825_p1 = scmp.lt.s32.totalorder %s3819_s1, %s3819_s1 }
  0x40   :  { %p3826_p2 = por %p3825_p1, %p3824_p0 }
  0x42   :  { %p3827_p3 = pnand %p3826_p2, %p3820_p13 }
  0x44   :  { %3830 = shalt.err (!%p3827_p3)
}
  0x45   :  { %65 = dma.hbm_to_vmem [thread:$0]  %s4758_s6, 1024, %s60_s5, [#allocation6], %s3888_s26, %s3888_s26, %s3889_s17  }
  0x46   :  { %s3831_s16 = scalar_lea.hbm %s4760_s8, 512 }
  0x47   :  { %p3832_p4 = scmp.ne.s32.totalorder %s4760_s8, %s3831_s16  ;;  %p3835_p5 = scmp.lt.u32.totalorder %s3831_s16, %s4760_s8 }
  0x49   :  { %p3837_p6 = pnand %p3835_p5, %p3832_p4 }
  0x4b   :  { %3840 = shalt.err (!%p3837_p6)
}
  0x4c   :  { %s3841_s28 = scalar_lea.vmem %s84_s21, 512  ;;  %p3846_p8 = scmp.lt.s32.totalorder %s84_s21, %s84_s21 }
  0x4d   :  { %p3842_p7 = scmp.ne.s32.totalorder %s84_s21, %s3841_s28  ;;  %p3847_p9 = scmp.lt.s32.totalorder %s3841_s28, %s3841_s28 }
  0x4f   :  { %p3848_p10 = por %p3847_p9, %p3846_p8 }
  0x51   :  { %p3849_p11 = pnand %p3848_p10, %p3842_p7 }
  0x53   :  { %3852 = shalt.err (!%p3849_p11)
}
  0x54   :  { %89 = dma.hbm_to_vmem [thread:$0]  %s4760_s8, 512, %s84_s21, [#allocation9], %s3888_s26, %s3888_s26, %s3889_s17  }
  0x55   :  { %3875 = dma.done.wait [#allocation3], 128  }
  0x56   :  { %3876 = vsyncadd [#allocation3], 4294967168 }
  0x57   :  { %3877 = dma.done.wait [#allocation6], 1280  }
  0x58   :  { %3878 = vsyncadd [#allocation6], 4294966016 }
  0x59   :  { %3879 = dma.done.wait [#allocation9], 1536  }
  0x5a   :  { %3880 = vsyncadd [#allocation9], 4294965760  ;;  %v3892_v0 = vmov 0   ;;  %v3893_v1 = vmov 0.0   ;;  %v114_v2 = vld [vmem:[%s4752_s0] sm:$0xff]  ;;  %v115_v4 = vld [vmem:[%s4752_s0 + $0x8] sm:$0xff]  ;;  %v116_v8 = vlaneseq }
  0x5b   :  { %3386 = vset.pattern.permute.xlu0 %v3892_v0  ;;  %3083 = vmatprep.subr.bf16.mxu0 %v3893_v1  ;;  %v3537_v3 = vld [vmem:[%s4756_s4] sm:$0xff]   ;;  %v3538_v5 = vld [vmem:[%s4756_s4 + $0x8] sm:$0xff]   ;;  %v3539_v6 = vld [vmem:[%s4756_s4 + $0x10] sm:$0xff]   ;;  %vm3894_vm0 = vmmov 0   ;;  %vm163_vm3 = vcmask 523264   ;;  %vm250_vm4 = vcmask 261120  }
  0x5c   :  { %3095 = vmatprep.subr.bf16.mxu1 %v3893_v1  ;;  %119 = vperm.xlu0 %3386, %v114_v2   ;;  %v3540_v7 = vld [vmem:[%s4756_s4 + $0x18] sm:$0xff]   ;;  %v117_v9 = vand.u32 127, %v116_v8  ;;  %v3541_v15 = vld [vmem:[#allocation7] sm:$0xff]   ;;  %v3542_v16 = vld [vmem:[#allocation7 + $0x8] sm:$0xff]   ;;  %v4085_v26 = vshrl.u32 %v116_v8, 7  ;;  %vm335_vm5 = vcmask 64512  }
  0x5d   :  { %3084 = vmatpush3.bf16.msra.mxu0 %v3537_v3  ;;  %3091 = vmatprep.mubr.msk.bf16.mxu0 %vm3894_vm0, %v3893_v1  ;;  %v137_v17 = vld [vmem:[#allocation5] sm:$0xff]  ;;  %v138_v19 = vld [vmem:[#allocation5 + $0x8] sm:$0xff]  ;;  %v4093_v28 = vld [vmem:[%s4762_s10] sm:$0xff]  ;;  %s3895_s20 = smov 104   ;;  %s3896_s22 = smov 120   ;;  %vm632_vm6 = vcmask 130048  }
  0x5e   :  { %3085 = vmatprep.subr.bf16.mxu0 %v3893_v1  ;;  %3099 = vmatprep.mubr.msk.bf16.mxu1 %vm3894_vm0, %v3893_v1  ;;  %v4088_v27 = vsub.s32 0, %v4085_v26  ;;  %s3897_s24 = smov 112   ;;  %s3898_s27 = smov 96   ;;  %v210_v58 = vld [vmem:[%s4754_s2] sm:$0xff]  ;;  %v213_v61 = vld [vmem:[%s4754_s2 + $0x18] sm:$0xff]  ;;  %v211_v62 = vld [vmem:[%s4754_s2 + $0x8] sm:$0xff] }
  0x5f   :  { %3096 = vmatpush3.bf16.msra.mxu1 %v3541_v15  ;;  %v212_v2 = vld [vmem:[%s4754_s2 + $0x10] sm:$0xff]  ;;  %s3899_s16 = smov 24   ;;  %s3900_s28 = smov 16   ;;  %vm635_vm7 = vcmask 195584  }
  0x60   :  { %122 = vperm.xlu0 %3386, %v115_v4   ;;  %3097 = vmatprep.subr.bf16.mxu1 %v3893_v1  ;;  %v237_v29 = vrot.slane %v4093_v28, %v4088_v27  ;;  %s3901_s5 = smov [#allocation11]  }
  0x61   :  { %3086 = vmatpush3.bf16.msra.mxu0 %v3538_v5  ;;  %s2859_s29 = sshll.u32 %s3901_s5, 4  ;;  %s2860_s29 = int_to_ptr.vmem [resolvable:$true] %s2859_s29 }
  0x62   :  { %3087 = vmatprep.subr.bf16.mxu0 %v3893_v1  ;;  %s3853_s30 = scalar_lea.vmem %s2860_s29, 256  ;;  %p3858_p13 = scmp.lt.s32.totalorder %s2860_s29, %s2860_s29 }
  0x63   :  { %3098 = vmatpush3.bf16.msra.mxu1 %v3542_v16  ;;  %p3854_p12 = scmp.ne.s32.totalorder %s2860_s29, %s3853_s30  ;;  %p3859_p0 = scmp.lt.s32.totalorder %s3853_s30, %s3853_s30 }
  0x65   :  { %3088 = vmatpush3.bf16.msra.mxu0 %v3539_v6  ;;  %p3860_p1 = por %p3859_p0, %p3858_p13 }
  0x66   :  { %3089 = vmatprep.subr.bf16.mxu0 %v3893_v1 }
  0x67   :  { %p3861_p2 = pnand %p3860_p1, %p3854_p12 }
  0x69   :  { %3090 = vmatpush3.bf16.msra.mxu0 %v3540_v7 }
  0xdb   :  { %v120_v10 = vpop.permute.xlu0 %119 }
  0xdc   :  { %vm124_vm1 = vcmp.eq.s32.totalorder %v117_v9, %v120_v10 }
  0xdd   :  { %v126_v12 = vsel %vm124_vm1, 1.0, %v3893_v1 }
  0xdf   :  { %v123_v11 = vpop.permute.xlu0 %122 }
  0xe0   :  { %vm125_vm2 = vcmp.eq.s32.totalorder %v117_v9, %v123_v11  ;;  %v214_v9 = vld [vmem:[%s4754_s2 + $0x20] sm:$0xff] }
  0xe1   :  { %v127_v13 = vsel %vm125_vm2, 1.0, %v3893_v1 }
  0xe2   :  { %v128_v14 = vpack.c.bf16 %v127_v13, %v126_v12  ;;  %v215_v13 = vld [vmem:[%s4754_s2 + $0x28] sm:$0xff] }
  0xe4   :  { %3092 = vmatmul.mubr.msk.bf16.vlgmr.msra.gmra.mrb[0].mxu0 %vm163_vm3, %v128_v14 }
 0x1b7   :  { %v201_v18 = vpop.f32.mrb[0].mxu0 }
 0x1b8   :  { %v3093_v20 = vpop.f32.mrb[1].mxu0  ;;  %v4078_v22 = vadd.f32 %v201_v18, %v137_v17  ;;  %v216_v17 = vld [vmem:[%s4754_s2 + $0x30] sm:$0xff]  ;;  %v217_v18 = vld [vmem:[%s4754_s2 + $0x38] sm:$0xff] }
 0x1b9   :  { %v204_v21 = vpop.f32.mrb[2].mxu0 }
 0x1ba   :  { %v4080_v23 = vadd.f32 %v204_v21, %v138_v19  ;;  %v3094_v24 = vpop.f32.mrb[3].mxu0 }
 0x1bc   :  { %v229_v25 = vpack.c.bf16 %v4080_v23, %v4078_v22 }
 0x1be   :  { %3100 = vmatmul.mubr.msk.bf16.vlgmr.msra.gmra.mrb[0].mxu1 %vm250_vm4, %v229_v25 }
 0x291   :  { %v288_v30 = vpop.f32.mrb[0].mxu1 }
 0x292   :  { %v3101_v31 = vpop.f32.mrb[1].mxu1  ;;  %v289_v33 = vadd.f32 %v288_v30, %v237_v29 }
 0x293   :  { %v291_v32 = vpop.f32.mrb[2].mxu1 }
 0x294   :  { %v292_v34 = vadd.f32 %v291_v32, %v237_v29  ;;  %v3102_v35 = vpop.f32.mrb[3].mxu1 }
 0x296   :  { %v3397_v36 = vpack.i.bf16 %v292_v34, %v289_v33  ;;  %v4097_v37 = vpack.c.bf16 %v292_v34, %v289_v33 }
 0x298   :  { %3398 = vrot.lane.b32.xlu0 %v3397_v36, %s3895_s20  ;;  %3388 = vrot.lane.b32.xlu1 %v3397_v36, %s3896_s22 }
 0x299   :  { %3111 = vmatprep.mubr.msk.bf16.mxu1 %vm335_vm5, %v4097_v37 }
 0x29c   :  { %3393 = vrot.lane.b32.xlu1 %v3397_v36, %s3897_s24 }
 0x2a0   :  { %327 = vrot.lane.b32.xlu1 %v4097_v37, %s3898_s27 }
 0x30a   :  { %v3399_v38 = vpop.permute.xlu0 %3398  ;;  %v3389_v39 = vpop.permute.xlu1 %3388 }
 0x30b   :  { %v3391_v40 = vunpack.i.h.bf16 %v3389_v39  ;;  %v3390_v41 = vunpack.i.l.bf16 %v3389_v39  ;;  %v3401_v42 = vunpack.i.h.bf16 %v3399_v38  ;;  %v3400_v43 = vunpack.i.l.bf16 %v3399_v38 }
 0x30d   :  { %v4106_v44 = vpack.c.bf16 %v3391_v40, %v3390_v41  ;;  %v4110_v48 = vpack.c.bf16 %v3401_v42, %v3400_v43 }
 0x30e   :  { %v3394_v45 = vpop.permute.xlu1 %3393 }
 0x30f   :  { %v3396_v46 = vunpack.i.h.bf16 %v3394_v45  ;;  %v3395_v47 = vunpack.i.l.bf16 %v3394_v45  ;;  %329 = vrot.lane.b32.xlu0 %v4106_v44, %s3898_s27 }
 0x311   :  { %v4112_v49 = vpack.c.bf16 %v3396_v46, %v3395_v47 }
 0x312   :  { %v328_v50 = vpop.permute.xlu1 %327 }
 0x313   :  { %333 = vrot.lane.b32.xlu0 %v4110_v48, %s3898_s27  ;;  %331 = vrot.lane.b32.xlu1 %v4112_v49, %s3898_s27  ;;  %v349_v51 = vsel %vm335_vm5, %v328_v50, 0 }
 0x314   :  { %3351 = vmatprep.subr.msk.bf16.mxu1 %vm335_vm5, %v328_v50 }
 0x315   :  { %3104 = vmatpush3.bf16.xpose.msra.mxu1 %v349_v51 }
 0x381   :  { %v330_v52 = vpop.permute.xlu0 %329 }
 0x382   :  { %3352 = vmatprep.subr.msk.bf16.mxu1 %vm335_vm5, %v330_v52  ;;  %v352_v53 = vsel %vm335_vm5, %v330_v52, 0 }
 0x383   :  { %3106 = vmatpush3.bf16.xpose.msra.mxu1 %v352_v53 }
 0x385   :  { %v332_v54 = vpop.permute.xlu1 %331  ;;  %v334_v56 = vpop.permute.xlu0 %333 }
 0x386   :  { %3353 = vmatprep.subr.msk.bf16.mxu1 %vm335_vm5, %v332_v54  ;;  %v355_v55 = vsel %vm335_vm5, %v332_v54, 0  ;;  %v358_v57 = vsel %vm335_vm5, %v334_v56, 0 }
 0x38b   :  { %3108 = vmatpush3.bf16.xpose.msra.mxu1 %v355_v55 }
 0x38c   :  { %3354 = vmatprep.subr.msk.bf16.mxu1 %vm335_vm5, %v334_v56 }
 0x393   :  { %3110 = vmatpush3.bf16.xpose.msra.mxu1 %v358_v57 }
 0x394   :  { %3151 = vmatprep.subr.bf16.mxu1 %v3893_v1 }
 0x39a   :  { %3112 = vmatmul.mubr.msk.bf16.vlgmr.msra.gmra.mrb[4].mxu1 %vm335_vm5, %v4106_v44 }
 0x39b   :  { %3115 = vmatprep.mubr.msk.bf16.mxu1 %vm335_vm5, %v4112_v49 }
 0x3a2   :  { %3116 = vmatmul.mubr.msk.bf16.gmra.mrb[8].mxu1 %vm335_vm5, %v4110_v48 }
 0x3a3   :  { %3155 = vmatprep.mubr.msk.bf16.mxu1 %vm3894_vm0, %v3893_v1 }
 0x46d   :  { %v3113_v59 = vpop.f32.mrb[4].mxu1 }
 0x46e   :  { %v394_v60 = vpop.f32.mrb[5].mxu1  ;;  %v403_v7 = vadd.f32 %v3113_v59, %v212_v2 }
 0x46f   :  { %v395_v63 = vadd.f32 %v394_v60, %v210_v58  ;;  %v3114_v0 = vpop.f32.mrb[6].mxu1 }
 0x470   :  { %v397_v3 = vpop.f32.mrb[7].mxu1  ;;  %v406_v4 = vadd.f32 %v3114_v0, %v213_v61  ;;  %v431_v16 = vsel %vm163_vm3, %v403_v7, -inf }
 0x471   :  { %v398_v5 = vadd.f32 %v397_v3, %v211_v62  ;;  %v425_v6 = vsel %vm163_vm3, %v395_v63, -inf }
 0x472   :  { %426 = vmax.xlane.f32.xlu1 %v425_v6  ;;  %v434_v11 = vsel %vm163_vm3, %v406_v4, -inf }
 0x473   :  { %v428_v8 = vsel %vm163_vm3, %v398_v5, -inf }
 0x474   :  { %429 = vmax.xlane.f32.xlu0 %v428_v8 }
 0x475   :  { %v3117_v10 = vpop.f32.mrb[8].mxu1 }
 0x476   :  { %v410_v12 = vpop.f32.mrb[9].mxu1  ;;  %435 = vmax.xlane.f32.xlu1 %v434_v11  ;;  %v419_v21 = vadd.f32 %v3117_v10, %v216_v17 }
 0x477   :  { %v411_v14 = vadd.f32 %v410_v12, %v214_v9  ;;  %v3118_v15 = vpop.f32.mrb[10].mxu1 }
 0x478   :  { %v413_v19 = vpop.f32.mrb[11].mxu1  ;;  %432 = vmax.xlane.f32.xlu0 %v431_v16  ;;  %v422_v24 = vadd.f32 %v3118_v15, %v217_v18  ;;  %v443_v30 = vsel %vm163_vm3, %v419_v21, -inf }
 0x479   :  { %v414_v20 = vadd.f32 %v413_v19, %v215_v13  ;;  %v437_v25 = vsel %vm163_vm3, %v411_v14, -inf }
 0x47a   :  { %v446_v31 = vsel %vm163_vm3, %v422_v24, -inf }
 0x47b   :  { %v440_v29 = vsel %vm163_vm3, %v414_v20, -inf }
 0x47c   :  { %438 = vmax.xlane.f32.xlu0 %v437_v25  ;;  %441 = vmax.xlane.f32.xlu1 %v440_v29 }
 0x480   :  { %444 = vmax.xlane.f32.xlu0 %v443_v30  ;;  %447 = vmax.xlane.f32.xlu1 %v446_v31 }
 0x491   :  { %519 = vrot.lane.b32.xlu1 %v4106_v44, %s3888_s26 }
 0x496   :  { %517 = vrot.lane.b32.xlu0 %v4097_v37, %s3888_s26 }
 0x4ff   :  { %v427_v32 = vpop.xlane.xlu1 %426 }
 0x500   :  { %v449_v36 = vsub.f32 %v395_v63, %v427_v32 }
 0x501   :  { %v430_v33 = vpop.xlane.xlu0 %429 }
 0x502   :  { %v450_v34 = vsub.f32 %v398_v5, %v430_v33  ;;  %v457_v43 = vmul.f32 1.442695, %v449_v36 }
 0x503   :  { %v436_v35 = vpop.xlane.xlu1 %435 }
 0x504   :  { %v452_v38 = vsub.f32 %v406_v4, %v436_v35  ;;  %v459_v39 = vmul.f32 1.442695, %v450_v34 }
 0x505   :  { %v433_v40 = vpop.xlane.xlu0 %432 }
 0x506   :  { %v463_v41 = vmul.f32 1.442695, %v452_v38  ;;  %v451_v42 = vsub.f32 %v403_v7, %v433_v40 }
 0x508   :  { %3572 = vpow2.f32 %v463_v41  ;;  %v461_v45 = vmul.f32 1.442695, %v451_v42 }
 0x509   :  { %3574 = vpow2.f32 %v459_v39  ;;  %v439_v46 = vpop.xlane.xlu0 %438  ;;  %v442_v47 = vpop.xlane.xlu1 %441 }
 0x50a   :  { %3576 = vpow2.f32 %v461_v45  ;;  %v453_v44 = vsub.f32 %v411_v14, %v439_v46  ;;  %v454_v37 = vsub.f32 %v414_v20, %v442_v47 }
 0x50b   :  { %3578 = vpow2.f32 %v457_v43 }
 0x50c   :  { %v465_v54 = vmul.f32 1.442695, %v453_v44  ;;  %v467_v57 = vmul.f32 1.442695, %v454_v37  ;;  %v3543_v44 = vld [vmem:[#allocation8] sm:$0xff]  }
 0x50d   :  { %v445_v50 = vpop.xlane.xlu0 %444  ;;  %v448_v51 = vpop.xlane.xlu1 %447 }
 0x50e   :  { %v455_v52 = vsub.f32 %v419_v21, %v445_v50  ;;  %v456_v53 = vsub.f32 %v422_v24, %v448_v51 }
 0x510   :  { %v469_v55 = vmul.f32 1.442695, %v455_v52  ;;  %v471_v56 = vmul.f32 1.442695, %v456_v53  ;;  %v3544_v52 = vld [vmem:[#allocation8 + $0x8] sm:$0xff]  }
 0x511   :  { %v518_v58 = vpop.permute.xlu0 %517  ;;  %v520_v61 = vpop.permute.xlu1 %519 }
 0x512   :  { %v4171_v59 = vpop.eup %3572  ;;  %3580 = vpow2.f32 %v469_v55  ;;  %3119 = vmatprep.subr.bf16.mxu0 %v518_v58 }
 0x513   :  { %v3575_v60 = vpop.eup %3574  ;;  %3582 = vpow2.f32 %v471_v56  ;;  %3120 = vmatpush3.bf16.msra.mxu0 %v518_v58  ;;  %v482_v62 = vsel %vm163_vm3, %v4171_v59, 0.0 }
 0x514   :  { %v3577_v63 = vpop.eup %3576  ;;  %3584 = vpow2.f32 %v465_v54  ;;  %483 = vadd.xlane.f32.xlu1 %v482_v62  ;;  %3121 = vmatprep.subr.bf16.mxu0 %v520_v61  ;;  %v476_v3 = vsel %vm163_vm3, %v3575_v60, 0.0 }
 0x515   :  { %3586 = vpow2.f32 %v467_v57  ;;  %v479_v0 = vsel %vm163_vm3, %v3577_v63, 0.0  ;;  %v3579_v2 = vpop.eup %3578 }
 0x516   :  { %480 = vadd.xlane.f32.xlu0 %v479_v0  ;;  %v473_v4 = vsel %vm163_vm3, %v3579_v2, 0.0 }
 0x517   :  { %3122 = vmatpush3.bf16.msra.mxu0 %v520_v61 }
 0x518   :  { %477 = vadd.xlane.f32.xlu1 %v476_v3 }
 0x51a   :  { %474 = vadd.xlane.f32.xlu0 %v473_v4 }
 0x51c   :  { %v3581_v5 = vpop.eup %3580 }
 0x51d   :  { %v3583_v6 = vpop.eup %3582  ;;  %v491_v7 = vsel %vm163_vm3, %v3581_v5, 0.0 }
 0x51e   :  { %v3585_v8 = vpop.eup %3584  ;;  %492 = vadd.xlane.f32.xlu0 %v491_v7  ;;  %v494_v9 = vsel %vm163_vm3, %v3583_v6, 0.0 }
 0x51f   :  { %v3587_v10 = vpop.eup %3586  ;;  %495 = vadd.xlane.f32.xlu1 %v494_v9  ;;  %v485_v11 = vsel %vm163_vm3, %v3585_v8, 0.0 }
 0x520   :  { %v488_v12 = vsel %vm163_vm3, %v3587_v10, 0.0 }
 0x522   :  { %486 = vadd.xlane.f32.xlu0 %v485_v11 }
 0x523   :  { %489 = vadd.xlane.f32.xlu1 %v488_v12 }
 0x534   :  { %521 = vrot.lane.b32.xlu1 %v4112_v49, %s3888_s26 }
 0x538   :  { %523 = vrot.lane.b32.xlu0 %v4110_v48, %s3888_s26 }
 0x5a1   :  { %v484_v13 = vpop.xlane.xlu1 %483 }
 0x5a3   :  { %v481_v14 = vpop.xlane.xlu0 %480 }
 0x5a5   :  { %v478_v15 = vpop.xlane.xlu1 %477 }
 0x5a6   :  { %3588 = vrcp.f32 %v478_v15 }
 0x5a7   :  { %v475_v16 = vpop.xlane.xlu0 %474 }
 0x5a8   :  { %3590 = vrcp.f32 %v475_v16 }
 0x5a9   :  { %3592 = vrcp.f32 %v481_v14  ;;  %v4209_v14 = vsub.s32 2, %v4085_v26 }
 0x5aa   :  { %3594 = vrcp.f32 %v484_v13 }
 0x5ab   :  { %v493_v17 = vpop.xlane.xlu0 %492  ;;  %v642_v15 = vrot.slane %v4093_v28, %v4209_v14 }
 0x5ac   :  { %v496_v18 = vpop.xlane.xlu1 %495  ;;  %3596 = vrcp.f32 %v493_v17 }
 0x5af   :  { %v487_v19 = vpop.xlane.xlu0 %486 }
 0x5b0   :  { %v3589_v20 = vpop.eup %3588  ;;  %3598 = vrcp.f32 %v487_v19  ;;  %v490_v21 = vpop.xlane.xlu1 %489 }
 0x5b1   :  { %3600 = vrcp.f32 %v490_v21  ;;  %v506_v48 = vmul.f32 %v3589_v20, %v3575_v60 }
 0x5b2   :  { %v3591_v49 = vpop.eup %3590  ;;  %3602 = vrcp.f32 %v496_v18 }
 0x5b3   :  { %v505_v24 = vmul.f32 %v3591_v49, %v3579_v2  ;;  %v3593_v25 = vpop.eup %3592  ;;  %v524_v32 = vpop.permute.xlu0 %523 }
 0x5b4   :  { %v522_v29 = vpop.permute.xlu1 %521  ;;  %v3595_v31 = vpop.eup %3594  ;;  %v507_v33 = vmul.f32 %v3593_v25, %v3577_v63 }
 0x5b5   :  { %3123 = vmatprep.subr.bf16.mxu0 %v522_v29  ;;  %v513_v30 = vpack.c.bf16 %v506_v48, %v505_v24  ;;  %v508_v35 = vmul.f32 %v3595_v31, %v4171_v59 }
 0x5b6   :  { %3124 = vmatpush3.bf16.msra.mxu0 %v522_v29  ;;  %v3597_v34 = vpop.eup %3596  ;;  %v3545_v29 = vld [vmem:[#allocation7 + $0x10] sm:$0xff]  }
 0x5b7   :  { %3125 = vmatprep.subr.bf16.mxu0 %v524_v32  ;;  %3127 = vmatprep.mubr.msk.bf16.mxu0 %vm163_vm3, %v513_v30  ;;  %v514_v39 = vpack.c.bf16 %v508_v35, %v507_v33  ;;  %v511_v45 = vmul.f32 %v3597_v34, %v3581_v5  ;;  %v3546_v30 = vld [vmem:[#allocation7 + $0x18] sm:$0xff]  }
 0x5ba   :  { %v3599_v36 = vpop.eup %3598  ;;  %3126 = vmatpush3.bf16.msra.mxu0 %v524_v32 }
 0x5bb   :  { %v3601_v38 = vpop.eup %3600  ;;  %v509_v40 = vmul.f32 %v3599_v36, %v3585_v8  ;;  %3135 = vmatprep.subr.bf16.mxu0 %v3893_v1 }
 0x5bc   :  { %v3603_v41 = vpop.eup %3602  ;;  %v510_v42 = vmul.f32 %v3601_v38, %v3587_v10 }
 0x5bd   :  { %3128 = vmatmul.mubr.msk.bf16.vlgmr.msra.gmra.mrb[4].mxu0 %vm163_vm3, %v514_v39  ;;  %v512_v46 = vmul.f32 %v3603_v41, %v3583_v6  ;;  %v4224_v41 = vsub.s32 1, %v4085_v26 }
 0x5be   :  { %v515_v43 = vpack.c.bf16 %v510_v42, %v509_v40  ;;  %3136 = vmatpush3.bf16.msra.mxu0 %v3543_v44 }
 0x5bf   :  { %v516_v47 = vpack.c.bf16 %v512_v46, %v511_v45  ;;  %3137 = vmatprep.subr.bf16.mxu0 %v3893_v1  ;;  %v749_v42 = vrot.slane %v4093_v28, %v4224_v41 }
 0x5c0   :  { %3131 = vmatprep.mubr.msk.bf16.mxu0 %vm163_vm3, %v515_v43 }
 0x5c2   :  { %3138 = vmatpush3.bf16.msra.mxu0 %v3544_v52  ;;  %v4230_v52 = vsub.s32 4, %v4085_v26 }
 0x5c3   :  { %3143 = vmatprep.subr.bf16.mxu0 %v3893_v1 }
 0x5c5   :  { %3132 = vmatmul.mubr.msk.bf16.gmra.mrb[8].mxu0 %vm163_vm3, %v516_v47 }
 0x5c6   :  { %3139 = vmatprep.mubr.msk.bf16.mxu0 %vm3894_vm0, %v3893_v1 }
 0x690   :  { %v3129_v37 = vpop.f32.mrb[4].mxu0 }
 0x691   :  { %v575_v50 = vpop.f32.mrb[5].mxu0 }
 0x692   :  { %v3130_v51 = vpop.f32.mrb[6].mxu0 }
 0x693   :  { %v3402_v53 = vpack.i.bf16 %v3130_v51, %v3129_v37  ;;  %v578_v54 = vpop.f32.mrb[7].mxu0  ;;  %v3547_v51 = vld [vmem:[#allocation2] sm:$0xff]  }
 0x695   :  { %3403 = vrot.lane.b32.xlu1 %v3402_v53, %s3885_s19 }
 0x698   :  { %v3133_v55 = vpop.f32.mrb[8].mxu0 }
 0x699   :  { %v591_v56 = vpop.f32.mrb[9].mxu0 }
 0x69a   :  { %v3134_v57 = vpop.f32.mrb[10].mxu0 }
 0x69b   :  { %v3412_v58 = vpack.i.bf16 %v3134_v57, %v3133_v55  ;;  %v594_v59 = vpop.f32.mrb[11].mxu0 }
 0x69c   :  { %v3407_v60 = vpack.i.bf16 %v594_v59, %v591_v56  ;;  %v4236_v56 = vsub.s32 5, %v4085_v26 }
 0x69d   :  { %3413 = vrot.lane.b32.xlu1 %v3412_v58, %s3899_s16 }
 0x69e   :  { %3408 = vrot.lane.b32.xlu0 %v3407_v60, %s3900_s28  ;;  %v737_v60 = vrot.slane %v4093_v28, %v4236_v56 }
 0x707   :  { %v3404_v61 = vpop.permute.xlu1 %3403 }
 0x708   :  { %v3406_v62 = vunpack.i.h.bf16 %v3404_v61  ;;  %v3405_v63 = vunpack.i.l.bf16 %v3404_v61 }
 0x70a   :  { %v630_v5 = vsel %vm335_vm5, %v575_v50, %v3405_v63  ;;  %v631_v6 = vsel %vm335_vm5, %v578_v54, %v3406_v62  ;;  %v731_v54 = vrot.slane %v4093_v28, %v4230_v52 }
 0x70f   :  { %v3414_v0 = vpop.permute.xlu1 %3413 }
 0x710   :  { %v3409_v2 = vpop.permute.xlu0 %3408  ;;  %v3416_v7 = vunpack.i.h.bf16 %v3414_v0  ;;  %v3415_v8 = vunpack.i.l.bf16 %v3414_v0 }
 0x711   :  { %v3411_v3 = vunpack.i.h.bf16 %v3409_v2  ;;  %v3410_v4 = vunpack.i.l.bf16 %v3409_v2 }
 0x713   :  { %v634_v9 = vsel %vm632_vm6, %v631_v6, %v3411_v3  ;;  %v633_v10 = vsel %vm632_vm6, %v630_v5, %v3410_v4 }
 0x714   :  { %v637_v11 = vsel %vm635_vm7, %v634_v9, %v3416_v7  ;;  %v636_v12 = vsel %vm635_vm7, %v633_v10, %v3415_v8 }
 0x715   :  { %v638_v13 = vpack.c.bf16 %v637_v11, %v636_v12 }
 0x717   :  { %3140 = vmatmul.mubr.msk.bf16.vlgmr.msra.gmra.mrb[12].mxu0 %vm250_vm4, %v638_v13 }
 0x718   :  { %3147 = vmatprep.mubr.msk.bf16.mxu0 %vm3894_vm0, %v3893_v1  ;;  %3144 = vmatpush3.bf16.msra.mxu0 %v3545_v29 }
 0x719   :  { %3145 = vmatprep.subr.bf16.mxu0 %v3893_v1 }
 0x71c   :  { %3146 = vmatpush3.bf16.msra.mxu0 %v3546_v30 }
 0x7ea   :  { %v692_v16 = vpop.f32.mrb[12].mxu0 }
 0x7eb   :  { %v693_v17 = vadd.f32 %v692_v16, %v642_v15  ;;  %v3141_v18 = vpop.f32.mrb[13].mxu0 }
 0x7ec   :  { %v695_v19 = vpop.f32.mrb[14].mxu0 }
 0x7ed   :  { %v696_v20 = vadd.f32 %v695_v19, %v642_v15  ;;  %v3142_v21 = vpop.f32.mrb[15].mxu0  ;;  %v699_v49 = vadd.f32 %v693_v17, %v4078_v22 }
 0x7ef   :  { %v701_v24 = vsel %vm250_vm4, %v699_v49, 0.0  ;;  %v700_v48 = vadd.f32 %v696_v20, %v4080_v23 }
 0x7f0   :  { %702 = vadd.xlane.f32.xlu0 %v701_v24 }
 0x7f1   :  { %v704_v25 = vsel %vm250_vm4, %v700_v48, 0.0 }
 0x7f2   :  { %705 = vadd.xlane.f32.xlu1 %v704_v25 }
 0x803   :  { %811 = vrot.lane.b32.xlu1 %v3545_v29, %s3898_s27 }
 0x807   :  { %818 = vrot.lane.b32.xlu1 %v749_v42, %s3898_s27 }
 0x87d   :  { %v703_v31 = vpop.xlane.xlu0 %702 }
 0x87e   :  { %v708_v32 = vmul.f32 0.03125, %v703_v31 }
 0x87f   :  { %v706_v33 = vpop.xlane.xlu1 %705 }
 0x880   :  { %v710_v22 = vsub.f32 %v699_v49, %v708_v32  ;;  %v709_v34 = vmul.f32 0.03125, %v706_v33 }
 0x882   :  { %v711_v35 = vsub.f32 %v700_v48, %v709_v34  ;;  %v712_v36 = vmul.f32 %v710_v22, %v710_v22 }
 0x883   :  { %v812_v40 = vpop.permute.xlu1 %811 }
 0x884   :  { %v714_v23 = vsel %vm250_vm4, %v712_v36, 0.0  ;;  %v713_v38 = vmul.f32 %v711_v35, %v711_v35  ;;  %3152 = vmatpush3.bf16.msra.mxu1 %v812_v40 }
 0x885   :  { %715 = vadd.xlane.f32.xlu0 %v714_v23  ;;  %3153 = vmatprep.subr.bf16.mxu1 %v3893_v1 }
 0x886   :  { %v717_v39 = vsel %vm250_vm4, %v713_v38, 0.0 }
 0x887   :  { %v819_v3 = vpop.permute.xlu1 %818 }
 0x889   :  { %718 = vadd.xlane.f32.xlu0 %v717_v39 }
 0x89f   :  { %813 = vrot.lane.b32.xlu0 %v3546_v30, %s3898_s27 }
 0x912   :  { %v716_v43 = vpop.xlane.xlu0 %715 }
 0x913   :  { %v720_v45 = vmul.f32 0.03125, %v716_v43 }
 0x915   :  { %v722_v46 = vadd.f32 1e-05, %v720_v45 }
 0x916   :  { %v719_v47 = vpop.xlane.xlu0 %718 }
 0x917   :  { %3604 = vrsqrt.f32 %v722_v46  ;;  %v721_v44 = vmul.f32 0.03125, %v719_v47 }
 0x919   :  { %v723_v37 = vadd.f32 1e-05, %v721_v44 }
 0x91a   :  { %v814_v50 = vpop.permute.xlu0 %813 }
 0x91b   :  { %3606 = vrsqrt.f32 %v723_v37  ;;  %3154 = vmatpush3.bf16.msra.mxu1 %v814_v50 }
 0x91e   :  { %3156 = vmatmul.mubr.msk.bf16.vlgmr.msra.gmra.mrb[12].mxu1 %vm250_vm4, %v3547_v51  ;;  %v218_v51 = vld [vmem:[%s4755_s3] sm:$0xff] }
 0x921   :  { %v3605_v53 = vpop.eup %3604 }
 0x922   :  { %v726_v55 = vmul.f32 %v3605_v53, %v710_v22 }
 0x924   :  { %v732_v58 = vmul.f32 %v731_v54, %v726_v55  ;;  %v221_v55 = vld [vmem:[%s4755_s3 + $0x18] sm:$0xff] }
 0x925   :  { %v3607_v57 = vpop.eup %3606 }
 0x926   :  { %v727_v59 = vmul.f32 %v3607_v57, %v711_v35  ;;  %v4240_v62 = vadd.f32 %v737_v60, %v732_v58  ;;  %v219_v57 = vld [vmem:[%s4755_s3 + $0x8] sm:$0xff] }
 0x928   :  { %v733_v61 = vmul.f32 %v731_v54, %v727_v59 }
 0x92a   :  { %v4242_v63 = vadd.f32 %v737_v60, %v733_v61  ;;  %v220_v60 = vld [vmem:[%s4755_s3 + $0x10] sm:$0xff] }
 0x92c   :  { %v740_v0 = vpack.c.bf16 %v4242_v63, %v4240_v62 }
 0x92e   :  { %3148 = vmatmul.mubr.msk.bf16.vlgmr.msra.gmra.mrb[16].mxu0 %vm250_vm4, %v740_v0 }
 0x9f1   :  { %v858_v2 = vpop.f32.mrb[12].mxu1 }
 0x9f2   :  { %v3157_v4 = vpop.f32.mrb[13].mxu1  ;;  %v859_v6 = vadd.f32 %v858_v2, %v819_v3 }
 0x9f3   :  { %v861_v5 = vpop.f32.mrb[14].mxu1 }
 0x9f4   :  { %v862_v7 = vadd.f32 %v861_v5, %v819_v3  ;;  %v3158_v8 = vpop.f32.mrb[15].mxu1 }
 0x9f6   :  { %v3422_v9 = vpack.i.bf16 %v862_v7, %v859_v6  ;;  %v4247_v10 = vpack.c.bf16 %v862_v7, %v859_v6  ;;  %v222_v6 = vld [vmem:[%s4755_s3 + $0x20] sm:$0xff] }
 0x9f8   :  { %3423 = vrot.lane.b32.xlu0 %v3422_v9, %s3897_s24  ;;  %3418 = vrot.lane.b32.xlu1 %v3422_v9, %s3896_s22  ;;  %v931_v28 = vsel %vm335_vm5, %v4247_v10, 0 }
 0x9f9   :  { %3355 = vmatprep.subr.msk.bf16.mxu0 %vm335_vm5, %v4247_v10 }
 0x9fa   :  { %3160 = vmatpush3.bf16.xpose.msra.mxu0 %v931_v28  ;;  %v223_v28 = vld [vmem:[%s4755_s3 + $0x28] sm:$0xff] }
 0x9fc   :  { %3428 = vrot.lane.b32.xlu1 %v3422_v9, %s3895_s20 }
 0xa01   :  { %v799_v11 = vpop.f32.mrb[16].mxu0 }
 0xa02   :  { %v3149_v12 = vpop.f32.mrb[17].mxu0  ;;  %v800_v15 = vadd.f32 %v799_v11, %v749_v42 }
 0xa03   :  { %v802_v13 = vpop.f32.mrb[18].mxu0 }
 0xa04   :  { %v803_v16 = vadd.f32 %v802_v13, %v749_v42  ;;  %v3150_v17 = vpop.f32.mrb[19].mxu0 }
 0xa06   :  { %v3437_v18 = vpack.i.bf16 %v803_v16, %v800_v15  ;;  %v890_v19 = vpack.c.bf16 %v803_v16, %v800_v15  ;;  %v224_v15 = vld [vmem:[%s4755_s3 + $0x30] sm:$0xff]  ;;  %v225_v16 = vld [vmem:[%s4755_s3 + $0x38] sm:$0xff] }
 0xa08   :  { %3438 = vrot.lane.b32.xlu1 %v3437_v18, %s3897_s24  ;;  %3433 = vrot.lane.b32.xlu0 %v3437_v18, %s3896_s22 }
 0xa09   :  { %3167 = vmatprep.mubr.msk.bf16.mxu0 %vm335_vm5, %v890_v19 }
 0xa0c   :  { %3443 = vrot.lane.b32.xlu0 %v3437_v18, %s3895_s20 }
 0xa6a   :  { %v3424_v20 = vpop.permute.xlu0 %3423  ;;  %v3419_v21 = vpop.permute.xlu1 %3418 }
 0xa6b   :  { %v3426_v49 = vunpack.i.h.bf16 %v3424_v20  ;;  %v3425_v24 = vunpack.i.l.bf16 %v3424_v20  ;;  %v3421_v48 = vunpack.i.h.bf16 %v3419_v21  ;;  %v3420_v25 = vunpack.i.l.bf16 %v3419_v21 }
 0xa6d   :  { %v4260_v29 = vpack.c.bf16 %v3421_v48, %v3420_v25  ;;  %v4262_v30 = vpack.c.bf16 %v3426_v49, %v3425_v24 }
 0xa6e   :  { %v3429_v32 = vpop.permute.xlu1 %3428 }
 0xa6f   :  { %3356 = vmatprep.subr.msk.bf16.mxu0 %vm335_vm5, %v4260_v29  ;;  %v934_v31 = vsel %vm335_vm5, %v4260_v29, 0  ;;  %v3431_v33 = vunpack.i.h.bf16 %v3429_v32  ;;  %v3430_v22 = vunpack.i.l.bf16 %v3429_v32  ;;  %v937_v35 = vsel %vm335_vm5, %v4262_v30, 0 }
 0xa70   :  { %3162 = vmatpush3.bf16.xpose.msra.mxu0 %v934_v31 }
 0xa71   :  { %3357 = vmatprep.subr.msk.bf16.mxu0 %vm335_vm5, %v4262_v30  ;;  %v4270_v34 = vpack.c.bf16 %v3431_v33, %v3430_v22 }
 0xa73   :  { %v940_v38 = vsel %vm335_vm5, %v4270_v34, 0 }
 0xa78   :  { %3164 = vmatpush3.bf16.xpose.msra.mxu0 %v937_v35 }
 0xa79   :  { %3358 = vmatprep.subr.msk.bf16.mxu0 %vm335_vm5, %v4270_v34 }
 0xa7a   :  { %v3434_v36 = vpop.permute.xlu0 %3433  ;;  %v3439_v23 = vpop.permute.xlu1 %3438 }
 0xa7b   :  { %v3436_v39 = vunpack.i.h.bf16 %v3434_v36  ;;  %v3435_v40 = vunpack.i.l.bf16 %v3434_v36  ;;  %v3441_v42 = vunpack.i.h.bf16 %v3439_v23  ;;  %v3440_v43 = vunpack.i.l.bf16 %v3439_v23 }
 0xa7d   :  { %v891_v45 = vpack.c.bf16 %v3436_v39, %v3435_v40  ;;  %v892_v46 = vpack.c.bf16 %v3441_v42, %v3440_v43 }
 0xa7e   :  { %v3444_v47 = vpop.permute.xlu0 %3443 }
 0xa7f   :  { %v3446_v44 = vunpack.i.h.bf16 %v3444_v47  ;;  %v3445_v37 = vunpack.i.l.bf16 %v3444_v47 }
 0xa80   :  { %3166 = vmatpush3.bf16.xpose.msra.mxu0 %v940_v38 }
 0xa81   :  { %3207 = vmatprep.subr.bf16.mxu0 %v3893_v1  ;;  %v893_v50 = vpack.c.bf16 %v3446_v44, %v3445_v37 }
 0xa87   :  { %3168 = vmatmul.mubr.msk.bf16.vlgmr.msra.gmra.mrb[20].mxu0 %vm335_vm5, %v891_v45 }
 0xa88   :  { %3171 = vmatprep.mubr.msk.bf16.mxu0 %vm335_vm5, %v892_v46 }
 0xa8f   :  { %3172 = vmatmul.mubr.msk.bf16.gmra.mrb[24].mxu0 %vm335_vm5, %v893_v50 }
 0xa90   :  { %3215 = vmatprep.mubr.msk.bf16.mxu0 %vm3894_vm0, %v3893_v1 }
 0xb5a   :  { %v3169_v53 = vpop.f32.mrb[20].mxu0 }
 0xb5b   :  { %v976_v54 = vpop.f32.mrb[21].mxu0  ;;  %v985_v4 = vadd.f32 %v3169_v53, %v220_v60 }
 0xb5c   :  { %v977_v58 = vadd.f32 %v976_v54, %v218_v51  ;;  %v3170_v59 = vpop.f32.mrb[22].mxu0 }
 0xb5d   :  { %v979_v61 = vpop.f32.mrb[23].mxu0  ;;  %v988_v0 = vadd.f32 %v3170_v59, %v221_v55  ;;  %v1013_v13 = vsel %vm163_vm3, %v985_v4, -inf }
 0xb5e   :  { %v980_v2 = vadd.f32 %v979_v61, %v219_v57  ;;  %v1007_v3 = vsel %vm163_vm3, %v977_v58, -inf }
 0xb5f   :  { %1008 = vmax.xlane.f32.xlu1 %v1007_v3  ;;  %v1016_v8 = vsel %vm163_vm3, %v988_v0, -inf }
 0xb60   :  { %v1010_v5 = vsel %vm163_vm3, %v980_v2, -inf }
 0xb61   :  { %1011 = vmax.xlane.f32.xlu0 %v1010_v5 }
 0xb62   :  { %v3173_v7 = vpop.f32.mrb[24].mxu0 }
 0xb63   :  { %v992_v9 = vpop.f32.mrb[25].mxu0  ;;  %1017 = vmax.xlane.f32.xlu1 %v1016_v8  ;;  %v1001_v19 = vadd.f32 %v3173_v7, %v224_v15 }
 0xb64   :  { %v993_v11 = vadd.f32 %v992_v9, %v222_v6  ;;  %v3174_v12 = vpop.f32.mrb[26].mxu0 }
 0xb65   :  { %v995_v17 = vpop.f32.mrb[27].mxu0  ;;  %1014 = vmax.xlane.f32.xlu0 %v1013_v13  ;;  %v1004_v20 = vadd.f32 %v3174_v12, %v225_v16  ;;  %v1025_v24 = vsel %vm163_vm3, %v1001_v19, -inf }
 0xb66   :  { %v996_v18 = vadd.f32 %v995_v17, %v223_v28  ;;  %v1019_v21 = vsel %vm163_vm3, %v993_v11, -inf }
 0xb67   :  { %v1028_v48 = vsel %vm163_vm3, %v1004_v20, -inf }
 0xb68   :  { %v1022_v49 = vsel %vm163_vm3, %v996_v18, -inf }
 0xb69   :  { %1020 = vmax.xlane.f32.xlu0 %v1019_v21  ;;  %1023 = vmax.xlane.f32.xlu1 %v1022_v49 }
 0xb6d   :  { %1026 = vmax.xlane.f32.xlu0 %v1025_v24  ;;  %1029 = vmax.xlane.f32.xlu1 %v1028_v48 }
 0xb7e   :  { %1105 = vrot.lane.b32.xlu1 %v4260_v29, %s3898_s27 }
 0xb83   :  { %1103 = vrot.lane.b32.xlu0 %v4247_v10, %s3898_s27 }
 0xbec   :  { %v1009_v25 = vpop.xlane.xlu1 %1008 }
 0xbed   :  { %v1031_v22 = vsub.f32 %v977_v58, %v1009_v25 }
 0xbee   :  { %v1012_v31 = vpop.xlane.xlu0 %1011 }
 0xbef   :  { %v1032_v32 = vsub.f32 %v980_v2, %v1012_v31  ;;  %v1039_v40 = vmul.f32 1.442695, %v1031_v22 }
 0xbf0   :  { %v1018_v33 = vpop.xlane.xlu1 %1017 }
 0xbf1   :  { %v1034_v35 = vsub.f32 %v988_v0, %v1018_v33  ;;  %v1041_v36 = vmul.f32 1.442695, %v1032_v32 }
 0xbf2   :  { %v1015_v23 = vpop.xlane.xlu0 %1014 }
 0xbf3   :  { %v1045_v38 = vmul.f32 1.442695, %v1034_v35  ;;  %v1033_v39 = vsub.f32 %v985_v4, %v1015_v23 }
 0xbf5   :  { %3608 = vpow2.f32 %v1045_v38  ;;  %v1043_v42 = vmul.f32 1.442695, %v1033_v39 }
 0xbf6   :  { %3610 = vpow2.f32 %v1041_v36  ;;  %v1021_v43 = vpop.xlane.xlu0 %1020  ;;  %v1024_v45 = vpop.xlane.xlu1 %1023 }
 0xbf7   :  { %3612 = vpow2.f32 %v1043_v42  ;;  %v1035_v29 = vsub.f32 %v993_v11, %v1021_v43  ;;  %v1036_v10 = vsub.f32 %v996_v18, %v1024_v45 }
 0xbf8   :  { %3614 = vpow2.f32 %v1039_v40 }
 0xbf9   :  { %v1047_v50 = vmul.f32 1.442695, %v1035_v29  ;;  %v1049_v54 = vmul.f32 1.442695, %v1036_v10 }
 0xbfa   :  { %v1027_v46 = vpop.xlane.xlu0 %1026  ;;  %v1030_v47 = vpop.xlane.xlu1 %1029 }
 0xbfb   :  { %v1037_v44 = vsub.f32 %v1001_v19, %v1027_v46  ;;  %v1038_v37 = vsub.f32 %v1004_v20, %v1030_v47  ;;  %v3548_v47 = vld [vmem:[#allocation8 + $0x10] sm:$0xff]  }
 0xbfd   :  { %v1051_v51 = vmul.f32 1.442695, %v1037_v44  ;;  %v1053_v53 = vmul.f32 1.442695, %v1038_v37 }
 0xbfe   :  { %v1104_v55 = vpop.permute.xlu0 %1103  ;;  %v1106_v59 = vpop.permute.xlu1 %1105 }
 0xbff   :  { %v4320_v57 = vpop.eup %3608  ;;  %3616 = vpow2.f32 %v1051_v51  ;;  %3175 = vmatprep.subr.bf16.mxu1 %v1104_v55  ;;  %v3549_v51 = vld [vmem:[#allocation8 + $0x18] sm:$0xff]  }
 0xc00   :  { %v3611_v58 = vpop.eup %3610  ;;  %3618 = vpow2.f32 %v1053_v53  ;;  %3176 = vmatpush3.bf16.msra.mxu1 %v1104_v55  ;;  %v1064_v60 = vsel %vm163_vm3, %v4320_v57, 0.0 }
 0xc01   :  { %v3613_v61 = vpop.eup %3612  ;;  %3620 = vpow2.f32 %v1047_v50  ;;  %1065 = vadd.xlane.f32.xlu1 %v1064_v60  ;;  %3177 = vmatprep.subr.bf16.mxu1 %v1106_v59  ;;  %v1058_v3 = vsel %vm163_vm3, %v3611_v58, 0.0 }
 0xc02   :  { %3622 = vpow2.f32 %v1049_v54  ;;  %v1061_v0 = vsel %vm163_vm3, %v3613_v61, 0.0  ;;  %v3615_v2 = vpop.eup %3614 }
 0xc03   :  { %1062 = vadd.xlane.f32.xlu0 %v1061_v0  ;;  %v1055_v4 = vsel %vm163_vm3, %v3615_v2, 0.0 }
 0xc04   :  { %3178 = vmatpush3.bf16.msra.mxu1 %v1106_v59 }
 0xc05   :  { %1059 = vadd.xlane.f32.xlu1 %v1058_v3 }
 0xc07   :  { %1056 = vadd.xlane.f32.xlu0 %v1055_v4 }
 0xc09   :  { %v3617_v5 = vpop.eup %3616 }
 0xc0a   :  { %v3619_v6 = vpop.eup %3618  ;;  %v1073_v7 = vsel %vm163_vm3, %v3617_v5, 0.0 }
 0xc0b   :  { %v3621_v8 = vpop.eup %3620  ;;  %1074 = vadd.xlane.f32.xlu0 %v1073_v7  ;;  %v1076_v9 = vsel %vm163_vm3, %v3619_v6, 0.0 }
 0xc0c   :  { %v3623_v28 = vpop.eup %3622  ;;  %1077 = vadd.xlane.f32.xlu1 %v1076_v9  ;;  %v1067_v11 = vsel %vm163_vm3, %v3621_v8, 0.0 }
 0xc0d   :  { %v1070_v12 = vsel %vm163_vm3, %v3623_v28, 0.0 }
 0xc0f   :  { %1068 = vadd.xlane.f32.xlu0 %v1067_v11 }
 0xc10   :  { %1071 = vadd.xlane.f32.xlu1 %v1070_v12 }
 0xc21   :  { %1107 = vrot.lane.b32.xlu1 %v4262_v30, %s3898_s27 }
 0xc25   :  { %1109 = vrot.lane.b32.xlu0 %v4270_v34, %s3898_s27 }
 0xc8e   :  { %v1066_v13 = vpop.xlane.xlu1 %1065 }
 0xc90   :  { %v1063_v15 = vpop.xlane.xlu0 %1062 }
 0xc92   :  { %v1060_v16 = vpop.xlane.xlu1 %1059 }
 0xc93   :  { %3624 = vrcp.f32 %v1060_v16 }
 0xc94   :  { %v1057_v17 = vpop.xlane.xlu0 %1056 }
 0xc95   :  { %3626 = vrcp.f32 %v1057_v17 }
 0xc96   :  { %3628 = vrcp.f32 %v1063_v15 }
 0xc97   :  { %3630 = vrcp.f32 %v1066_v13 }
 0xc98   :  { %v1075_v18 = vpop.xlane.xlu0 %1074 }
 0xc99   :  { %v1078_v19 = vpop.xlane.xlu1 %1077  ;;  %3632 = vrcp.f32 %v1075_v18  ;;  %v4358_v18 = vsub.s32 3, %v4085_v26 }
 0xc9c   :  { %v1069_v20 = vpop.xlane.xlu0 %1068 }
 0xc9d   :  { %v3625_v21 = vpop.eup %3624  ;;  %3634 = vrcp.f32 %v1069_v20  ;;  %v1072_v49 = vpop.xlane.xlu1 %1071 }
 0xc9e   :  { %3636 = vrcp.f32 %v1072_v49  ;;  %v1088_v34 = vmul.f32 %v3625_v21, %v3611_v58 }
 0xc9f   :  { %v3627_v30 = vpop.eup %3626  ;;  %3638 = vrcp.f32 %v1078_v19  ;;  %v3724_v19 = vld [vmem:[%s4762_s10] sm:$0xff] }
 0xca0   :  { %v1087_v24 = vmul.f32 %v3627_v30, %v3615_v2  ;;  %v3629_v48 = vpop.eup %3628  ;;  %v1110_v33 = vpop.permute.xlu0 %1109  ;;  %v1226_v20 = vrot.slane %v3724_v19, %v4358_v18 }
 0xca1   :  { %v1108_v25 = vpop.permute.xlu1 %1107  ;;  %v3631_v32 = vpop.eup %3630  ;;  %v1089_v22 = vmul.f32 %v3629_v48, %v3613_v61 }
 0xca2   :  { %3179 = vmatprep.subr.bf16.mxu1 %v1108_v25  ;;  %v1095_v31 = vpack.c.bf16 %v1088_v34, %v1087_v24  ;;  %v1090_v36 = vmul.f32 %v3631_v32, %v4320_v57 }
 0xca3   :  { %3180 = vmatpush3.bf16.msra.mxu1 %v1108_v25  ;;  %v3633_v35 = vpop.eup %3632 }
 0xca4   :  { %3181 = vmatprep.subr.bf16.mxu1 %v1110_v33  ;;  %3183 = vmatprep.mubr.msk.bf16.mxu1 %vm163_vm3, %v1095_v31  ;;  %v1096_v39 = vpack.c.bf16 %v1090_v36, %v1089_v22  ;;  %v1093_v29 = vmul.f32 %v3633_v35, %v3617_v5 }
 0xca7   :  { %v3635_v23 = vpop.eup %3634  ;;  %3182 = vmatpush3.bf16.msra.mxu1 %v1110_v33 }
 0xca8   :  { %v3637_v38 = vpop.eup %3636  ;;  %v1091_v40 = vmul.f32 %v3635_v23, %v3621_v8  ;;  %3191 = vmatprep.subr.bf16.mxu1 %v3893_v1 }
 0xca9   :  { %v3639_v42 = vpop.eup %3638  ;;  %v1092_v43 = vmul.f32 %v3637_v38, %v3623_v28 }
 0xcaa   :  { %3184 = vmatmul.mubr.msk.bf16.vlgmr.msra.gmra.mrb[16].mxu1 %vm163_vm3, %v1096_v39  ;;  %v1094_v10 = vmul.f32 %v3639_v42, %v3619_v6 }
 0xcab   :  { %v1097_v45 = vpack.c.bf16 %v1092_v43, %v1091_v40  ;;  %3192 = vmatpush3.bf16.msra.mxu1 %v3548_v47 }
 0xcac   :  { %v1098_v46 = vpack.c.bf16 %v1094_v10, %v1093_v29  ;;  %3193 = vmatprep.subr.bf16.mxu1 %v3893_v1  ;;  %v3552_v29 = vld [vmem:[%s4761_s9] sm:$0xff]   ;;  %v3553_v10 = vld [vmem:[%s4761_s9 + $0x8] sm:$0xff]  }
 0xcad   :  { %3187 = vmatprep.mubr.msk.bf16.mxu1 %vm163_vm3, %v1097_v45  ;;  %v3550_v45 = vld [vmem:[#allocation10] sm:$0xff]   ;;  %3208 = vmatpush3.bf16.msra.mxu0 %v3552_v29 }
 0xcae   :  { %3209 = vmatprep.subr.bf16.mxu0 %v3893_v1 }
 0xcaf   :  { %3194 = vmatpush3.bf16.msra.mxu1 %v3549_v51 }
 0xcb0   :  { %3199 = vmatprep.subr.bf16.mxu1 %v3893_v1 }
 0xcb1   :  { %3210 = vmatpush3.bf16.msra.mxu0 %v3553_v10 }
 0xcb2   :  { %3188 = vmatmul.mubr.msk.bf16.gmra.mrb[20].mxu1 %vm163_vm3, %v1098_v46  ;;  %3211 = vmatprep.subr.bf16.mxu0 %v3893_v1 }
 0xcb3   :  { %3195 = vmatprep.mubr.msk.bf16.mxu1 %vm3894_vm0, %v3893_v1 }
 0xd7d   :  { %v3185_v44 = vpop.f32.mrb[16].mxu1 }
 0xd7e   :  { %v1161_v37 = vpop.f32.mrb[17].mxu1 }
 0xd7f   :  { %v3186_v50 = vpop.f32.mrb[18].mxu1 }
 0xd80   :  { %v3447_v53 = vpack.i.bf16 %v3186_v50, %v3185_v44  ;;  %v1164_v54 = vpop.f32.mrb[19].mxu1 }
 0xd82   :  { %3448 = vrot.lane.b32.xlu1 %v3447_v53, %s3885_s19  ;;  %v4381_v53 = vsub.s32 6, %v4085_v26 }
 0xd85   :  { %v3189_v55 = vpop.f32.mrb[20].mxu1 }
 0xd86   :  { %v1177_v57 = vpop.f32.mrb[21].mxu1 }
 0xd87   :  { %v3190_v58 = vpop.f32.mrb[22].mxu1 }
 0xd88   :  { %v3457_v59 = vpack.i.bf16 %v3190_v58, %v3189_v55  ;;  %v1180_v60 = vpop.f32.mrb[23].mxu1  ;;  %v1314_v55 = vrot.slane %v3724_v19, %v4381_v53  ;;  %v4385_v58 = vsub.s32 7, %v4085_v26  ;;  %v3555_v26 = vld [vmem:[%s4761_s9 + $0x18] sm:$0xff]  }
 0xd89   :  { %v3452_v61 = vpack.i.bf16 %v1180_v60, %v1177_v57 }
 0xd8a   :  { %3458 = vrot.lane.b32.xlu1 %v3457_v59, %s3899_s16 }
 0xd8b   :  { %3453 = vrot.lane.b32.xlu0 %v3452_v61, %s3900_s28 }
 0xdf4   :  { %v3449_v0 = vpop.permute.xlu1 %3448 }
 0xdf5   :  { %v3451_v2 = vunpack.i.h.bf16 %v3449_v0  ;;  %v3450_v3 = vunpack.i.l.bf16 %v3449_v0  ;;  %v1320_v0 = vrot.slane %v3724_v19, %v4385_v58 }
 0xdf7   :  { %v1216_v8 = vsel %vm335_vm5, %v1161_v37, %v3450_v3  ;;  %v1217_v9 = vsel %vm335_vm5, %v1164_v54, %v3451_v2 }
 0xdfc   :  { %v3459_v4 = vpop.permute.xlu1 %3458 }
 0xdfd   :  { %v3454_v5 = vpop.permute.xlu0 %3453  ;;  %v3461_v28 = vunpack.i.h.bf16 %v3459_v4  ;;  %v3460_v11 = vunpack.i.l.bf16 %v3459_v4 }
 0xdfe   :  { %v3456_v6 = vunpack.i.h.bf16 %v3454_v5  ;;  %v3455_v7 = vunpack.i.l.bf16 %v3454_v5 }
 0xe00   :  { %v1219_v12 = vsel %vm632_vm6, %v1217_v9, %v3456_v6  ;;  %v1218_v13 = vsel %vm632_vm6, %v1216_v8, %v3455_v7  ;;  %v3554_v6 = vld [vmem:[%s4761_s9 + $0x10] sm:$0xff]   ;;  %v4401_v7 = vld [vmem:[%s4762_s10 + $0x8] sm:$0xff] }
 0xe01   :  { %v1221_v15 = vsel %vm635_vm7, %v1219_v12, %v3461_v28  ;;  %v1220_v16 = vsel %vm635_vm7, %v1218_v13, %v3460_v11  ;;  %3212 = vmatpush3.bf16.msra.mxu0 %v3554_v6  ;;  %v1331_v8 = vrot.slane %v4401_v7, %v4209_v14 }
 0xe02   :  { %v1222_v17 = vpack.c.bf16 %v1221_v15, %v1220_v16  ;;  %3213 = vmatprep.subr.bf16.mxu0 %v3893_v1 }
 0xe04   :  { %3196 = vmatmul.mubr.msk.bf16.vlgmr.msra.gmra.mrb[24].mxu1 %vm250_vm4, %v1222_v17 }
 0xe05   :  { %3203 = vmatprep.mubr.msk.bf16.mxu1 %vm3894_vm0, %v3893_v1  ;;  %3200 = vmatpush3.bf16.msra.mxu1 %v3550_v45  ;;  %v3556_v45 = vld [vmem:[#allocation7 + $0x20] sm:$0xff]  }
 0xe06   :  { %3201 = vmatprep.subr.bf16.mxu1 %v3893_v1  ;;  %3214 = vmatpush3.bf16.msra.mxu0 %v3555_v26 }
 0xed7   :  { %v1276_v21 = vpop.f32.mrb[24].mxu1 }
 0xed8   :  { %v1277_v49 = vadd.f32 %v1276_v21, %v1226_v20  ;;  %v3197_v30 = vpop.f32.mrb[25].mxu1 }
 0xed9   :  { %v1279_v24 = vpop.f32.mrb[26].mxu1 }
 0xeda   :  { %v1280_v34 = vadd.f32 %v1279_v24, %v1226_v20  ;;  %v3198_v48 = vpop.f32.mrb[27].mxu1  ;;  %v1283_v25 = vadd.f32 %v1277_v49, %v4240_v62  ;;  %v1402_v20 = vrot.slane %v4401_v7, %v4358_v18 }
 0xedc   :  { %v1285_v31 = vsel %vm250_vm4, %v1283_v25, 0.0  ;;  %v1284_v32 = vadd.f32 %v1280_v34, %v4242_v63  ;;  %v3551_v63 = vld [vmem:[#allocation10 + $0x8] sm:$0xff]  }
 0xedd   :  { %1286 = vadd.xlane.f32.xlu0 %v1285_v31  ;;  %3202 = vmatpush3.bf16.msra.mxu1 %v3551_v63  ;;  %v3557_v63 = vld [vmem:[#allocation7 + $0x28] sm:$0xff]  }
 0xede   :  { %v1288_v33 = vsel %vm250_vm4, %v1284_v32, 0.0  ;;  %3219 = vmatprep.subr.bf16.mxu1 %v3893_v1 }
 0xedf   :  { %1289 = vadd.xlane.f32.xlu1 %v1288_v33 }
 0xf6a   :  { %v1287_v22 = vpop.xlane.xlu0 %1286 }
 0xf6b   :  { %v1291_v35 = vmul.f32 0.03125, %v1287_v22 }
 0xf6c   :  { %v1290_v36 = vpop.xlane.xlu1 %1289 }
 0xf6d   :  { %v1293_v23 = vsub.f32 %v1283_v25, %v1291_v35  ;;  %v1292_v38 = vmul.f32 0.03125, %v1290_v36 }
 0xf6f   :  { %v1294_v39 = vsub.f32 %v1284_v32, %v1292_v38  ;;  %v1295_v40 = vmul.f32 %v1293_v23, %v1293_v23 }
 0xf71   :  { %v1297_v42 = vsel %vm250_vm4, %v1295_v40, 0.0  ;;  %v1296_v43 = vmul.f32 %v1294_v39, %v1294_v39 }
 0xf72   :  { %1298 = vadd.xlane.f32.xlu0 %v1297_v42 }
 0xf73   :  { %v1300_v62 = vsel %vm250_vm4, %v1296_v43, 0.0 }
 0xf76   :  { %1301 = vadd.xlane.f32.xlu0 %v1300_v62 }
 0xfff   :  { %v1299_v46 = vpop.xlane.xlu0 %1298 }
0x1000   :  { %v1303_v47 = vmul.f32 0.03125, %v1299_v46 }
0x1002   :  { %v1305_v44 = vadd.f32 1e-05, %v1303_v47 }
0x1003   :  { %v1302_v37 = vpop.xlane.xlu0 %1301 }
0x1004   :  { %3640 = vrsqrt.f32 %v1305_v44  ;;  %v1304_v50 = vmul.f32 0.03125, %v1302_v37 }
0x1006   :  { %v1306_v51 = vadd.f32 1e-05, %v1304_v50  ;;  %v1502_v50 = vrot.slane %v4401_v7, %v4088_v27 }
0x1008   :  { %3642 = vrsqrt.f32 %v1306_v51 }
0x100e   :  { %v3641_v54 = vpop.eup %3640 }
0x100f   :  { %v1309_v57 = vmul.f32 %v3641_v54, %v1293_v23 }
0x1011   :  { %v1315_v60 = vmul.f32 %v1314_v55, %v1309_v57  ;;  %v1508_v57 = vrot.slane %v4401_v7, %v4224_v41 }
0x1012   :  { %v3643_v59 = vpop.eup %3642 }
0x1013   :  { %v1310_v61 = vmul.f32 %v3643_v59, %v1294_v39  ;;  %v1321_v3 = vadd.f32 %v1320_v0, %v1315_v60 }
0x1015   :  { %v1316_v2 = vmul.f32 %v1314_v55, %v1310_v61 }
0x1017   :  { %v1322_v4 = vadd.f32 %v1320_v0, %v1316_v2 }
0x1019   :  { %v1323_v5 = vpack.c.bf16 %v1322_v4, %v1321_v3 }
0x101b   :  { %3204 = vmatmul.mubr.msk.bf16.vlgmr.msra.gmra.mrb[28].mxu1 %vm250_vm4, %v1323_v5 }
0x101c   :  { %3223 = vmatprep.mubr.msk.bf16.mxu1 %vm3894_vm0, %v3893_v1  ;;  %3220 = vmatpush3.bf16.msra.mxu1 %v3556_v45  ;;  %v3726_v45 = vld [vmem:[%s4754_s2 + $0x18] sm:$0xff] }
0x101d   :  { %3221 = vmatprep.subr.bf16.mxu1 %v3893_v1 }
0x1020   :  { %3222 = vmatpush3.bf16.msra.mxu1 %v3557_v63 }
0x10ee   :  { %v1381_v9 = vpop.f32.mrb[28].mxu1 }
0x10ef   :  { %v1382_v28 = vadd.f32 %v1381_v9, %v1331_v8  ;;  %v3205_v11 = vpop.f32.mrb[29].mxu1 }
0x10f0   :  { %v1384_v12 = vpop.f32.mrb[30].mxu1 }
0x10f1   :  { %v1385_v13 = vadd.f32 %v1384_v12, %v1331_v8  ;;  %v3206_v15 = vpop.f32.mrb[31].mxu1  ;;  %v1388_v16 = vmax.f32 %v1382_v28, 0.0 }
0x10f3   :  { %v1389_v17 = vmax.f32 %v1385_v13, 0.0 }
0x10f5   :  { %v1390_v19 = vpack.c.bf16 %v1389_v17, %v1388_v16 }
0x10f7   :  { %3216 = vmatmul.mubr.msk.bf16.vlgmr.msra.gmra.mrb[28].mxu0 %vm163_vm3, %v1390_v19 }
0x11ca   :  { %v1464_v21 = vpop.f32.mrb[28].mxu0 }
0x11cb   :  { %v1465_v49 = vadd.f32 %v1464_v21, %v1402_v20  ;;  %v3217_v30 = vpop.f32.mrb[29].mxu0 }
0x11cc   :  { %v1467_v24 = vpop.f32.mrb[30].mxu0 }
0x11cd   :  { %v1468_v34 = vadd.f32 %v1467_v24, %v1402_v20  ;;  %v3218_v48 = vpop.f32.mrb[31].mxu0  ;;  %v1471_v25 = vadd.f32 %v1465_v49, %v1321_v3 }
0x11cf   :  { %v1473_v31 = vsel %vm250_vm4, %v1471_v25, 0.0  ;;  %v1472_v32 = vadd.f32 %v1468_v34, %v1322_v4  ;;  %v1520_v4 = vrot.slane %v4401_v7, %v4230_v52 }
0x11d0   :  { %1474 = vadd.xlane.f32.xlu1 %v1473_v31 }
0x11d1   :  { %v1476_v33 = vsel %vm250_vm4, %v1472_v32, 0.0 }
0x11d2   :  { %1477 = vadd.xlane.f32.xlu0 %v1476_v33 }
0x125d   :  { %v1475_v22 = vpop.xlane.xlu1 %1474 }
0x125e   :  { %v1479_v35 = vmul.f32 0.03125, %v1475_v22 }
0x125f   :  { %v1478_v36 = vpop.xlane.xlu0 %1477 }
0x1260   :  { %v1481_v23 = vsub.f32 %v1471_v25, %v1479_v35  ;;  %v1480_v38 = vmul.f32 0.03125, %v1478_v36 }
0x1262   :  { %v1482_v39 = vsub.f32 %v1472_v32, %v1480_v38  ;;  %v1483_v40 = vmul.f32 %v1481_v23, %v1481_v23 }
0x1264   :  { %v1485_v42 = vsel %vm250_vm4, %v1483_v40, 0.0  ;;  %v1484_v43 = vmul.f32 %v1482_v39, %v1482_v39  ;;  %v3725_v40 = vld [vmem:[%s4754_s2] sm:$0xff] }
0x1265   :  { %1486 = vadd.xlane.f32.xlu1 %v1485_v42 }
0x1266   :  { %v1488_v62 = vsel %vm250_vm4, %v1484_v43, 0.0 }
0x1267   :  { %1489 = vadd.xlane.f32.xlu0 %v1488_v62 }
0x12f2   :  { %v1487_v29 = vpop.xlane.xlu1 %1486 }
0x12f3   :  { %v1491_v10 = vmul.f32 0.03125, %v1487_v29  ;;  %v3727_v29 = vld [vmem:[%s4754_s2 + $0x8] sm:$0xff] }
0x12f4   :  { %v1490_v46 = vpop.xlane.xlu0 %1489 }
0x12f5   :  { %v1493_v47 = vadd.f32 1e-05, %v1491_v10  ;;  %v1492_v44 = vmul.f32 0.03125, %v1490_v46 }
0x12f7   :  { %3644 = vrsqrt.f32 %v1493_v47  ;;  %v1494_v37 = vadd.f32 1e-05, %v1492_v44  ;;  %v3728_v47 = vld [vmem:[%s4754_s2 + $0x10] sm:$0xff] }
0x12f9   :  { %3646 = vrsqrt.f32 %v1494_v37 }
0x1301   :  { %v3645_v51 = vpop.eup %3644 }
0x1302   :  { %v1497_v54 = vmul.f32 %v3645_v51, %v1481_v23 }
0x1303   :  { %v3647_v55 = vpop.eup %3646 }
0x1304   :  { %v1503_v59 = vmul.f32 %v1502_v50, %v1497_v54  ;;  %v1498_v60 = vmul.f32 %v3647_v55, %v1482_v39  ;;  %v3729_v55 = vld [vmem:[%s4754_s2 + $0x20] sm:$0xff] }
0x1306   :  { %v1504_v61 = vmul.f32 %v1502_v50, %v1498_v60  ;;  %v4417_v0 = vadd.f32 %v1508_v57, %v1503_v59 }
0x1308   :  { %v4419_v2 = vadd.f32 %v1508_v57, %v1504_v61 }
0x130a   :  { %v1511_v3 = vpack.c.bf16 %v4419_v2, %v4417_v0 }
0x130c   :  { %3224 = vmatmul.mubr.msk.bf16.vlgmr.msra.gmra.mrb[32].mxu1 %vm250_vm4, %v1511_v3  ;;  %v3730_v3 = vld [vmem:[%s4754_s2 + $0x28] sm:$0xff] }
0x13df   :  { %v1570_v5 = vpop.f32.mrb[32].mxu1 }
0x13e0   :  { %v3225_v6 = vpop.f32.mrb[33].mxu1  ;;  %v1571_v8 = vadd.f32 %v1570_v5, %v1520_v4  ;;  %v3731_v5 = vld [vmem:[%s4754_s2 + $0x30] sm:$0xff] }
0x13e1   :  { %v1573_v26 = vpop.f32.mrb[34].mxu1 }
0x13e2   :  { %v1574_v9 = vadd.f32 %v1573_v26, %v1520_v4  ;;  %v3226_v28 = vpop.f32.mrb[35].mxu1  ;;  %v3732_v26 = vld [vmem:[%s4754_s2 + $0x38] sm:$0xff] }
0x13e4   :  { %v3467_v11 = vpack.i.bf16 %v1574_v9, %v1571_v8  ;;  %v4426_v12 = vpack.c.bf16 %v1574_v9, %v1571_v8 }
0x13e6   :  { %3468 = vrot.lane.b32.xlu0 %v3467_v11, %s3897_s24  ;;  %3463 = vrot.lane.b32.xlu1 %v3467_v11, %s3896_s22 }
0x13e7   :  { %3235 = vmatprep.mubr.msk.bf16.mxu0 %vm335_vm5, %v4426_v12 }
0x13ea   :  { %3473 = vrot.lane.b32.xlu1 %v3467_v11, %s3895_s20 }
0x13ee   :  { %1610 = vrot.lane.b32.xlu1 %v4426_v12, %s3898_s27 }
0x1458   :  { %v3469_v13 = vpop.permute.xlu0 %3468  ;;  %v3464_v15 = vpop.permute.xlu1 %3463 }
0x1459   :  { %v3471_v16 = vunpack.i.h.bf16 %v3469_v13  ;;  %v3470_v17 = vunpack.i.l.bf16 %v3469_v13  ;;  %v3466_v19 = vunpack.i.h.bf16 %v3464_v15  ;;  %v3465_v20 = vunpack.i.l.bf16 %v3464_v15 }
0x145b   :  { %v4435_v21 = vpack.c.bf16 %v3471_v16, %v3470_v17  ;;  %v4437_v49 = vpack.c.bf16 %v3466_v19, %v3465_v20 }
0x145c   :  { %v3474_v30 = vpop.permute.xlu1 %3473 }
0x145d   :  { %v3476_v24 = vunpack.i.h.bf16 %v3474_v30  ;;  %v3475_v34 = vunpack.i.l.bf16 %v3474_v30  ;;  %1612 = vrot.lane.b32.xlu0 %v4437_v49, %s3898_s27  ;;  %1614 = vrot.lane.b32.xlu1 %v4435_v21, %s3898_s27 }
0x145f   :  { %v4443_v48 = vpack.c.bf16 %v3476_v24, %v3475_v34 }
0x1460   :  { %v1611_v25 = vpop.permute.xlu1 %1610 }
0x1461   :  { %v1631_v31 = vsel %vm335_vm5, %v1611_v25, 0  ;;  %1616 = vrot.lane.b32.xlu0 %v4443_v48, %s3898_s27  ;;  %3359 = vmatprep.subr.msk.bf16.mxu0 %vm335_vm5, %v1611_v25 }
0x1462   :  { %3228 = vmatpush3.bf16.xpose.msra.mxu0 %v1631_v31 }
0x14cf   :  { %v1613_v32 = vpop.permute.xlu0 %1612  ;;  %v1615_v22 = vpop.permute.xlu1 %1614 }
0x14d0   :  { %v1634_v33 = vsel %vm335_vm5, %v1613_v32, 0  ;;  %3360 = vmatprep.subr.msk.bf16.mxu0 %vm335_vm5, %v1613_v32  ;;  %v1637_v35 = vsel %vm335_vm5, %v1615_v22, 0 }
0x14d1   :  { %3230 = vmatpush3.bf16.xpose.msra.mxu0 %v1634_v33 }
0x14d2   :  { %3361 = vmatprep.subr.msk.bf16.mxu0 %vm335_vm5, %v1615_v22 }
0x14d3   :  { %v1617_v36 = vpop.permute.xlu0 %1616 }
0x14d4   :  { %v1640_v23 = vsel %vm335_vm5, %v1617_v36, 0 }
0x14d9   :  { %3232 = vmatpush3.bf16.xpose.msra.mxu0 %v1637_v35 }
0x14da   :  { %3362 = vmatprep.subr.msk.bf16.mxu0 %vm335_vm5, %v1617_v36 }
0x14e1   :  { %3234 = vmatpush3.bf16.xpose.msra.mxu0 %v1640_v23 }
0x14e2   :  { %3275 = vmatprep.subr.bf16.mxu0 %v3893_v1 }
0x14e8   :  { %3236 = vmatmul.mubr.msk.bf16.vlgmr.msra.gmra.mrb[32].mxu0 %vm335_vm5, %v4437_v49 }
0x14e9   :  { %3239 = vmatprep.mubr.msk.bf16.mxu0 %vm335_vm5, %v4435_v21 }
0x14f0   :  { %3240 = vmatmul.mubr.msk.bf16.gmra.mrb[36].mxu0 %vm335_vm5, %v4443_v48 }
0x14f1   :  { %3279 = vmatprep.mubr.msk.bf16.mxu0 %vm3894_vm0, %v3893_v1 }
0x15bb   :  { %v3237_v38 = vpop.f32.mrb[32].mxu0 }
0x15bc   :  { %v1676_v39 = vpop.f32.mrb[33].mxu0  ;;  %v1685_v44 = vadd.f32 %v3728_v47, %v3237_v38 }
0x15bd   :  { %v1677_v42 = vadd.f32 %v3725_v40, %v1676_v39  ;;  %v3238_v43 = vpop.f32.mrb[34].mxu0 }
0x15be   :  { %v1679_v62 = vpop.f32.mrb[35].mxu0  ;;  %v1688_v63 = vadd.f32 %v3726_v45, %v3238_v43  ;;  %v1713_v60 = vsel %vm163_vm3, %v1685_v44, -inf }
0x15bf   :  { %v1680_v10 = vadd.f32 %v3727_v29, %v1679_v62  ;;  %v1707_v46 = vsel %vm163_vm3, %v1677_v42, -inf }
0x15c0   :  { %1708 = vmax.xlane.f32.xlu1 %v1707_v46  ;;  %v1716_v51 = vsel %vm163_vm3, %v1688_v63, -inf }
0x15c1   :  { %v1710_v37 = vsel %vm163_vm3, %v1680_v10, -inf }
0x15c2   :  { %1711 = vmax.xlane.f32.xlu0 %v1710_v37 }
0x15c3   :  { %v3241_v50 = vpop.f32.mrb[36].mxu0 }
0x15c4   :  { %v1692_v54 = vpop.f32.mrb[37].mxu0  ;;  %1717 = vmax.xlane.f32.xlu1 %v1716_v51  ;;  %v1701_v6 = vadd.f32 %v3731_v5, %v3241_v50 }
0x15c5   :  { %v1693_v57 = vadd.f32 %v3729_v55, %v1692_v54  ;;  %v3242_v59 = vpop.f32.mrb[38].mxu0 }
0x15c6   :  { %v1695_v61 = vpop.f32.mrb[39].mxu0  ;;  %1714 = vmax.xlane.f32.xlu0 %v1713_v60  ;;  %v1704_v8 = vadd.f32 %v3732_v26, %v3242_v59  ;;  %v1725_v11 = vsel %vm163_vm3, %v1701_v6, -inf }
0x15c7   :  { %v1696_v4 = vadd.f32 %v3730_v3, %v1695_v61  ;;  %v1719_v9 = vsel %vm163_vm3, %v1693_v57, -inf }
0x15c8   :  { %v1728_v13 = vsel %vm163_vm3, %v1704_v8, -inf }
0x15c9   :  { %v1722_v28 = vsel %vm163_vm3, %v1696_v4, -inf }
0x15ca   :  { %1720 = vmax.xlane.f32.xlu0 %v1719_v9  ;;  %1723 = vmax.xlane.f32.xlu1 %v1722_v28 }
0x15ce   :  { %1726 = vmax.xlane.f32.xlu0 %v1725_v11  ;;  %1729 = vmax.xlane.f32.xlu1 %v1728_v13 }
0x15df   :  { %1801 = vrot.lane.b32.xlu1 %v4437_v49, %s3888_s26 }
0x15e4   :  { %1799 = vrot.lane.b32.xlu0 %v4426_v12, %s3888_s26 }
0x164d   :  { %v1709_v15 = vpop.xlane.xlu1 %1708 }
0x164e   :  { %v1731_v20 = vsub.f32 %v1677_v42, %v1709_v15 }
0x164f   :  { %v1712_v16 = vpop.xlane.xlu0 %1711 }
0x1650   :  { %v1732_v17 = vsub.f32 %v1680_v10, %v1712_v16  ;;  %v1739_v32 = vmul.f32 1.442695, %v1731_v20 }
0x1651   :  { %v1718_v19 = vpop.xlane.xlu1 %1717 }
0x1652   :  { %v1734_v30 = vsub.f32 %v1688_v63, %v1718_v19  ;;  %v1741_v24 = vmul.f32 1.442695, %v1732_v17 }
0x1653   :  { %v1715_v34 = vpop.xlane.xlu0 %1714 }
0x1654   :  { %v1745_v25 = vmul.f32 1.442695, %v1734_v30  ;;  %v1733_v31 = vsub.f32 %v1685_v44, %v1715_v34 }
0x1656   :  { %3648 = vpow2.f32 %v1745_v25  ;;  %v1743_v33 = vmul.f32 1.442695, %v1733_v31 }
0x1657   :  { %3650 = vpow2.f32 %v1741_v24  ;;  %v1721_v22 = vpop.xlane.xlu0 %1720  ;;  %v1724_v35 = vpop.xlane.xlu1 %1723 }
0x1658   :  { %3652 = vpow2.f32 %v1743_v33  ;;  %v1735_v49 = vsub.f32 %v1693_v57, %v1721_v22  ;;  %v1736_v12 = vsub.f32 %v1696_v4, %v1724_v35 }
0x1659   :  { %3654 = vpow2.f32 %v1739_v32 }
0x165a   :  { %v1747_v40 = vmul.f32 1.442695, %v1735_v49  ;;  %v1749_v62 = vmul.f32 1.442695, %v1736_v12 }
0x165b   :  { %v1727_v36 = vpop.xlane.xlu0 %1726  ;;  %v1730_v23 = vpop.xlane.xlu1 %1729 }
0x165c   :  { %v1737_v38 = vsub.f32 %v1701_v6, %v1727_v36  ;;  %v1738_v39 = vsub.f32 %v1704_v8, %v1730_v23 }
0x165e   :  { %v1751_v42 = vmul.f32 1.442695, %v1737_v38  ;;  %v1753_v43 = vmul.f32 1.442695, %v1738_v39 }
0x165f   :  { %v1800_v45 = vpop.permute.xlu0 %1799  ;;  %v1802_v10 = vpop.permute.xlu1 %1801 }
0x1660   :  { %v4500_v63 = vpop.eup %3648  ;;  %3656 = vpow2.f32 %v1751_v42  ;;  %3243 = vmatprep.subr.bf16.mxu1 %v1800_v45 }
0x1661   :  { %v3651_v29 = vpop.eup %3650  ;;  %3658 = vpow2.f32 %v1753_v43  ;;  %3244 = vmatpush3.bf16.msra.mxu1 %v1800_v45  ;;  %v1764_v46 = vsel %vm163_vm3, %v4500_v63, 0.0  ;;  %v3559_v45 = vld [vmem:[#allocation8 + $0x28] sm:$0xff]  }
0x1662   :  { %v3653_v47 = vpop.eup %3652  ;;  %3660 = vpow2.f32 %v1747_v40  ;;  %1765 = vadd.xlane.f32.xlu1 %v1764_v46  ;;  %3245 = vmatprep.subr.bf16.mxu1 %v1802_v10  ;;  %v1758_v50 = vsel %vm163_vm3, %v3651_v29, 0.0  ;;  %v3558_v40 = vld [vmem:[#allocation8 + $0x20] sm:$0xff]  }
0x1663   :  { %3662 = vpow2.f32 %v1749_v62  ;;  %v1761_v44 = vsel %vm163_vm3, %v3653_v47, 0.0  ;;  %v3655_v37 = vpop.eup %3654 }
0x1664   :  { %1762 = vadd.xlane.f32.xlu0 %v1761_v44  ;;  %v1755_v51 = vsel %vm163_vm3, %v3655_v37, 0.0 }
0x1665   :  { %3246 = vmatpush3.bf16.msra.mxu1 %v1802_v10 }
0x1666   :  { %1759 = vadd.xlane.f32.xlu1 %v1758_v50 }
0x1668   :  { %1756 = vadd.xlane.f32.xlu0 %v1755_v51 }
0x166a   :  { %v3657_v54 = vpop.eup %3656 }
0x166b   :  { %v3659_v55 = vpop.eup %3658  ;;  %v1773_v57 = vsel %vm163_vm3, %v3657_v54, 0.0 }
0x166c   :  { %v3661_v59 = vpop.eup %3660  ;;  %1774 = vadd.xlane.f32.xlu0 %v1773_v57  ;;  %v1776_v60 = vsel %vm163_vm3, %v3659_v55, 0.0 }
0x166d   :  { %v3663_v61 = vpop.eup %3662  ;;  %1777 = vadd.xlane.f32.xlu1 %v1776_v60  ;;  %v1767_v3 = vsel %vm163_vm3, %v3661_v59, 0.0 }
0x166e   :  { %v1770_v4 = vsel %vm163_vm3, %v3663_v61, 0.0 }
0x1670   :  { %1768 = vadd.xlane.f32.xlu0 %v1767_v3 }
0x1671   :  { %1771 = vadd.xlane.f32.xlu1 %v1770_v4 }
0x1682   :  { %1803 = vrot.lane.b32.xlu1 %v4435_v21, %s3888_s26 }
0x1686   :  { %1805 = vrot.lane.b32.xlu0 %v4443_v48, %s3888_s26 }
0x16ef   :  { %v1766_v5 = vpop.xlane.xlu1 %1765 }
0x16f1   :  { %v1763_v6 = vpop.xlane.xlu0 %1762 }
0x16f3   :  { %v1760_v26 = vpop.xlane.xlu1 %1759 }
0x16f4   :  { %3664 = vrcp.f32 %v1760_v26 }
0x16f5   :  { %v1757_v8 = vpop.xlane.xlu0 %1756 }
0x16f6   :  { %3666 = vrcp.f32 %v1757_v8 }
0x16f7   :  { %3668 = vrcp.f32 %v1763_v6 }
0x16f8   :  { %3670 = vrcp.f32 %v1766_v5 }
0x16f9   :  { %v1775_v9 = vpop.xlane.xlu0 %1774 }
0x16fa   :  { %v1778_v28 = vpop.xlane.xlu1 %1777  ;;  %3672 = vrcp.f32 %v1775_v9 }
0x16fd   :  { %v1769_v11 = vpop.xlane.xlu0 %1768 }
0x16fe   :  { %v3665_v13 = vpop.eup %3664  ;;  %3674 = vrcp.f32 %v1769_v11  ;;  %v1772_v15 = vpop.xlane.xlu1 %1771 }
0x16ff   :  { %3676 = vrcp.f32 %v1772_v15  ;;  %v1788_v48 = vmul.f32 %v3665_v13, %v3651_v29  ;;  %v1922_v13 = vrot.slane %v4401_v7, %v4381_v53 }
0x1700   :  { %v3667_v21 = vpop.eup %3666  ;;  %3678 = vrcp.f32 %v1778_v28 }
0x1701   :  { %v1787_v16 = vmul.f32 %v3667_v21, %v3655_v37  ;;  %v3669_v17 = vpop.eup %3668  ;;  %v1806_v24 = vpop.permute.xlu0 %1805 }
0x1702   :  { %v1804_v19 = vpop.permute.xlu1 %1803  ;;  %v3671_v30 = vpop.eup %3670  ;;  %v1789_v34 = vmul.f32 %v3669_v17, %v3653_v47 }
0x1703   :  { %3247 = vmatprep.subr.bf16.mxu1 %v1804_v19  ;;  %v1795_v20 = vpack.c.bf16 %v1788_v48, %v1787_v16  ;;  %v1790_v31 = vmul.f32 %v3671_v30, %v4500_v63 }
0x1704   :  { %3248 = vmatpush3.bf16.msra.mxu1 %v1804_v19  ;;  %v3673_v25 = vpop.eup %3672 }
0x1705   :  { %3249 = vmatprep.subr.bf16.mxu1 %v1806_v24  ;;  %3251 = vmatprep.mubr.msk.bf16.mxu1 %vm163_vm3, %v1795_v20  ;;  %v1796_v22 = vpack.c.bf16 %v1790_v31, %v1789_v34  ;;  %v1793_v23 = vmul.f32 %v3673_v25, %v3657_v54  ;;  %v3560_v25 = vld [vmem:[#allocation7 + $0x30] sm:$0xff]   ;;  %v3561_v31 = vld [vmem:[#allocation7 + $0x38] sm:$0xff]  }
0x1708   :  { %v3675_v32 = vpop.eup %3674  ;;  %3250 = vmatpush3.bf16.msra.mxu1 %v1806_v24 }
0x1709   :  { %v3677_v33 = vpop.eup %3676  ;;  %v1791_v35 = vmul.f32 %v3675_v32, %v3661_v59  ;;  %3259 = vmatprep.subr.bf16.mxu1 %v3893_v1 }
0x170a   :  { %v3679_v49 = vpop.eup %3678  ;;  %v1792_v12 = vmul.f32 %v3677_v33, %v3663_v61 }
0x170b   :  { %3252 = vmatmul.mubr.msk.bf16.vlgmr.msra.gmra.mrb[36].mxu1 %vm163_vm3, %v1796_v22  ;;  %v1794_v38 = vmul.f32 %v3679_v49, %v3659_v55 }
0x170c   :  { %v1797_v36 = vpack.c.bf16 %v1792_v12, %v1791_v35  ;;  %3260 = vmatpush3.bf16.msra.mxu1 %v3558_v40 }
0x170d   :  { %v1798_v39 = vpack.c.bf16 %v1794_v38, %v1793_v23  ;;  %3261 = vmatprep.subr.bf16.mxu1 %v3893_v1 }
0x170e   :  { %3255 = vmatprep.mubr.msk.bf16.mxu1 %vm163_vm3, %v1797_v36 }
0x1710   :  { %3262 = vmatpush3.bf16.msra.mxu1 %v3559_v45 }
0x1711   :  { %3267 = vmatprep.subr.bf16.mxu1 %v3893_v1 }
0x1713   :  { %3256 = vmatmul.mubr.msk.bf16.gmra.mrb[40].mxu1 %vm163_vm3, %v1798_v39  ;;  %v2028_v39 = vrot.slane %v4401_v7, %v4236_v56 }
0x1714   :  { %3263 = vmatprep.mubr.msk.bf16.mxu1 %vm3894_vm0, %v3893_v1 }
0x17de   :  { %v3253_v42 = vpop.f32.mrb[36].mxu1 }
0x17df   :  { %v1857_v43 = vpop.f32.mrb[37].mxu1 }
0x17e0   :  { %v3254_v62 = vpop.f32.mrb[38].mxu1 }
0x17e1   :  { %v3477_v63 = vpack.i.bf16 %v3254_v62, %v3253_v42  ;;  %v1860_v29 = vpop.f32.mrb[39].mxu1 }
0x17e3   :  { %3478 = vrot.lane.b32.xlu1 %v3477_v63, %s3885_s19 }
0x17e6   :  { %v3257_v10 = vpop.f32.mrb[40].mxu1 }
0x17e7   :  { %v1873_v46 = vpop.f32.mrb[41].mxu1 }
0x17e8   :  { %v3258_v47 = vpop.f32.mrb[42].mxu1 }
0x17e9   :  { %v3487_v44 = vpack.i.bf16 %v3258_v47, %v3257_v10  ;;  %v1876_v37 = vpop.f32.mrb[43].mxu1  ;;  %v3733_v10 = vld [vmem:[#allocation2] sm:$0xff]  }
0x17ea   :  { %v3482_v50 = vpack.i.bf16 %v1876_v37, %v1873_v46  ;;  %v4556_v46 = vld [vmem:[%s4762_s10 + $0x10] sm:$0xff] }
0x17eb   :  { %3488 = vrot.lane.b32.xlu1 %v3487_v44, %s3899_s16  ;;  %v2010_v47 = vrot.slane %v4556_v46, %v4088_v27 }
0x17ec   :  { %3483 = vrot.lane.b32.xlu0 %v3482_v50, %s3900_s28  ;;  %v2016_v50 = vrot.slane %v4556_v46, %v4224_v41 }
0x1855   :  { %v3479_v51 = vpop.permute.xlu1 %3478 }
0x1856   :  { %v3481_v54 = vunpack.i.h.bf16 %v3479_v51  ;;  %v3480_v55 = vunpack.i.l.bf16 %v3479_v51 }
0x1858   :  { %v1912_v3 = vsel %vm335_vm5, %v1857_v43, %v3480_v55  ;;  %v1913_v4 = vsel %vm335_vm5, %v1860_v29, %v3481_v54 }
0x185d   :  { %v3489_v57 = vpop.permute.xlu1 %3488 }
0x185e   :  { %v3484_v59 = vpop.permute.xlu0 %3483  ;;  %v3491_v5 = vunpack.i.h.bf16 %v3489_v57  ;;  %v3490_v6 = vunpack.i.l.bf16 %v3489_v57 }
0x185f   :  { %v3486_v60 = vunpack.i.h.bf16 %v3484_v59  ;;  %v3485_v61 = vunpack.i.l.bf16 %v3484_v59 }
0x1861   :  { %v1915_v26 = vsel %vm632_vm6, %v1913_v4, %v3486_v60  ;;  %v1914_v8 = vsel %vm632_vm6, %v1912_v3, %v3485_v61 }
0x1862   :  { %v1917_v9 = vsel %vm635_vm7, %v1915_v26, %v3491_v5  ;;  %v1916_v28 = vsel %vm635_vm7, %v1914_v8, %v3490_v6 }
0x1863   :  { %v1918_v11 = vpack.c.bf16 %v1917_v9, %v1916_v28 }
0x1865   :  { %3264 = vmatmul.mubr.msk.bf16.vlgmr.msra.gmra.mrb[44].mxu1 %vm250_vm4, %v1918_v11 }
0x1866   :  { %3271 = vmatprep.mubr.msk.bf16.mxu1 %vm3894_vm0, %v3893_v1  ;;  %3268 = vmatpush3.bf16.msra.mxu1 %v3560_v25 }
0x1867   :  { %3269 = vmatprep.subr.bf16.mxu1 %v3893_v1 }
0x186a   :  { %3270 = vmatpush3.bf16.msra.mxu1 %v3561_v31 }
0x1938   :  { %v1972_v15 = vpop.f32.mrb[44].mxu1 }
0x1939   :  { %v1973_v21 = vadd.f32 %v1972_v15, %v1922_v13  ;;  %v3265_v16 = vpop.f32.mrb[45].mxu1 }
0x193a   :  { %v1975_v48 = vpop.f32.mrb[46].mxu1 }
0x193b   :  { %v1979_v17 = vadd.f32 %v1973_v21, %v4417_v0  ;;  %v1976_v19 = vadd.f32 %v1975_v48, %v1922_v13  ;;  %v3266_v20 = vpop.f32.mrb[47].mxu1 }
0x193d   :  { %v1980_v30 = vadd.f32 %v1976_v19, %v4419_v2  ;;  %v1981_v24 = vsel %vm250_vm4, %v1979_v17, 0.0 }
0x193e   :  { %1982 = vadd.xlane.f32.xlu0 %v1981_v24 }
0x193f   :  { %v1984_v34 = vsel %vm250_vm4, %v1980_v30, 0.0 }
0x1940   :  { %1985 = vadd.xlane.f32.xlu1 %v1984_v34 }
0x1951   :  { %2085 = vrot.lane.b32.xlu1 %v3560_v25, %s3898_s27 }
0x1955   :  { %2092 = vrot.lane.b32.xlu1 %v2028_v39, %s3898_s27 }
0x19cb   :  { %v1983_v32 = vpop.xlane.xlu0 %1982 }
0x19cc   :  { %v1987_v0 = vmul.f32 0.03125, %v1983_v32 }
0x19cd   :  { %v1986_v33 = vpop.xlane.xlu1 %1985 }
0x19ce   :  { %v1989_v22 = vsub.f32 %v1979_v17, %v1987_v0  ;;  %v1988_v35 = vmul.f32 0.03125, %v1986_v33 }
0x19d0   :  { %v1990_v2 = vsub.f32 %v1980_v30, %v1988_v35  ;;  %v1991_v49 = vmul.f32 %v1989_v22, %v1989_v22 }
0x19d1   :  { %v2086_v38 = vpop.permute.xlu1 %2085 }
0x19d2   :  { %v1993_v12 = vsel %vm250_vm4, %v1991_v49, 0.0  ;;  %v1992_v36 = vmul.f32 %v1990_v2, %v1990_v2  ;;  %3276 = vmatpush3.bf16.msra.mxu0 %v2086_v38 }
0x19d3   :  { %1994 = vadd.xlane.f32.xlu0 %v1993_v12  ;;  %3277 = vmatprep.subr.bf16.mxu0 %v3893_v1 }
0x19d4   :  { %v1996_v23 = vsel %vm250_vm4, %v1992_v36, 0.0 }
0x19d5   :  { %v2093_v3 = vpop.permute.xlu1 %2092 }
0x19d7   :  { %1997 = vadd.xlane.f32.xlu0 %v1996_v23 }
0x19ed   :  { %2087 = vrot.lane.b32.xlu0 %v3561_v31, %s3898_s27 }
0x1a60   :  { %v1995_v40 = vpop.xlane.xlu0 %1994 }
0x1a61   :  { %v1999_v42 = vmul.f32 0.03125, %v1995_v40 }
0x1a63   :  { %v2001_v43 = vadd.f32 1e-05, %v1999_v42 }
0x1a64   :  { %v1998_v62 = vpop.xlane.xlu0 %1997 }
0x1a65   :  { %3680 = vrsqrt.f32 %v2001_v43  ;;  %v2000_v45 = vmul.f32 0.03125, %v1998_v62 }
0x1a67   :  { %v2002_v63 = vadd.f32 1e-05, %v2000_v45 }
0x1a68   :  { %v2088_v29 = vpop.permute.xlu0 %2087 }
0x1a69   :  { %3682 = vrsqrt.f32 %v2002_v63  ;;  %3278 = vmatpush3.bf16.msra.mxu0 %v2088_v29 }
0x1a6c   :  { %3280 = vmatmul.mubr.msk.bf16.vlgmr.msra.gmra.mrb[40].mxu0 %vm250_vm4, %v3733_v10 }
0x1a6f   :  { %v3681_v7 = vpop.eup %3680 }
0x1a70   :  { %v2005_v44 = vmul.f32 %v3681_v7, %v1989_v22 }
0x1a72   :  { %v2011_v51 = vmul.f32 %v2010_v47, %v2005_v44  ;;  %v3734_v44 = vld [vmem:[%s4755_s3] sm:$0xff] }
0x1a73   :  { %v3683_v37 = vpop.eup %3682 }
0x1a74   :  { %v2006_v54 = vmul.f32 %v3683_v37, %v1990_v2  ;;  %v4562_v57 = vadd.f32 %v2016_v50, %v2011_v51 }
0x1a76   :  { %v2012_v55 = vmul.f32 %v2010_v47, %v2006_v54  ;;  %v3735_v54 = vld [vmem:[%s4755_s3 + $0x18] sm:$0xff] }
0x1a78   :  { %v4564_v59 = vadd.f32 %v2016_v50, %v2012_v55 }
0x1a7a   :  { %v2019_v60 = vpack.c.bf16 %v4564_v59, %v4562_v57 }
0x1a7c   :  { %3272 = vmatmul.mubr.msk.bf16.vlgmr.msra.gmra.mrb[48].mxu1 %vm250_vm4, %v2019_v60  ;;  %v3736_v60 = vld [vmem:[%s4755_s3 + $0x8] sm:$0xff] }
0x1b3f   :  { %v2129_v61 = vpop.f32.mrb[40].mxu0 }
0x1b40   :  { %v3281_v27 = vpop.f32.mrb[41].mxu0  ;;  %v2130_v5 = vadd.f32 %v2129_v61, %v2093_v3 }
0x1b41   :  { %v2132_v4 = vpop.f32.mrb[42].mxu0  ;;  %v3737_v27 = vld [vmem:[%s4755_s3 + $0x10] sm:$0xff] }
0x1b42   :  { %v2133_v6 = vadd.f32 %v2132_v4, %v2093_v3  ;;  %v3282_v26 = vpop.f32.mrb[43].mxu0 }
0x1b44   :  { %v3492_v41 = vpack.i.bf16 %v2133_v6, %v2130_v5  ;;  %v4569_v8 = vpack.c.bf16 %v2133_v6, %v2130_v5 }
0x1b46   :  { %3493 = vrot.lane.b32.xlu1 %v3492_v41, %s3896_s22  ;;  %3498 = vrot.lane.b32.xlu0 %v3492_v41, %s3897_s24  ;;  %v2202_v9 = vsel %vm335_vm5, %v4569_v8, 0 }
0x1b47   :  { %3363 = vmatprep.subr.msk.bf16.mxu1 %vm335_vm5, %v4569_v8 }
0x1b48   :  { %3284 = vmatpush3.bf16.xpose.msra.mxu1 %v2202_v9  ;;  %v3738_v9 = vld [vmem:[%s4755_s3 + $0x20] sm:$0xff] }
0x1b4a   :  { %3503 = vrot.lane.b32.xlu1 %v3492_v41, %s3895_s20 }
0x1b4f   :  { %v2078_v28 = vpop.f32.mrb[48].mxu1 }
0x1b50   :  { %v3273_v11 = vpop.f32.mrb[49].mxu1  ;;  %v2079_v15 = vadd.f32 %v2078_v28, %v2028_v39 }
0x1b51   :  { %v2081_v13 = vpop.f32.mrb[50].mxu1 }
0x1b52   :  { %v2082_v21 = vadd.f32 %v2081_v13, %v2028_v39  ;;  %v3274_v16 = vpop.f32.mrb[51].mxu1 }
0x1b54   :  { %v3512_v48 = vpack.i.bf16 %v2082_v21, %v2079_v15  ;;  %v2161_v17 = vpack.c.bf16 %v2082_v21, %v2079_v15  ;;  %v3739_v21 = vld [vmem:[%s4755_s3 + $0x28] sm:$0xff] }
0x1b56   :  { %3513 = vrot.lane.b32.xlu1 %v3512_v48, %s3897_s24  ;;  %3508 = vrot.lane.b32.xlu0 %v3512_v48, %s3896_s22 }
0x1b57   :  { %3291 = vmatprep.mubr.msk.bf16.mxu1 %vm335_vm5, %v2161_v17 }
0x1b5a   :  { %3518 = vrot.lane.b32.xlu0 %v3512_v48, %s3895_s20  ;;  %v3740_v48 = vld [vmem:[%s4755_s3 + $0x30] sm:$0xff] }
0x1bb8   :  { %v3494_v19 = vpop.permute.xlu1 %3493  ;;  %v3499_v20 = vpop.permute.xlu0 %3498 }
0x1bb9   :  { %v3496_v30 = vunpack.i.h.bf16 %v3494_v19  ;;  %v3495_v24 = vunpack.i.l.bf16 %v3494_v19  ;;  %v3501_v34 = vunpack.i.h.bf16 %v3499_v20  ;;  %v3500_v25 = vunpack.i.l.bf16 %v3499_v20  ;;  %v3741_v19 = vld [vmem:[%s4755_s3 + $0x38] sm:$0xff] }
0x1bbb   :  { %v4582_v31 = vpack.c.bf16 %v3496_v30, %v3495_v24  ;;  %v4584_v32 = vpack.c.bf16 %v3501_v34, %v3500_v25 }
0x1bbc   :  { %v3504_v33 = vpop.permute.xlu1 %3503 }
0x1bbd   :  { %3364 = vmatprep.subr.msk.bf16.mxu1 %vm335_vm5, %v4582_v31  ;;  %v2205_v0 = vsel %vm335_vm5, %v4582_v31, 0  ;;  %v3506_v22 = vunpack.i.h.bf16 %v3504_v33  ;;  %v3505_v35 = vunpack.i.l.bf16 %v3504_v33  ;;  %v2208_v49 = vsel %vm335_vm5, %v4584_v32, 0 }
0x1bbe   :  { %3286 = vmatpush3.bf16.xpose.msra.mxu1 %v2205_v0 }
0x1bbf   :  { %3365 = vmatprep.subr.msk.bf16.mxu1 %vm335_vm5, %v4584_v32  ;;  %v4592_v2 = vpack.c.bf16 %v3506_v22, %v3505_v35 }
0x1bc1   :  { %v2211_v23 = vsel %vm335_vm5, %v4592_v2, 0 }
0x1bc6   :  { %3288 = vmatpush3.bf16.xpose.msra.mxu1 %v2208_v49 }
0x1bc7   :  { %3366 = vmatprep.subr.msk.bf16.mxu1 %vm335_vm5, %v4592_v2 }
0x1bc8   :  { %v3509_v12 = vpop.permute.xlu0 %3508  ;;  %v3514_v36 = vpop.permute.xlu1 %3513 }
0x1bc9   :  { %v3511_v38 = vunpack.i.h.bf16 %v3509_v12  ;;  %v3510_v39 = vunpack.i.l.bf16 %v3509_v12  ;;  %v3516_v40 = vunpack.i.h.bf16 %v3514_v36  ;;  %v3515_v42 = vunpack.i.l.bf16 %v3514_v36 }
0x1bcb   :  { %v2162_v43 = vpack.c.bf16 %v3511_v38, %v3510_v39  ;;  %v2163_v62 = vpack.c.bf16 %v3516_v40, %v3515_v42 }
0x1bcc   :  { %v3519_v45 = vpop.permute.xlu0 %3518 }
0x1bcd   :  { %v3521_v63 = vunpack.i.h.bf16 %v3519_v45  ;;  %v3520_v29 = vunpack.i.l.bf16 %v3519_v45 }
0x1bce   :  { %3290 = vmatpush3.bf16.xpose.msra.mxu1 %v2211_v23 }
0x1bcf   :  { %3331 = vmatprep.subr.bf16.mxu1 %v3893_v1  ;;  %v2164_v10 = vpack.c.bf16 %v3521_v63, %v3520_v29 }
0x1bd5   :  { %3292 = vmatmul.mubr.msk.bf16.vlgmr.msra.gmra.mrb[52].mxu1 %vm335_vm5, %v2162_v43 }
0x1bd6   :  { %3295 = vmatprep.mubr.msk.bf16.mxu1 %vm335_vm5, %v2163_v62 }
0x1bdd   :  { %3296 = vmatmul.mubr.msk.bf16.gmra.mrb[56].mxu1 %vm335_vm5, %v2164_v10 }
0x1bde   :  { %3339 = vmatprep.mubr.msk.bf16.mxu1 %vm3894_vm0, %v3893_v1 }
0x1ca8   :  { %v3293_v7 = vpop.f32.mrb[52].mxu1 }
0x1ca9   :  { %v2247_v47 = vpop.f32.mrb[53].mxu1  ;;  %v2256_v4 = vadd.f32 %v3737_v27, %v3293_v7 }
0x1caa   :  { %v2248_v37 = vadd.f32 %v3734_v44, %v2247_v47  ;;  %v3294_v50 = vpop.f32.mrb[54].mxu1 }
0x1cab   :  { %v2250_v51 = vpop.f32.mrb[55].mxu1  ;;  %v2259_v55 = vadd.f32 %v3735_v54, %v3294_v50  ;;  %v2284_v13 = vsel %vm163_vm3, %v2256_v4, -inf }
0x1cac   :  { %v2251_v61 = vadd.f32 %v3736_v60, %v2250_v51  ;;  %v2278_v3 = vsel %vm163_vm3, %v2248_v37, -inf }
0x1cad   :  { %2279 = vmax.xlane.f32.xlu1 %v2278_v3  ;;  %v2287_v26 = vsel %vm163_vm3, %v2259_v55, -inf }
0x1cae   :  { %v2281_v5 = vsel %vm163_vm3, %v2251_v61, -inf }
0x1caf   :  { %2282 = vmax.xlane.f32.xlu0 %v2281_v5 }
0x1cb0   :  { %v3297_v6 = vpop.f32.mrb[56].mxu1 }
0x1cb1   :  { %v2263_v41 = vpop.f32.mrb[57].mxu1  ;;  %2288 = vmax.xlane.f32.xlu1 %v2287_v26  ;;  %v2272_v17 = vadd.f32 %v3740_v48, %v3297_v6 }
0x1cb2   :  { %v2264_v28 = vadd.f32 %v3738_v9, %v2263_v41  ;;  %v3298_v11 = vpop.f32.mrb[58].mxu1 }
0x1cb3   :  { %v2266_v15 = vpop.f32.mrb[59].mxu1  ;;  %2285 = vmax.xlane.f32.xlu0 %v2284_v13  ;;  %v2275_v20 = vadd.f32 %v3741_v19, %v3298_v11  ;;  %v2296_v34 = vsel %vm163_vm3, %v2272_v17, -inf }
0x1cb4   :  { %v2267_v16 = vadd.f32 %v3739_v21, %v2266_v15  ;;  %v2290_v30 = vsel %vm163_vm3, %v2264_v28, -inf }
0x1cb5   :  { %v2299_v25 = vsel %vm163_vm3, %v2275_v20, -inf }
0x1cb6   :  { %v2293_v24 = vsel %vm163_vm3, %v2267_v16, -inf }
0x1cb7   :  { %2291 = vmax.xlane.f32.xlu0 %v2290_v30  ;;  %2294 = vmax.xlane.f32.xlu1 %v2293_v24 }
0x1cbb   :  { %2297 = vmax.xlane.f32.xlu0 %v2296_v34  ;;  %2300 = vmax.xlane.f32.xlu1 %v2299_v25 }
0x1ccc   :  { %2376 = vrot.lane.b32.xlu1 %v4582_v31, %s3898_s27 }
0x1cd1   :  { %2374 = vrot.lane.b32.xlu0 %v4569_v8, %s3898_s27 }
0x1d3a   :  { %v2280_v0 = vpop.xlane.xlu1 %2279 }
0x1d3b   :  { %v2302_v49 = vsub.f32 %v2248_v37, %v2280_v0 }
0x1d3c   :  { %v2283_v33 = vpop.xlane.xlu0 %2282 }
0x1d3d   :  { %v2303_v22 = vsub.f32 %v2251_v61, %v2283_v33  ;;  %v2310_v40 = vmul.f32 1.442695, %v2302_v49 }
0x1d3e   :  { %v2289_v35 = vpop.xlane.xlu1 %2288 }
0x1d3f   :  { %v2305_v12 = vsub.f32 %v2259_v55, %v2289_v35  ;;  %v2312_v36 = vmul.f32 1.442695, %v2303_v22 }
0x1d40   :  { %v2286_v23 = vpop.xlane.xlu0 %2285 }
0x1d41   :  { %v2316_v38 = vmul.f32 1.442695, %v2305_v12  ;;  %v2304_v39 = vsub.f32 %v2256_v4, %v2286_v23 }
0x1d43   :  { %3684 = vpow2.f32 %v2316_v38  ;;  %v2314_v42 = vmul.f32 1.442695, %v2304_v39 }
0x1d44   :  { %3686 = vpow2.f32 %v2312_v36  ;;  %v2292_v43 = vpop.xlane.xlu0 %2291  ;;  %v2295_v62 = vpop.xlane.xlu1 %2294 }
0x1d45   :  { %3688 = vpow2.f32 %v2314_v42  ;;  %v2306_v31 = vsub.f32 %v2264_v28, %v2292_v43  ;;  %v2307_v8 = vsub.f32 %v2267_v16, %v2295_v62 }
0x1d46   :  { %3690 = vpow2.f32 %v2310_v40 }
0x1d47   :  { %v2318_v7 = vmul.f32 1.442695, %v2306_v31  ;;  %v2320_v37 = vmul.f32 1.442695, %v2307_v8 }
0x1d48   :  { %v2298_v45 = vpop.xlane.xlu0 %2297  ;;  %v2301_v63 = vpop.xlane.xlu1 %2300 }
0x1d49   :  { %v2308_v29 = vsub.f32 %v2272_v17, %v2298_v45  ;;  %v2309_v10 = vsub.f32 %v2275_v20, %v2301_v63 }
0x1d4b   :  { %v2322_v47 = vmul.f32 1.442695, %v2308_v29  ;;  %v2324_v44 = vmul.f32 1.442695, %v2309_v10  ;;  %v3562_v29 = vld [vmem:[#allocation8 + $0x30] sm:$0xff]  }
0x1d4c   :  { %v2375_v50 = vpop.permute.xlu0 %2374  ;;  %v2377_v55 = vpop.permute.xlu1 %2376 }
0x1d4d   :  { %v4642_v51 = vpop.eup %3684  ;;  %3692 = vpow2.f32 %v2322_v47  ;;  %3299 = vmatprep.subr.bf16.mxu0 %v2375_v50 }
0x1d4e   :  { %v3687_v54 = vpop.eup %3686  ;;  %3694 = vpow2.f32 %v2324_v44  ;;  %3300 = vmatpush3.bf16.msra.mxu0 %v2375_v50  ;;  %v2335_v60 = vsel %vm163_vm3, %v4642_v51, 0.0  ;;  %v3563_v44 = vld [vmem:[#allocation8 + $0x38] sm:$0xff]  }
0x1d4f   :  { %v3689_v61 = vpop.eup %3688  ;;  %3696 = vpow2.f32 %v2318_v7  ;;  %2336 = vadd.xlane.f32.xlu1 %v2335_v60  ;;  %3301 = vmatprep.subr.bf16.mxu0 %v2377_v55  ;;  %v2329_v4 = vsel %vm163_vm3, %v3687_v54, 0.0 }
0x1d50   :  { %3698 = vpow2.f32 %v2320_v37  ;;  %v2332_v3 = vsel %vm163_vm3, %v3689_v61, 0.0  ;;  %v3691_v27 = vpop.eup %3690 }
0x1d51   :  { %2333 = vadd.xlane.f32.xlu0 %v2332_v3  ;;  %v2326_v5 = vsel %vm163_vm3, %v3691_v27, 0.0 }
0x1d52   :  { %3302 = vmatpush3.bf16.msra.mxu0 %v2377_v55 }
0x1d53   :  { %2330 = vadd.xlane.f32.xlu1 %v2329_v4 }
0x1d55   :  { %2327 = vadd.xlane.f32.xlu0 %v2326_v5 }
0x1d57   :  { %v3693_v6 = vpop.eup %3692 }
0x1d58   :  { %v3695_v26 = vpop.eup %3694  ;;  %v2344_v41 = vsel %vm163_vm3, %v3693_v6, 0.0 }
0x1d59   :  { %v3697_v9 = vpop.eup %3696  ;;  %2345 = vadd.xlane.f32.xlu0 %v2344_v41  ;;  %v2347_v28 = vsel %vm163_vm3, %v3695_v26, 0.0 }
0x1d5a   :  { %v3699_v11 = vpop.eup %3698  ;;  %2348 = vadd.xlane.f32.xlu1 %v2347_v28  ;;  %v2338_v13 = vsel %vm163_vm3, %v3697_v9, 0.0 }
0x1d5b   :  { %v2341_v15 = vsel %vm163_vm3, %v3699_v11, 0.0 }
0x1d5d   :  { %2339 = vadd.xlane.f32.xlu0 %v2338_v13 }
0x1d5e   :  { %2342 = vadd.xlane.f32.xlu1 %v2341_v15 }
0x1d6f   :  { %2378 = vrot.lane.b32.xlu1 %v4584_v32, %s3898_s27 }
0x1d73   :  { %2380 = vrot.lane.b32.xlu0 %v4592_v2, %s3898_s27 }
0x1ddc   :  { %v2337_v21 = vpop.xlane.xlu1 %2336 }
0x1dde   :  { %v2334_v16 = vpop.xlane.xlu0 %2333 }
0x1de0   :  { %v2331_v48 = vpop.xlane.xlu1 %2330 }
0x1de1   :  { %3700 = vrcp.f32 %v2331_v48 }
0x1de2   :  { %v2328_v17 = vpop.xlane.xlu0 %2327 }
0x1de3   :  { %3702 = vrcp.f32 %v2328_v17 }
0x1de4   :  { %3704 = vrcp.f32 %v2334_v16 }
0x1de5   :  { %3706 = vrcp.f32 %v2337_v21 }
0x1de6   :  { %v2346_v19 = vpop.xlane.xlu0 %2345 }
0x1de7   :  { %v2349_v20 = vpop.xlane.xlu1 %2348  ;;  %3708 = vrcp.f32 %v2346_v19 }
0x1dea   :  { %v2340_v30 = vpop.xlane.xlu0 %2339 }
0x1deb   :  { %v3701_v24 = vpop.eup %3700  ;;  %3710 = vrcp.f32 %v2340_v30  ;;  %v2343_v34 = vpop.xlane.xlu1 %2342 }
0x1dec   :  { %3712 = vrcp.f32 %v2343_v34  ;;  %v2359_v2 = vmul.f32 %v3701_v24, %v3687_v54 }
0x1ded   :  { %v3703_v32 = vpop.eup %3702  ;;  %3714 = vrcp.f32 %v2349_v20  ;;  %v3742_v20 = vld [vmem:[%s4762_s10 + $0x8] sm:$0xff] }
0x1dee   :  { %v2358_v25 = vmul.f32 %v3703_v32, %v3691_v27  ;;  %v3705_v0 = vpop.eup %3704  ;;  %v2381_v49 = vpop.permute.xlu0 %2380  ;;  %v2497_v30 = vrot.slane %v3742_v20, %v4385_v58 }
0x1def   :  { %v2379_v33 = vpop.permute.xlu1 %2378  ;;  %v3707_v35 = vpop.eup %3706  ;;  %v2360_v12 = vmul.f32 %v3705_v0, %v3689_v61 }
0x1df0   :  { %3303 = vmatprep.subr.bf16.mxu0 %v2379_v33  ;;  %v2366_v22 = vpack.c.bf16 %v2359_v2, %v2358_v25  ;;  %v2361_v23 = vmul.f32 %v3707_v35, %v4642_v51 }
0x1df1   :  { %3304 = vmatpush3.bf16.msra.mxu0 %v2379_v33  ;;  %v3709_v36 = vpop.eup %3708 }
0x1df2   :  { %3305 = vmatprep.subr.bf16.mxu0 %v2381_v49  ;;  %3307 = vmatprep.mubr.msk.bf16.mxu0 %vm163_vm3, %v2366_v22  ;;  %v2367_v40 = vpack.c.bf16 %v2361_v23, %v2360_v12  ;;  %v2364_v8 = vmul.f32 %v3709_v36, %v3693_v6 }
0x1df5   :  { %v3711_v38 = vpop.eup %3710  ;;  %3306 = vmatpush3.bf16.msra.mxu0 %v2381_v49 }
0x1df6   :  { %v3713_v39 = vpop.eup %3712  ;;  %v2362_v42 = vmul.f32 %v3711_v38, %v3697_v9  ;;  %3315 = vmatprep.subr.bf16.mxu0 %v3893_v1 }
0x1df7   :  { %v3715_v43 = vpop.eup %3714  ;;  %v2363_v62 = vmul.f32 %v3713_v39, %v3699_v11 }
0x1df8   :  { %3308 = vmatmul.mubr.msk.bf16.vlgmr.msra.gmra.mrb[44].mxu0 %vm163_vm3, %v2367_v40  ;;  %v2365_v45 = vmul.f32 %v3715_v43, %v3695_v26 }
0x1df9   :  { %v2368_v31 = vpack.c.bf16 %v2363_v62, %v2362_v42  ;;  %3316 = vmatpush3.bf16.msra.mxu0 %v3562_v29 }
0x1dfa   :  { %v2369_v63 = vpack.c.bf16 %v2365_v45, %v2364_v8  ;;  %3317 = vmatprep.subr.bf16.mxu0 %v3893_v1  ;;  %v3566_v8 = vld [vmem:[%s4761_s9 + $0x20] sm:$0xff]   ;;  %v3567_v45 = vld [vmem:[%s4761_s9 + $0x28] sm:$0xff]  }
0x1dfb   :  { %3311 = vmatprep.mubr.msk.bf16.mxu0 %vm163_vm3, %v2368_v31  ;;  %v3565_v31 = vld [vmem:[#allocation10 + $0x18] sm:$0xff]   ;;  %3332 = vmatpush3.bf16.msra.mxu1 %v3566_v8  ;;  %v2775_v8 = vrot.slane %v4556_v46, %v4230_v52 }
0x1dfc   :  { %3333 = vmatprep.subr.bf16.mxu1 %v3893_v1 }
0x1dfd   :  { %3318 = vmatpush3.bf16.msra.mxu0 %v3563_v44 }
0x1dfe   :  { %3323 = vmatprep.subr.bf16.mxu0 %v3893_v1 }
0x1dff   :  { %3334 = vmatpush3.bf16.msra.mxu1 %v3567_v45 }
0x1e00   :  { %3312 = vmatmul.mubr.msk.bf16.gmra.mrb[48].mxu0 %vm163_vm3, %v2369_v63  ;;  %3335 = vmatprep.subr.bf16.mxu1 %v3893_v1 }
0x1e01   :  { %3319 = vmatprep.mubr.msk.bf16.mxu0 %vm3894_vm0, %v3893_v1 }
0x1ecb   :  { %v3309_v10 = vpop.f32.mrb[44].mxu0 }
0x1ecc   :  { %v2432_v7 = vpop.f32.mrb[45].mxu0 }
0x1ecd   :  { %v3310_v47 = vpop.f32.mrb[46].mxu0 }
0x1ece   :  { %v3522_v37 = vpack.i.bf16 %v3310_v47, %v3309_v10  ;;  %v2435_v50 = vpop.f32.mrb[47].mxu0 }
0x1ed0   :  { %3523 = vrot.lane.b32.xlu1 %v3522_v37, %s3885_s19 }
0x1ed3   :  { %v3313_v51 = vpop.f32.mrb[48].mxu0 }
0x1ed4   :  { %v2448_v54 = vpop.f32.mrb[49].mxu0 }
0x1ed5   :  { %v3314_v55 = vpop.f32.mrb[50].mxu0 }
0x1ed6   :  { %v3532_v60 = vpack.i.bf16 %v3314_v55, %v3313_v51  ;;  %v2451_v61 = vpop.f32.mrb[51].mxu0  ;;  %v2591_v55 = vrot.slane %v4556_v46, %v4358_v18  ;;  %v3569_v18 = vld [vmem:[%s4761_s9 + $0x38] sm:$0xff]  }
0x1ed7   :  { %v3527_v3 = vpack.i.bf16 %v2451_v61, %v2448_v54 }
0x1ed8   :  { %3533 = vrot.lane.b32.xlu1 %v3532_v60, %s3899_s16 }
0x1ed9   :  { %3528 = vrot.lane.b32.xlu0 %v3527_v3, %s3900_s28 }
0x1f42   :  { %v3524_v27 = vpop.permute.xlu1 %3523 }
0x1f43   :  { %v3526_v4 = vunpack.i.h.bf16 %v3524_v27  ;;  %v3525_v5 = vunpack.i.l.bf16 %v3524_v27 }
0x1f45   :  { %v2487_v28 = vsel %vm335_vm5, %v2432_v7, %v3525_v5  ;;  %v2488_v11 = vsel %vm335_vm5, %v2435_v50, %v3526_v4  ;;  %v2585_v50 = vrot.slane %v4556_v46, %v4209_v14  ;;  %v3568_v14 = vld [vmem:[%s4761_s9 + $0x30] sm:$0xff]  }
0x1f46   :  { %3336 = vmatpush3.bf16.msra.mxu1 %v3568_v14 }
0x1f47   :  { %3337 = vmatprep.subr.bf16.mxu1 %v3893_v1 }
0x1f4a   :  { %v3534_v6 = vpop.permute.xlu1 %3533  ;;  %3338 = vmatpush3.bf16.msra.mxu1 %v3569_v18 }
0x1f4b   :  { %v3529_v26 = vpop.permute.xlu0 %3528  ;;  %v3536_v13 = vunpack.i.h.bf16 %v3534_v6  ;;  %v3535_v15 = vunpack.i.l.bf16 %v3534_v6  ;;  %v2603_v6 = vrot.slane %v4556_v46, %v4381_v53 }
0x1f4c   :  { %v3531_v41 = vunpack.i.h.bf16 %v3529_v26  ;;  %v3530_v9 = vunpack.i.l.bf16 %v3529_v26 }
0x1f4e   :  { %v2490_v21 = vsel %vm632_vm6, %v2488_v11, %v3531_v41  ;;  %v2489_v16 = vsel %vm632_vm6, %v2487_v28, %v3530_v9 }
0x1f4f   :  { %v2492_v48 = vsel %vm635_vm7, %v2490_v21, %v3536_v13  ;;  %v2491_v17 = vsel %vm635_vm7, %v2489_v16, %v3535_v15 }
0x1f50   :  { %v2493_v19 = vpack.c.bf16 %v2492_v48, %v2491_v17  ;;  %v2675_v48 = vrot.slane %v4556_v46, %v4385_v58 }
0x1f52   :  { %3320 = vmatmul.mubr.msk.bf16.vlgmr.msra.gmra.mrb[52].mxu0 %vm250_vm4, %v2493_v19 }
0x1f53   :  { %3327 = vmatprep.mubr.msk.bf16.mxu0 %vm3894_vm0, %v3893_v1 }
0x2025   :  { %v2547_v24 = vpop.f32.mrb[52].mxu0 }
0x2026   :  { %v2548_v34 = vadd.f32 %v2547_v24, %v2497_v30  ;;  %v3321_v32 = vpop.f32.mrb[53].mxu0 }
0x2027   :  { %v2550_v25 = vpop.f32.mrb[54].mxu0 }
0x2028   :  { %v2554_v2 = vadd.f32 %v2548_v34, %v4562_v57  ;;  %v2551_v0 = vadd.f32 %v2550_v25, %v2497_v30  ;;  %v3322_v33 = vpop.f32.mrb[55].mxu0 }
0x202a   :  { %v2555_v22 = vadd.f32 %v2551_v0, %v4564_v59  ;;  %v2556_v35 = vsel %vm250_vm4, %v2554_v2, 0.0  ;;  %v3564_v59 = vld [vmem:[#allocation10 + $0x10] sm:$0xff]  }
0x202b   :  { %2557 = vadd.xlane.f32.xlu0 %v2556_v35  ;;  %3324 = vmatpush3.bf16.msra.mxu0 %v3564_v59 }
0x202c   :  { %v2559_v49 = vsel %vm250_vm4, %v2555_v22, 0.0  ;;  %3325 = vmatprep.subr.bf16.mxu0 %v3893_v1 }
0x202d   :  { %2560 = vadd.xlane.f32.xlu1 %v2559_v49 }
0x202f   :  { %3326 = vmatpush3.bf16.msra.mxu0 %v3565_v31 }
0x2030   :  { %3343 = vmatprep.subr.bf16.mxu0 %v3893_v1 }
0x20b8   :  { %v2558_v12 = vpop.xlane.xlu0 %2557 }
0x20b9   :  { %v2562_v36 = vmul.f32 0.03125, %v2558_v12 }
0x20ba   :  { %v2561_v23 = vpop.xlane.xlu1 %2560 }
0x20bb   :  { %v2564_v38 = vsub.f32 %v2554_v2, %v2562_v36  ;;  %v2563_v39 = vmul.f32 0.03125, %v2561_v23 }
0x20bd   :  { %v2565_v40 = vsub.f32 %v2555_v22, %v2563_v39  ;;  %v2566_v42 = vmul.f32 %v2564_v38, %v2564_v38  ;;  %v3570_v39 = vld [vmem:[%s4763_s11] sm:$0xff]  }
0x20bf   :  { %v2568_v43 = vsel %vm250_vm4, %v2566_v42, 0.0  ;;  %v2567_v57 = vmul.f32 %v2565_v40, %v2565_v40 }
0x20c0   :  { %2569 = vadd.xlane.f32.xlu0 %v2568_v43 }
0x20c1   :  { %v2571_v62 = vsel %vm250_vm4, %v2567_v57, 0.0 }
0x20c4   :  { %2572 = vadd.xlane.f32.xlu0 %v2571_v62 }
0x214d   :  { %v2570_v63 = vpop.xlane.xlu0 %2569 }
0x214e   :  { %v2574_v29 = vmul.f32 0.03125, %v2570_v63 }
0x2150   :  { %v2576_v10 = vadd.f32 1e-05, %v2574_v29 }
0x2151   :  { %v2573_v7 = vpop.xlane.xlu0 %2572 }
0x2152   :  { %3716 = vrsqrt.f32 %v2576_v10  ;;  %v2575_v47 = vmul.f32 0.03125, %v2573_v7  ;;  %v2781_v7 = vrot.slane %v4556_v46, %v4236_v56 }
0x2154   :  { %v2577_v44 = vadd.f32 1e-05, %v2575_v47 }
0x2156   :  { %3718 = vrsqrt.f32 %v2577_v44 }
0x215c   :  { %v3717_v37 = vpop.eup %3716 }
0x215d   :  { %v2580_v51 = vmul.f32 %v3717_v37, %v2564_v38 }
0x215f   :  { %v2586_v60 = vmul.f32 %v2585_v50, %v2580_v51  ;;  %v2961_v51 = vld [vmem:[%s4764_s12] ss:$0 sm:$0xff] }
0x2160   :  { %v3719_v54 = vpop.eup %3718 }
0x2161   :  { %v2581_v61 = vmul.f32 %v3719_v54, %v2565_v40  ;;  %v2592_v27 = vadd.f32 %v2591_v55, %v2586_v60  ;;  %v3571_v40 = vld [vmem:[%s4763_s11 + $0x8] sm:$0xff]  }
0x2163   :  { %v2587_v3 = vmul.f32 %v2585_v50, %v2581_v61 }
0x2165   :  { %v2593_v4 = vadd.f32 %v2591_v55, %v2587_v3 }
0x2167   :  { %v2594_v5 = vpack.c.bf16 %v2593_v4, %v2592_v27 }
0x2169   :  { %3328 = vmatmul.mubr.msk.bf16.vlgmr.msra.gmra.mrb[56].mxu0 %vm250_vm4, %v2594_v5 }
0x216a   :  { %3347 = vmatprep.mubr.msk.bf16.mxu0 %vm3894_vm0, %v3893_v1  ;;  %3344 = vmatpush3.bf16.msra.mxu0 %v3570_v39 }
0x216b   :  { %3345 = vmatprep.subr.bf16.mxu0 %v3893_v1 }
0x216e   :  { %3346 = vmatpush3.bf16.msra.mxu0 %v3571_v40 }
0x223c   :  { %v2653_v26 = vpop.f32.mrb[56].mxu0 }
0x223d   :  { %v2654_v41 = vadd.f32 %v2653_v26, %v2603_v6  ;;  %v3329_v9 = vpop.f32.mrb[57].mxu0 }
0x223e   :  { %v2656_v28 = vpop.f32.mrb[58].mxu0 }
0x223f   :  { %v2657_v11 = vadd.f32 %v2656_v28, %v2603_v6  ;;  %v3330_v13 = vpop.f32.mrb[59].mxu0  ;;  %v2660_v15 = vmax.f32 %v2654_v41, 0.0 }
0x2241   :  { %v2661_v21 = vmax.f32 %v2657_v11, 0.0 }
0x2243   :  { %v2662_v16 = vpack.c.bf16 %v2661_v21, %v2660_v15 }
0x2245   :  { %3340 = vmatmul.mubr.msk.bf16.vlgmr.msra.gmra.mrb[60].mxu1 %vm163_vm3, %v2662_v16 }
0x2318   :  { %v2737_v17 = vpop.f32.mrb[60].mxu1 }
0x2319   :  { %v2738_v19 = vadd.f32 %v2737_v17, %v2675_v48  ;;  %v3341_v20 = vpop.f32.mrb[61].mxu1 }
0x231a   :  { %v2740_v30 = vpop.f32.mrb[62].mxu1 }
0x231b   :  { %v2744_v24 = vadd.f32 %v2738_v19, %v2592_v27  ;;  %v2741_v53 = vadd.f32 %v2740_v30, %v2675_v48  ;;  %v3342_v34 = vpop.f32.mrb[63].mxu1 }
0x231d   :  { %v2745_v32 = vadd.f32 %v2741_v53, %v2593_v4  ;;  %v2746_v25 = vsel %vm250_vm4, %v2744_v24, 0.0 }
0x231e   :  { %2747 = vadd.xlane.f32.xlu1 %v2746_v25 }
0x231f   :  { %v2749_v2 = vsel %vm250_vm4, %v2745_v32, 0.0 }
0x2320   :  { %2750 = vadd.xlane.f32.xlu0 %v2749_v2 }
0x23ab   :  { %v2748_v0 = vpop.xlane.xlu1 %2747 }
0x23ac   :  { %v2752_v33 = vmul.f32 0.03125, %v2748_v0 }
0x23ad   :  { %v2751_v22 = vpop.xlane.xlu0 %2750 }
0x23ae   :  { %v2754_v35 = vsub.f32 %v2744_v24, %v2752_v33  ;;  %v2753_v49 = vmul.f32 0.03125, %v2751_v22 }
0x23b0   :  { %v2755_v58 = vsub.f32 %v2745_v32, %v2753_v49  ;;  %v2756_v12 = vmul.f32 %v2754_v35, %v2754_v35 }
0x23b2   :  { %v2758_v36 = vsel %vm250_vm4, %v2756_v12, 0.0  ;;  %v2757_v23 = vmul.f32 %v2755_v58, %v2755_v58 }
0x23b3   :  { %2759 = vadd.xlane.f32.xlu1 %v2758_v36 }
0x23b4   :  { %v2761_v38 = vsel %vm250_vm4, %v2757_v23, 0.0 }
0x23b5   :  { %2762 = vadd.xlane.f32.xlu0 %v2761_v38 }
0x2440   :  { %v2760_v42 = vpop.xlane.xlu1 %2759 }
0x2441   :  { %v2764_v43 = vmul.f32 0.03125, %v2760_v42 }
0x2442   :  { %v2763_v57 = vpop.xlane.xlu0 %2762 }
0x2443   :  { %v2766_v62 = vadd.f32 1e-05, %v2764_v43  ;;  %v2765_v59 = vmul.f32 0.03125, %v2763_v57 }
0x2445   :  { %3720 = vrsqrt.f32 %v2766_v62  ;;  %v2767_v31 = vadd.f32 1e-05, %v2765_v59 }
0x2447   :  { %3722 = vrsqrt.f32 %v2767_v31 }
0x244f   :  { %v3721_v45 = vpop.eup %3720 }
0x2450   :  { %v2770_v63 = vmul.f32 %v3721_v45, %v2754_v35 }
0x2451   :  { %v3723_v29 = vpop.eup %3722 }
0x2452   :  { %v2776_v1 = vmul.f32 %v2775_v8, %v2770_v63  ;;  %v2771_v10 = vmul.f32 %v3723_v29, %v2755_v58 }
0x2454   :  { %v2777_v47 = vmul.f32 %v2775_v8, %v2771_v10  ;;  %v2782_v44 = vadd.f32 %v2781_v7, %v2776_v1 }
0x2456   :  { %v2783_v37 = vadd.f32 %v2781_v7, %v2777_v47 }
0x2458   :  { %v2784_v50 = vpack.c.bf16 %v2783_v37, %v2782_v44 }
0x245a   :  { %3348 = vmatmul.mubr.msk.bf16.vlgmr.msra.gmra.mrb[60].mxu0 %vm250_vm4, %v2784_v50 }
0x252d   :  { %v2845_v54 = vpop.f32.mrb[60].mxu0 }
0x252e   :  { %v2846_v52 = vadd.f32 %v2961_v51, %v2845_v54  ;;  %v3349_v55 = vpop.f32.mrb[61].mxu0 }
0x252f   :  { %v2848_v60 = vpop.f32.mrb[62].mxu0 }
0x2530   :  { %2852 = vst [vmem:[#allocation11] sm:$0xff] %v2846_v52  ;;  %v2849_v61 = vadd.f32 %v2961_v51, %v2848_v60  ;;  %v3350_v3 = vpop.f32.mrb[63].mxu0 }
0x2532   :  { %2853 = vst [vmem:[#allocation11 + $0x8] sm:$0xff] %v2849_v61 }
0x2533   :  { %3864 = shalt.err (!%p3861_p2)
}
0x2534   :  { %s3865_s8 = scalar_lea.hbm %s4765_s13, 256 }
0x2535   :  { %p3866_p3 = scmp.ne.s32.totalorder %s4765_s13, %s3865_s8  ;;  %p3869_p4 = scmp.lt.u32.totalorder %s3865_s8, %s4765_s13 }
0x2537   :  { %p3871_p5 = pnand %p3869_p4, %p3866_p3 }
0x2539   :  { %3874 = shalt.err (!%p3871_p5)
}
0x253a   :  { %2865 = dma.vmem_to_hbm [thread:$0]  %s2860_s29, 256, %s4765_s13, [#allocation4], %s3884_s18, %s3884_s18, %s3885_s19  }
0x253b   :  { %3881 = dma.done.wait [#allocation4], 256  }
0x253c   :  { %3882 = vsyncadd [#allocation4], 4294967040 }
0x253d   :  { %2869 = vsyncpa [#allocation3], 1 }
0x253e   :  { %2870 = vsyncpa [#allocation6], 1 }
0x253f   :  { %2871 = vsyncpa [#allocation9], 1 }
0x2540   :  { %2872 = vsyncpa [#allocation4], 1 }

</bundles_post_ra>
